<compile_context>
chip_gen: v5e
topology: v5e:2x2
jax: 0.10.0
libtpu: 0.0.40
codegen_flags: <defaults>
</compile_context>

<pallas_src>
import jax
import jax.numpy as jnp
from jax.experimental import pallas as pl
from jax.experimental.pallas import tpu as pltpu


# ----------------------------- Pallas kernel --------------------------------

def sam_kernel(x1_ref, x2_ref, x3_ref, e2_ref, e4_ref,
               w1_ref, b1_ref, w2_ref, b2_ref, w3_ref, b3_ref,
               wd1_ref, wd2_ref, wd3_ref, bd_ref, o_ref):
    """Fused SAM forward for one (batch, row-band) tile.

    x1: (C,  TH,   W)     full-res row-band of d1
    x2: (2C, TH/2, W/2)   matching low-res row-band of d2
    x3: (4C, TH/4, W/4)   matching low-res row-band of d3
    e2: (W/2, W), e4: (W/4, W)   0/1 column-expansion matrices (nearest x2/x4)
    w*: (Cout, Cin) conv weights with BN scale folded in; b*: (Cout, 1) bias.
    o : (C,  TH,   W)     output row-band
    """
    f32 = jnp.float32
    TH = o_ref.shape[1]

    # Tiny constants: load once per grid step.
    w1 = w1_ref[...]; b1 = b1_ref[...]
    w2 = w2_ref[...]; b2 = b2_ref[...]
    w3 = w3_ref[...]; b3 = b3_ref[...]
    wd1 = wd1_ref[...]; wd2 = wd2_ref[...]; wd3 = wd3_ref[...]
    bd = bd_ref[...]
    e2 = e2_ref[...]; e4 = e4_ref[...]

    def conv_relu(w, x, b):
        # 1x1 conv (channel contraction) + folded-BN bias + ReLU.
        return jnp.maximum(jnp.dot(w, x, preferred_element_type=f32) + b, 0.0)

    # Each group of 4 full-res rows maps to 2 low-res rows of d2 and 1 of d3.
    for g in range(TH // 4):
        # Branch 3: conv at 1/16 resolution, column-expand x4; its value and
        # its logit contribution are reused for 4 full-res rows.
        y3 = jnp.dot(conv_relu(w3, x3_ref[:, g, :], b3), e4,
                     preferred_element_type=f32)                      # (C, W)
        logit3 = jnp.dot(wd3, y3, preferred_element_type=f32)         # (3, W)

        for h in range(2):
            # Branch 2: conv at 1/4 resolution, column-expand x2; reused for
            # 2 full-res rows.
            y2 = jnp.dot(conv_relu(w2, x2_ref[:, 2 * g + h, :], b2), e2,
                         preferred_element_type=f32)                  # (C, W)
            logit2 = jnp.dot(wd2, y2, preferred_element_type=f32)     # (3, W)

            for s in range(2):
                r = 4 * g + 2 * h + s
                # Branch 1: full-resolution conv for this row.
                y1 = conv_relu(w1, x1_ref[:, r, :], b1)               # (C, W)

                # down conv (1x1, BN folded, no ReLU) -> 3 logits per pixel.
                logits = (jnp.dot(wd1, y1, preferred_element_type=f32)
                          + logit2 + logit3 + bd)                     # (3, W)

                # Softmax over the 3 channels: lane-parallel VPU/EUP only.
                l1 = logits[0:1, :]
                l2 = logits[1:2, :]
                l3 = logits[2:3, :]
                m = jnp.maximum(l1, jnp.maximum(l2, l3))
                p1 = jnp.exp(l1 - m)
                p2 = jnp.exp(l2 - m)
                p3 = jnp.exp(l3 - m)
                # Exact reciprocal keeps the f32 path bit-faithful to the
                # reference; switch approx=True together with bf16 streaming.
                inv = pl.reciprocal(p1 + p2 + p3, approx=False)

                out_row = (p1 * y1 + p2 * y2 + p3 * y3) * inv          # (C, W)
                o_ref[:, r, :] = out_row.astype(o_ref.dtype)


# ------------------------------- helpers -------------------------------------

def _fold_conv_bn(layer, eps=1e-5):
    """Fold eval-mode BN into the 1x1 conv: (Cout,Cin) weight, (Cout,1) bias."""
    w = layer['w']                               # (Cout, Cin)
    gamma, beta, mean, var = layer['bn']
    s = gamma / jnp.sqrt(var + eps)
    return w * s[:, None], (beta - mean * s)[:, None]


def _col_expand_matrix(w_low, f, dtype):
    """0/1 matrix E of shape (w_low, w_low*f) with y_full = y_low @ E."""
    cols = jnp.arange(w_low * f) // f
    return (jnp.arange(w_low)[:, None] == cols[None, :]).astype(dtype)


def _vmem_capacity_bytes():
    try:
        info = pltpu.get_tpu_info()
        cap = int(getattr(info, "vmem_capacity_bytes", 0))
        if cap > 0:
            return cap
    except Exception:
        pass
    return 128 << 20   # conservative default (v5e/v6e class)


def _stream_bytes(C, tile_rows, W, itemsize):
    # Double-buffered streamed slabs: x1 + x2 + x3 + out = 2.75 * C*TH*W elems.
    return int(2 * 2.75 * C * tile_rows * W * itemsize) + (256 << 10)


def _choose_tile_rows(B, H, W, C, budget_bytes, itemsize):
    """Largest legal row-band fitting the VMEM budget (and >=2 grid steps)."""
    # Legal tiles: multiples of 32 dividing H (keeps the x2/x3 row blocks
    # 8-sublane aligned), capped for trace size; or the full image height.
    cands = [t for t in range(32, min(H, 64) + 1, 32) if H % t == 0]
    if H <= 64 or not cands:
        cands.append(H)
    fitting = sorted(t for t in cands if _stream_bytes(C, t, W, itemsize) <= budget_bytes)
    if not fitting:
        return min(cands)
    # Prefer a tile that yields >=2 grid steps so both v7x cores get work.
    multi = [t for t in fitting if B * (H // t) >= 2]
    return max(multi) if multi else max(fitting)


# ------------------------------- wrapper -------------------------------------

def sam_forward(d1, d2, d3, params, *, tile_rows=None, stream_dtype=None):
    """d1:(B,C,H,W)  d2:(B,2C,H/2,W/2)  d3:(B,4C,H/4,W/4)  (NCHW)."""
    B, C, H, W = d1.shape
    assert d2.shape == (B, 2 * C, H // 2, W // 2)
    assert d3.shape == (B, 4 * C, H // 4, W // 4)
    assert H % 4 == 0 and W % 4 == 0

    # Eval-mode BN folded into weights / biases.
    w1, b1 = _fold_conv_bn(params['c1'])
    w2, b2 = _fold_conv_bn(params['c2'])
    w3, b3 = _fold_conv_bn(params['c3'])
    wd, bd = _fold_conv_bn(params['down'])
    wd1, wd2, wd3 = wd[:, :C], wd[:, C:2 * C], wd[:, 2 * C:]

    # Optional bf16 streaming (halves HBM bytes; biases / softmax stay f32).
    if stream_dtype is not None:
        d1 = d1.astype(stream_dtype)
        d2 = d2.astype(stream_dtype)
        d3 = d3.astype(stream_dtype)
        w1 = w1.astype(stream_dtype)
        w2 = w2.astype(stream_dtype)
        w3 = w3.astype(stream_dtype)
        wd1 = wd1.astype(stream_dtype)
        wd2 = wd2.astype(stream_dtype)
        wd3 = wd3.astype(stream_dtype)
    mat_dtype = d1.dtype
    itemsize = jnp.dtype(mat_dtype).itemsize

    # Tiny column-expansion matrices (W/2, W) and (W/4, W).
    e2 = _col_expand_matrix(W // 2, 2, mat_dtype)
    e4 = _col_expand_matrix(W // 4, 4, mat_dtype)

    # Generation-aware VMEM budget (~48 MiB on 64 MiB v7x, ~96 MiB on 128 MiB).
    cap = _vmem_capacity_bytes()
    budget = max(16 << 20, min(int(cap * 0.75), cap - (16 << 20)))
    vmem_limit = int(max(32 << 20, min(int(cap * 0.85), cap - (8 << 20))))

    if tile_rows is None:
        tile_rows = _choose_tile_rows(B, H, W, C, budget, itemsize)
    TH = tile_rows
    assert H % TH == 0 and TH % 4 == 0, f"illegal tile_rows={TH} for H={H}"
    assert TH == H or TH % 32 == 0, f"tile_rows={TH} must be H or a multiple of 32"

    grid = (B, H // TH)

    def band_spec(c, rows, cols):
        return pl.BlockSpec((None, c, rows, cols), lambda b, i: (b, 0, i, 0))

    def const_spec(arr):
        nd = arr.ndim
        return pl.BlockSpec(arr.shape, lambda b, i, _nd=nd: (0,) * _nd)

    out = pl.pallas_call(
        sam_kernel,
        out_shape=jax.ShapeDtypeStruct((B, C, H, W), jnp.float32),
        grid=grid,
        in_specs=[
            band_spec(C, TH, W),
            band_spec(2 * C, TH // 2, W // 2),
            band_spec(4 * C, TH // 4, W // 4),
            const_spec(e2), const_spec(e4),
            const_spec(w1), const_spec(b1),
            const_spec(w2), const_spec(b2),
            const_spec(w3), const_spec(b3),
            const_spec(wd1), const_spec(wd2), const_spec(wd3), const_spec(bd),
        ],
        out_specs=pl.BlockSpec((None, C, TH, W), lambda b, i: (b, 0, i, 0)),
        compiler_params=pltpu.CompilerParams(
            dimension_semantics=("parallel", "parallel"),
            vmem_limit_bytes=vmem_limit),
    )(d1, d2, d3, e2, e4, w1, b1, w2, b2, w3, b3, wd1, wd2, wd3, bd)

    return out


# -------------------------- parameter construction ---------------------------

def make_params(key, base_channel):
    C = base_channel

    def conv_bn(key, cin, cout):
        kw, kg, kb, km, kv = jax.random.split(key, 5)
        # PyTorch conv weight is (cout, cin, 1, 1); stored squeezed as (cout, cin).
        w = 0.1 * jax.random.normal(kw, (cout, cin), jnp.float32)
        gamma = 1.0 + 0.1 * jax.random.normal(kg, (cout,), jnp.float32)
        beta = 0.1 * jax.random.normal(kb, (cout,), jnp.float32)
        mean = 0.1 * jax.random.normal(km, (cout,), jnp.float32)
        var = jax.random.uniform(kv, (cout,), jnp.float32, 0.5, 1.5)
        return dict(w=w, bn=(gamma, beta, mean, var))

    k1, k2, k3, kd = jax.random.split(key, 4)
    return dict(c1=conv_bn(k1, C, C),          # conv_1: C   -> C
                c2=conv_bn(k2, 2 * C, C),      # conv_2: 2C  -> C
                c3=conv_bn(k3, 4 * C, C),      # conv_3: 4C  -> C
                down=conv_bn(kd, 3 * C, 3))    # down:   3C  -> 3


# ------------------------------ JAX reference ---------------------------------

def sam_ref(d1, d2, d3, params, eps=1e-5):
    def conv(x, w):                                  # x: (B,Cin,H,W), w: (Cout,Cin)
        return jnp.einsum('oc,bchw->bohw', w, x)

    def bn(x, stats):
        gamma, beta, mean, var = stats
        s = gamma / jnp.sqrt(var + eps)
        return x * s[None, :, None, None] + (beta - mean * s)[None, :, None, None]

    def up(x, f):
        return jnp.repeat(jnp.repeat(x, f, axis=2), f, axis=3)

    y1 = jnp.maximum(bn(conv(d1, params['c1']['w']), params['c1']['bn']), 0.0)
    y2 = up(jnp.maximum(bn(conv(d2, params['c2']['w']), params['c2']['bn']), 0.0), 2)
    y3 = up(jnp.maximum(bn(conv(d3, params['c3']['w']), params['c3']['bn']), 0.0), 4)
    d = jnp.concatenate([y1, y2, y3], axis=1)
    logits = bn(conv(d, params['down']['w']), params['down']['bn'])
    att = jax.nn.softmax(logits, axis=1)
    return att[:, 0:1] * y1 + att[:, 1:2] * y2 + att[:, 2:3] * y3


# --------------------------------- main ---------------------------------------

if __name__ == "__main__":
    base_channel = 4
    B, H, W = 2, 16, 16

    key = jax.random.PRNGKey(0)
    kd1, kd2, kd3, kp = jax.random.split(key, 4)

    d1 = jax.random.normal(kd1, (B, base_channel, H, W), jnp.float32)
    d2 = jax.random.normal(kd2, (B, 2 * base_channel, H // 2, W // 2), jnp.float32)
    d3 = jax.random.normal(kd3, (B, 4 * base_channel, H // 4, W // 4), jnp.float32)

    params = make_params(kp, base_channel)

    out = jax.block_until_ready(sam_forward(d1, d2, d3, params))
    ref = sam_ref(d1, d2, d3, params)

    assert out.shape == (B, base_channel, H, W)
    err = float(jnp.max(jnp.abs(out - ref)))
    assert jnp.allclose(out, ref, atol=1e-4, rtol=1e-4), f"mismatch vs reference: {err}"

    print("KERNEL_OK")
</pallas_src>

<mosaic_0001>
module attributes {stable_mosaic.version = 11 : i64} {
  func.func @sam_kernel(%arg0: i32, %arg1: i32, %arg2: memref<1x4x16x16xf32, #tpu.memory_space<vmem>>, %arg3: memref<1x8x8x8xf32, #tpu.memory_space<vmem>>, %arg4: memref<1x16x4x4xf32, #tpu.memory_space<vmem>>, %arg5: memref<8x16xf32, #tpu.memory_space<vmem>>, %arg6: memref<4x16xf32, #tpu.memory_space<vmem>>, %arg7: memref<4x4xf32, #tpu.memory_space<vmem>>, %arg8: memref<4x1xf32, #tpu.memory_space<vmem>>, %arg9: memref<4x8xf32, #tpu.memory_space<vmem>>, %arg10: memref<4x1xf32, #tpu.memory_space<vmem>>, %arg11: memref<4x16xf32, #tpu.memory_space<vmem>>, %arg12: memref<4x1xf32, #tpu.memory_space<vmem>>, %arg13: memref<3x4xf32, #tpu.memory_space<vmem>>, %arg14: memref<3x4xf32, #tpu.memory_space<vmem>>, %arg15: memref<3x4xf32, #tpu.memory_space<vmem>>, %arg16: memref<3x1xf32, #tpu.memory_space<vmem>>, %arg17: memref<1x4x16x16xf32, #tpu.memory_space<vmem>>) attributes {dimension_semantics = [#tpu.dimension_semantics<parallel>, #tpu.dimension_semantics<parallel>], iteration_bounds = array<i64: 2, 1>, scalar_prefetch = 0 : i64, scratch_operands = 0 : i64, tpu.core_type = #tpu.core_type<tc>, window_params = [{transform_indices = @transform_0, window_bounds = array<i64: 1, 4, 16, 16>}, {transform_indices = @transform_1, window_bounds = array<i64: 1, 8, 8, 8>}, {transform_indices = @transform_2, window_bounds = array<i64: 1, 16, 4, 4>}, {pipeline_mode = #tpu.pipeline_mode<synchronous>, transform_indices = @transform_3, window_bounds = array<i64: 8, 16>}, {pipeline_mode = #tpu.pipeline_mode<synchronous>, transform_indices = @transform_4, window_bounds = array<i64: 4, 16>}, {pipeline_mode = #tpu.pipeline_mode<synchronous>, transform_indices = @transform_5, window_bounds = array<i64: 4, 4>}, {pipeline_mode = #tpu.pipeline_mode<synchronous>, transform_indices = @transform_6, window_bounds = array<i64: 4, 1>}, {pipeline_mode = #tpu.pipeline_mode<synchronous>, transform_indices = @transform_7, window_bounds = array<i64: 4, 8>}, {pipeline_mode = #tpu.pipeline_mode<synchronous>, transform_indices = @transform_8, window_bounds = array<i64: 4, 1>}, {pipeline_mode = #tpu.pipeline_mode<synchronous>, transform_indices = @transform_9, window_bounds = array<i64: 4, 16>}, {pipeline_mode = #tpu.pipeline_mode<synchronous>, transform_indices = @transform_10, window_bounds = array<i64: 4, 1>}, {pipeline_mode = #tpu.pipeline_mode<synchronous>, transform_indices = @transform_11, window_bounds = array<i64: 3, 4>}, {pipeline_mode = #tpu.pipeline_mode<synchronous>, transform_indices = @transform_12, window_bounds = array<i64: 3, 4>}, {pipeline_mode = #tpu.pipeline_mode<synchronous>, transform_indices = @transform_13, window_bounds = array<i64: 3, 4>}, {pipeline_mode = #tpu.pipeline_mode<synchronous>, transform_indices = @transform_14, window_bounds = array<i64: 3, 1>}, {transform_indices = @transform_15, window_bounds = array<i64: 1, 4, 16, 16>}]} {
    %c0 = arith.constant 0 : index
    %c0_0 = arith.constant 0 : index
    %0 = vector.load %arg7[%c0, %c0_0] : memref<4x4xf32, #tpu.memory_space<vmem>>, vector<4x4xf32>
    %c0_1 = arith.constant 0 : index
    %c0_2 = arith.constant 0 : index
    %1 = vector.load %arg8[%c0_1, %c0_2] : memref<4x1xf32, #tpu.memory_space<vmem>>, vector<4x1xf32>
    %c0_3 = arith.constant 0 : index
    %c0_4 = arith.constant 0 : index
    %2 = vector.load %arg9[%c0_3, %c0_4] : memref<4x8xf32, #tpu.memory_space<vmem>>, vector<4x8xf32>
    %c0_5 = arith.constant 0 : index
    %c0_6 = arith.constant 0 : index
    %3 = vector.load %arg10[%c0_5, %c0_6] : memref<4x1xf32, #tpu.memory_space<vmem>>, vector<4x1xf32>
    %c0_7 = arith.constant 0 : index
    %c0_8 = arith.constant 0 : index
    %4 = vector.load %arg11[%c0_7, %c0_8] : memref<4x16xf32, #tpu.memory_space<vmem>>, vector<4x16xf32>
    %c0_9 = arith.constant 0 : index
    %c0_10 = arith.constant 0 : index
    %5 = vector.load %arg12[%c0_9, %c0_10] : memref<4x1xf32, #tpu.memory_space<vmem>>, vector<4x1xf32>
    %c0_11 = arith.constant 0 : index
    %c0_12 = arith.constant 0 : index
    %6 = vector.load %arg13[%c0_11, %c0_12] : memref<3x4xf32, #tpu.memory_space<vmem>>, vector<3x4xf32>
    %c0_13 = arith.constant 0 : index
    %c0_14 = arith.constant 0 : index
    %7 = vector.load %arg14[%c0_13, %c0_14] : memref<3x4xf32, #tpu.memory_space<vmem>>, vector<3x4xf32>
    %c0_15 = arith.constant 0 : index
    %c0_16 = arith.constant 0 : index
    %8 = vector.load %arg15[%c0_15, %c0_16] : memref<3x4xf32, #tpu.memory_space<vmem>>, vector<3x4xf32>
    %c0_17 = arith.constant 0 : index
    %c0_18 = arith.constant 0 : index
    %9 = vector.load %arg16[%c0_17, %c0_18] : memref<3x1xf32, #tpu.memory_space<vmem>>, vector<3x1xf32>
    %c0_19 = arith.constant 0 : index
    %c0_20 = arith.constant 0 : index
    %10 = vector.load %arg5[%c0_19, %c0_20] : memref<8x16xf32, #tpu.memory_space<vmem>>, vector<8x16xf32>
    %c0_21 = arith.constant 0 : index
    %c0_22 = arith.constant 0 : index
    %11 = vector.load %arg6[%c0_21, %c0_22] : memref<4x16xf32, #tpu.memory_space<vmem>>, vector<4x16xf32>
    %c0_23 = arith.constant 0 : index
    %c0_24 = arith.constant 0 : index
    %c0_25 = arith.constant 0 : index
    %c0_26 = arith.constant 0 : index
    %12 = vector.load %arg4[%c0_23, %c0_24, %c0_25, %c0_26] : memref<1x16x4x4xf32, #tpu.memory_space<vmem>>, vector<1x16x1x4xf32>
    %13 = vector.shape_cast %12 : vector<1x16x1x4xf32> to vector<16x4xf32>
    %cst = arith.constant dense<0.000000e+00> : vector<4x4xf32>
    %14 = tpu.matmul %4, %13, %cst {dimension_numbers = #tpu.dot_dimension_numbers<[1], [0], [0], [1], [0, 0, 1, 1], [], []>} : vector<4x16xf32>, vector<16x4xf32>, vector<4x4xf32> -> vector<4x4xf32>
    %15 = vector.broadcast %5 : vector<4x1xf32> to vector<4x4xf32>
    %16 = arith.addf %14, %15 : vector<4x4xf32>
    %cst_27 = arith.constant 0.000000e+00 : f32
    %17 = vector.broadcast %cst_27 : f32 to vector<4x4xf32>
    %18 = arith.maximumf %16, %17 : vector<4x4xf32>
    %cst_28 = arith.constant dense<0.000000e+00> : vector<4x16xf32>
    %19 = tpu.matmul %18, %11, %cst_28 {dimension_numbers = #tpu.dot_dimension_numbers<[1], [0], [0], [1], [0, 0, 1, 1], [], []>} : vector<4x4xf32>, vector<4x16xf32>, vector<4x16xf32> -> vector<4x16xf32>
    %cst_29 = arith.constant dense<0.000000e+00> : vector<3x16xf32>
    %20 = tpu.matmul %8, %19, %cst_29 {dimension_numbers = #tpu.dot_dimension_numbers<[1], [0], [0], [1], [0, 0, 1, 1], [], []>} : vector<3x4xf32>, vector<4x16xf32>, vector<3x16xf32> -> vector<3x16xf32>
    %c0_30 = arith.constant 0 : index
    %c0_31 = arith.constant 0 : index
    %c0_32 = arith.constant 0 : index
    %c0_33 = arith.constant 0 : index
    %21 = vector.load %arg3[%c0_30, %c0_31, %c0_32, %c0_33] : memref<1x8x8x8xf32, #tpu.memory_space<vmem>>, vector<1x8x1x8xf32>
    %22 = vector.shape_cast %21 : vector<1x8x1x8xf32> to vector<8x8xf32>
    %cst_34 = arith.constant dense<0.000000e+00> : vector<4x8xf32>
    %23 = tpu.matmul %2, %22, %cst_34 {dimension_numbers = #tpu.dot_dimension_numbers<[1], [0], [0], [1], [0, 0, 1, 1], [], []>} : vector<4x8xf32>, vector<8x8xf32>, vector<4x8xf32> -> vector<4x8xf32>
    %24 = vector.broadcast %3 : vector<4x1xf32> to vector<4x8xf32>
    %25 = arith.addf %23, %24 : vector<4x8xf32>
    %cst_35 = arith.constant 0.000000e+00 : f32
    %26 = vector.broadcast %cst_35 : f32 to vector<4x8xf32>
    %27 = arith.maximumf %25, %26 : vector<4x8xf32>
    %cst_36 = arith.constant dense<0.000000e+00> : vector<4x16xf32>
    %28 = tpu.matmul %27, %10, %cst_36 {dimension_numbers = #tpu.dot_dimension_numbers<[1], [0], [0], [1], [0, 0, 1, 1], [], []>} : vector<4x8xf32>, vector<8x16xf32>, vector<4x16xf32> -> vector<4x16xf32>
    %cst_37 = arith.constant dense<0.000000e+00> : vector<3x16xf32>
    %29 = tpu.matmul %7, %28, %cst_37 {dimension_numbers = #tpu.dot_dimension_numbers<[1], [0], [0], [1], [0, 0, 1, 1], [], []>} : vector<3x4xf32>, vector<4x16xf32>, vector<3x16xf32> -> vector<3x16xf32>
    %c0_38 = arith.constant 0 : index
    %c0_39 = arith.constant 0 : index
    %c0_40 = arith.constant 0 : index
    %c0_41 = arith.constant 0 : index
    %30 = vector.load %arg2[%c0_38, %c0_39, %c0_40, %c0_41] : memref<1x4x16x16xf32, #tpu.memory_space<vmem>>, vector<1x4x1x16xf32>
    %31 = vector.shape_cast %30 : vector<1x4x1x16xf32> to vector<4x16xf32>
    %cst_42 = arith.constant dense<0.000000e+00> : vector<4x16xf32>
    %32 = tpu.matmul %0, %31, %cst_42 {dimension_numbers = #tpu.dot_dimension_numbers<[1], [0], [0], [1], [0, 0, 1, 1], [], []>} : vector<4x4xf32>, vector<4x16xf32>, vector<4x16xf32> -> vector<4x16xf32>
    %33 = vector.broadcast %1 : vector<4x1xf32> to vector<4x16xf32>
    %34 = arith.addf %32, %33 : vector<4x16xf32>
    %cst_43 = arith.constant 0.000000e+00 : f32
    %35 = vector.broadcast %cst_43 : f32 to vector<4x16xf32>
    %36 = arith.maximumf %34, %35 : vector<4x16xf32>
    %cst_44 = arith.constant dense<0.000000e+00> : vector<3x16xf32>
    %37 = tpu.matmul %6, %36, %cst_44 {dimension_numbers = #tpu.dot_dimension_numbers<[1], [0], [0], [1], [0, 0, 1, 1], [], []>} : vector<3x4xf32>, vector<4x16xf32>, vector<3x16xf32> -> vector<3x16xf32>
    %38 = arith.addf %37, %29 : vector<3x16xf32>
    %39 = arith.addf %38, %20 : vector<3x16xf32>
    %40 = vector.broadcast %9 : vector<3x1xf32> to vector<3x16xf32>
    %41 = arith.addf %39, %40 : vector<3x16xf32>
    %42 = vector.extract_strided_slice %41 {offsets = [0, 0], sizes = [1, 16], strides = [1, 1]} : vector<3x16xf32> to vector<1x16xf32>
    %43 = vector.extract_strided_slice %41 {offsets = [1, 0], sizes = [1, 16], strides = [1, 1]} : vector<3x16xf32> to vector<1x16xf32>
    %44 = vector.extract_strided_slice %41 {offsets = [2, 0], sizes = [1, 16], strides = [1, 1]} : vector<3x16xf32> to vector<1x16xf32>
    %45 = arith.maximumf %43, %44 : vector<1x16xf32>
    %46 = arith.maximumf %42, %45 : vector<1x16xf32>
    %47 = arith.subf %42, %46 : vector<1x16xf32>
    %48 = math.exp %47 : vector<1x16xf32>
    %49 = arith.subf %43, %46 : vector<1x16xf32>
    %50 = math.exp %49 : vector<1x16xf32>
    %51 = arith.subf %44, %46 : vector<1x16xf32>
    %52 = math.exp %51 : vector<1x16xf32>
    %53 = arith.addf %48, %50 : vector<1x16xf32>
    %54 = arith.addf %53, %52 : vector<1x16xf32>
    %55 = tpu.reciprocal %54 : vector<1x16xf32> -> vector<1x16xf32>
    %56 = vector.broadcast %48 : vector<1x16xf32> to vector<4x16xf32>
    %57 = arith.mulf %56, %36 : vector<4x16xf32>
    %58 = vector.broadcast %50 : vector<1x16xf32> to vector<4x16xf32>
    %59 = arith.mulf %58, %28 : vector<4x16xf32>
    %60 = arith.addf %57, %59 : vector<4x16xf32>
    %61 = vector.broadcast %52 : vector<1x16xf32> to vector<4x16xf32>
    %62 = arith.mulf %61, %19 : vector<4x16xf32>
    %63 = arith.addf %60, %62 : vector<4x16xf32>
    %64 = vector.broadcast %55 : vector<1x16xf32> to vector<4x16xf32>
    %65 = arith.mulf %63, %64 : vector<4x16xf32>
    %c0_45 = arith.constant 0 : index
    %c0_46 = arith.constant 0 : index
    %c0_47 = arith.constant 0 : index
    %c0_48 = arith.constant 0 : index
    %66 = vector.load %arg17[%c0_45, %c0_46, %c0_47, %c0_48] : memref<1x4x16x16xf32, #tpu.memory_space<vmem>>, vector<1x4x1x16xf32>
    %67 = vector.shape_cast %66 : vector<1x4x1x16xf32> to vector<4x16xf32>
    %68 = vector.shape_cast %65 : vector<4x16xf32> to vector<1x4x1x16xf32>
    tpu.vector_store %arg17[%c0_45, %c0_46, %c0_47, %c0_48], %68 {strides = array<i32>} : memref<1x4x16x16xf32, #tpu.memory_space<vmem>>, vector<1x4x1x16xf32>,
    %c0_49 = arith.constant 0 : index
    %c0_50 = arith.constant 0 : index
    %c1 = arith.constant 1 : index
    %c0_51 = arith.constant 0 : index
    %69 = vector.load %arg2[%c0_49, %c0_50, %c1, %c0_51] : memref<1x4x16x16xf32, #tpu.memory_space<vmem>>, vector<1x4x1x16xf32>
    %70 = vector.shape_cast %69 : vector<1x4x1x16xf32> to vector<4x16xf32>
    %cst_52 = arith.constant dense<0.000000e+00> : vector<4x16xf32>
    %71 = tpu.matmul %0, %70, %cst_52 {dimension_numbers = #tpu.dot_dimension_numbers<[1], [0], [0], [1], [0, 0, 1, 1], [], []>} : vector<4x4xf32>, vector<4x16xf32>, vector<4x16xf32> -> vector<4x16xf32>
    %72 = vector.broadcast %1 : vector<4x1xf32> to vector<4x16xf32>
    %73 = arith.addf %71, %72 : vector<4x16xf32>
    %cst_53 = arith.constant 0.000000e+00 : f32
    %74 = vector.broadcast %cst_53 : f32 to vector<4x16xf32>
    %75 = arith.maximumf %73, %74 : vector<4x16xf32>
    %cst_54 = arith.constant dense<0.000000e+00> : vector<3x16xf32>
    %76 = tpu.matmul %6, %75, %cst_54 {dimension_numbers = #tpu.dot_dimension_numbers<[1], [0], [0], [1], [0, 0, 1, 1], [], []>} : vector<3x4xf32>, vector<4x16xf32>, vector<3x16xf32> -> vector<3x16xf32>
    %77 = arith.addf %76, %29 : vector<3x16xf32>
    %78 = arith.addf %77, %20 : vector<3x16xf32>
    %79 = vector.broadcast %9 : vector<3x1xf32> to vector<3x16xf32>
    %80 = arith.addf %78, %79 : vector<3x16xf32>
    %81 = vector.extract_strided_slice %80 {offsets = [0, 0], sizes = [1, 16], strides = [1, 1]} : vector<3x16xf32> to vector<1x16xf32>
    %82 = vector.extract_strided_slice %80 {offsets = [1, 0], sizes = [1, 16], strides = [1, 1]} : vector<3x16xf32> to vector<1x16xf32>
    %83 = vector.extract_strided_slice %80 {offsets = [2, 0], sizes = [1, 16], strides = [1, 1]} : vector<3x16xf32> to vector<1x16xf32>
    %84 = arith.maximumf %82, %83 : vector<1x16xf32>
    %85 = arith.maximumf %81, %84 : vector<1x16xf32>
    %86 = arith.subf %81, %85 : vector<1x16xf32>
    %87 = math.exp %86 : vector<1x16xf32>
    %88 = arith.subf %82, %85 : vector<1x16xf32>
    %89 = math.exp %88 : vector<1x16xf32>
    %90 = arith.subf %83, %85 : vector<1x16xf32>
    %91 = math.exp %90 : vector<1x16xf32>
    %92 = arith.addf %87, %89 : vector<1x16xf32>
    %93 = arith.addf %92, %91 : vector<1x16xf32>
    %94 = tpu.reciprocal %93 : vector<1x16xf32> -> vector<1x16xf32>
    %95 = vector.broadcast %87 : vector<1x16xf32> to vector<4x16xf32>
    %96 = arith.mulf %95, %75 : vector<4x16xf32>
    %97 = vector.broadcast %89 : vector<1x16xf32> to vector<4x16xf32>
    %98 = arith.mulf %97, %28 : vector<4x16xf32>
    %99 = arith.addf %96, %98 : vector<4x16xf32>
    %100 = vector.broadcast %91 : vector<1x16xf32> to vector<4x16xf32>
    %101 = arith.mulf %100, %19 : vector<4x16xf32>
    %102 = arith.addf %99, %101 : vector<4x16xf32>
    %103 = vector.broadcast %94 : vector<1x16xf32> to vector<4x16xf32>
    %104 = arith.mulf %102, %103 : vector<4x16xf32>
    %c0_55 = arith.constant 0 : index
    %c0_56 = arith.constant 0 : index
    %c1_57 = arith.constant 1 : index
    %c0_58 = arith.constant 0 : index
    %105 = vector.load %arg17[%c0_55, %c0_56, %c1_57, %c0_58] : memref<1x4x16x16xf32, #tpu.memory_space<vmem>>, vector<1x4x1x16xf32>
    %106 = vector.shape_cast %105 : vector<1x4x1x16xf32> to vector<4x16xf32>
    %107 = vector.shape_cast %104 : vector<4x16xf32> to vector<1x4x1x16xf32>
    tpu.vector_store %arg17[%c0_55, %c0_56, %c1_57, %c0_58], %107 {strides = array<i32>} : memref<1x4x16x16xf32, #tpu.memory_space<vmem>>, vector<1x4x1x16xf32>,
    %c0_59 = arith.constant 0 : index
    %c0_60 = arith.constant 0 : index
    %c1_61 = arith.constant 1 : index
    %c0_62 = arith.constant 0 : index
    %108 = vector.load %arg3[%c0_59, %c0_60, %c1_61, %c0_62] : memref<1x8x8x8xf32, #tpu.memory_space<vmem>>, vector<1x8x1x8xf32>
    %109 = vector.shape_cast %108 : vector<1x8x1x8xf32> to vector<8x8xf32>
    %cst_63 = arith.constant dense<0.000000e+00> : vector<4x8xf32>
    %110 = tpu.matmul %2, %109, %cst_63 {dimension_numbers = #tpu.dot_dimension_numbers<[1], [0], [0], [1], [0, 0, 1, 1], [], []>} : vector<4x8xf32>, vector<8x8xf32>, vector<4x8xf32> -> vector<4x8xf32>
    %111 = vector.broadcast %3 : vector<4x1xf32> to vector<4x8xf32>
    %112 = arith.addf %110, %111 : vector<4x8xf32>
    %cst_64 = arith.constant 0.000000e+00 : f32
    %113 = vector.broadcast %cst_64 : f32 to vector<4x8xf32>
    %114 = arith.maximumf %112, %113 : vector<4x8xf32>
    %cst_65 = arith.constant dense<0.000000e+00> : vector<4x16xf32>
    %115 = tpu.matmul %114, %10, %cst_65 {dimension_numbers = #tpu.dot_dimension_numbers<[1], [0], [0], [1], [0, 0, 1, 1], [], []>} : vector<4x8xf32>, vector<8x16xf32>, vector<4x16xf32> -> vector<4x16xf32>
    %cst_66 = arith.constant dense<0.000000e+00> : vector<3x16xf32>
    %116 = tpu.matmul %7, %115, %cst_66 {dimension_numbers = #tpu.dot_dimension_numbers<[1], [0], [0], [1], [0, 0, 1, 1], [], []>} : vector<3x4xf32>, vector<4x16xf32>, vector<3x16xf32> -> vector<3x16xf32>
    %c0_67 = arith.constant 0 : index
    %c0_68 = arith.constant 0 : index
    %c2 = arith.constant 2 : index
    %c0_69 = arith.constant 0 : index
    %117 = vector.load %arg2[%c0_67, %c0_68, %c2, %c0_69] : memref<1x4x16x16xf32, #tpu.memory_space<vmem>>, vector<1x4x1x16xf32>
    %118 = vector.shape_cast %117 : vector<1x4x1x16xf32> to vector<4x16xf32>
    %cst_70 = arith.constant dense<0.000000e+00> : vector<4x16xf32>
    %119 = tpu.matmul %0, %118, %cst_70 {dimension_numbers = #tpu.dot_dimension_numbers<[1], [0], [0], [1], [0, 0, 1, 1], [], []>} : vector<4x4xf32>, vector<4x16xf32>, vector<4x16xf32> -> vector<4x16xf32>
    %120 = vector.broadcast %1 : vector<4x1xf32> to vector<4x16xf32>
    %121 = arith.addf %119, %120 : vector<4x16xf32>
    %cst_71 = arith.constant 0.000000e+00 : f32
    %122 = vector.broadcast %cst_71 : f32 to vector<4x16xf32>
    %123 = arith.maximumf %121, %122 : vector<4x16xf32>
    %cst_72 = arith.constant dense<0.000000e+00> : vector<3x16xf32>
    %124 = tpu.matmul %6, %123, %cst_72 {dimension_numbers = #tpu.dot_dimension_numbers<[1], [0], [0], [1], [0, 0, 1, 1], [], []>} : vector<3x4xf32>, vector<4x16xf32>, vector<3x16xf32> -> vector<3x16xf32>
    %125 = arith.addf %124, %116 : vector<3x16xf32>
    %126 = arith.addf %125, %20 : vector<3x16xf32>
    %127 = vector.broadcast %9 : vector<3x1xf32> to vector<3x16xf32>
    %128 = arith.addf %126, %127 : vector<3x16xf32>
    %129 = vector.extract_strided_slice %128 {offsets = [0, 0], sizes = [1, 16], strides = [1, 1]} : vector<3x16xf32> to vector<1x16xf32>
    %130 = vector.extract_strided_slice %128 {offsets = [1, 0], sizes = [1, 16], strides = [1, 1]} : vector<3x16xf32> to vector<1x16xf32>
    %131 = vector.extract_strided_slice %128 {offsets = [2, 0], sizes = [1, 16], strides = [1, 1]} : vector<3x16xf32> to vector<1x16xf32>
    %132 = arith.maximumf %130, %131 : vector<1x16xf32>
    %133 = arith.maximumf %129, %132 : vector<1x16xf32>
    %134 = arith.subf %129, %133 : vector<1x16xf32>
    %135 = math.exp %134 : vector<1x16xf32>
    %136 = arith.subf %130, %133 : vector<1x16xf32>
    %137 = math.exp %136 : vector<1x16xf32>
    %138 = arith.subf %131, %133 : vector<1x16xf32>
    %139 = math.exp %138 : vector<1x16xf32>
    %140 = arith.addf %135, %137 : vector<1x16xf32>
    %141 = arith.addf %140, %139 : vector<1x16xf32>
    %142 = tpu.reciprocal %141 : vector<1x16xf32> -> vector<1x16xf32>
    %143 = vector.broadcast %135 : vector<1x16xf32> to vector<4x16xf32>
    %144 = arith.mulf %143, %123 : vector<4x16xf32>
    %145 = vector.broadcast %137 : vector<1x16xf32> to vector<4x16xf32>
    %146 = arith.mulf %145, %115 : vector<4x16xf32>
    %147 = arith.addf %144, %146 : vector<4x16xf32>
    %148 = vector.broadcast %139 : vector<1x16xf32> to vector<4x16xf32>
    %149 = arith.mulf %148, %19 : vector<4x16xf32>
    %150 = arith.addf %147, %149 : vector<4x16xf32>
    %151 = vector.broadcast %142 : vector<1x16xf32> to vector<4x16xf32>
    %152 = arith.mulf %150, %151 : vector<4x16xf32>
    %c0_73 = arith.constant 0 : index
    %c0_74 = arith.constant 0 : index
    %c2_75 = arith.constant 2 : index
    %c0_76 = arith.constant 0 : index
    %153 = vector.load %arg17[%c0_73, %c0_74, %c2_75, %c0_76] : memref<1x4x16x16xf32, #tpu.memory_space<vmem>>, vector<1x4x1x16xf32>
    %154 = vector.shape_cast %153 : vector<1x4x1x16xf32> to vector<4x16xf32>
    %155 = vector.shape_cast %152 : vector<4x16xf32> to vector<1x4x1x16xf32>
    tpu.vector_store %arg17[%c0_73, %c0_74, %c2_75, %c0_76], %155 {strides = array<i32>} : memref<1x4x16x16xf32, #tpu.memory_space<vmem>>, vector<1x4x1x16xf32>,
    %c0_77 = arith.constant 0 : index
    %c0_78 = arith.constant 0 : index
    %c3 = arith.constant 3 : index
    %c0_79 = arith.constant 0 : index
    %156 = vector.load %arg2[%c0_77, %c0_78, %c3, %c0_79] : memref<1x4x16x16xf32, #tpu.memory_space<vmem>>, vector<1x4x1x16xf32>
    %157 = vector.shape_cast %156 : vector<1x4x1x16xf32> to vector<4x16xf32>
    %cst_80 = arith.constant dense<0.000000e+00> : vector<4x16xf32>
    %158 = tpu.matmul %0, %157, %cst_80 {dimension_numbers = #tpu.dot_dimension_numbers<[1], [0], [0], [1], [0, 0, 1, 1], [], []>} : vector<4x4xf32>, vector<4x16xf32>, vector<4x16xf32> -> vector<4x16xf32>
    %159 = vector.broadcast %1 : vector<4x1xf32> to vector<4x16xf32>
    %160 = arith.addf %158, %159 : vector<4x16xf32>
    %cst_81 = arith.constant 0.000000e+00 : f32
    %161 = vector.broadcast %cst_81 : f32 to vector<4x16xf32>
    %162 = arith.maximumf %160, %161 : vector<4x16xf32>
    %cst_82 = arith.constant dense<0.000000e+00> : vector<3x16xf32>
    %163 = tpu.matmul %6, %162, %cst_82 {dimension_numbers = #tpu.dot_dimension_numbers<[1], [0], [0], [1], [0, 0, 1, 1], [], []>} : vector<3x4xf32>, vector<4x16xf32>, vector<3x16xf32> -> vector<3x16xf32>
    %164 = arith.addf %163, %116 : vector<3x16xf32>
    %165 = arith.addf %164, %20 : vector<3x16xf32>
    %166 = vector.broadcast %9 : vector<3x1xf32> to vector<3x16xf32>
    %167 = arith.addf %165, %166 : vector<3x16xf32>
    %168 = vector.extract_strided_slice %167 {offsets = [0, 0], sizes = [1, 16], strides = [1, 1]} : vector<3x16xf32> to vector<1x16xf32>
    %169 = vector.extract_strided_slice %167 {offsets = [1, 0], sizes = [1, 16], strides = [1, 1]} : vector<3x16xf32> to vector<1x16xf32>
    %170 = vector.extract_strided_slice %167 {offsets = [2, 0], sizes = [1, 16], strides = [1, 1]} : vector<3x16xf32> to vector<1x16xf32>
    %171 = arith.maximumf %169, %170 : vector<1x16xf32>
    %172 = arith.maximumf %168, %171 : vector<1x16xf32>
    %173 = arith.subf %168, %172 : vector<1x16xf32>
    %174 = math.exp %173 : vector<1x16xf32>
    %175 = arith.subf %169, %172 : vector<1x16xf32>
    %176 = math.exp %175 : vector<1x16xf32>
    %177 = arith.subf %170, %172 : vector<1x16xf32>
    %178 = math.exp %177 : vector<1x16xf32>
    %179 = arith.addf %174, %176 : vector<1x16xf32>
    %180 = arith.addf %179, %178 : vector<1x16xf32>
    %181 = tpu.reciprocal %180 : vector<1x16xf32> -> vector<1x16xf32>
    %182 = vector.broadcast %174 : vector<1x16xf32> to vector<4x16xf32>
    %183 = arith.mulf %182, %162 : vector<4x16xf32>
    %184 = vector.broadcast %176 : vector<1x16xf32> to vector<4x16xf32>
    %185 = arith.mulf %184, %115 : vector<4x16xf32>
    %186 = arith.addf %183, %185 : vector<4x16xf32>
    %187 = vector.broadcast %178 : vector<1x16xf32> to vector<4x16xf32>
    %188 = arith.mulf %187, %19 : vector<4x16xf32>
    %189 = arith.addf %186, %188 : vector<4x16xf32>
    %190 = vector.broadcast %181 : vector<1x16xf32> to vector<4x16xf32>
    %191 = arith.mulf %189, %190 : vector<4x16xf32>
    %c0_83 = arith.constant 0 : index
    %c0_84 = arith.constant 0 : index
    %c3_85 = arith.constant 3 : index
    %c0_86 = arith.constant 0 : index
    %192 = vector.load %arg17[%c0_83, %c0_84, %c3_85, %c0_86] : memref<1x4x16x16xf32, #tpu.memory_space<vmem>>, vector<1x4x1x16xf32>
    %193 = vector.shape_cast %192 : vector<1x4x1x16xf32> to vector<4x16xf32>
    %194 = vector.shape_cast %191 : vector<4x16xf32> to vector<1x4x1x16xf32>
    tpu.vector_store %arg17[%c0_83, %c0_84, %c3_85, %c0_86], %194 {strides = array<i32>} : memref<1x4x16x16xf32, #tpu.memory_space<vmem>>, vector<1x4x1x16xf32>,
    %c0_87 = arith.constant 0 : index
    %c0_88 = arith.constant 0 : index
    %c1_89 = arith.constant 1 : index
    %c0_90 = arith.constant 0 : index
    %195 = vector.load %arg4[%c0_87, %c0_88, %c1_89, %c0_90] : memref<1x16x4x4xf32, #tpu.memory_space<vmem>>, vector<1x16x1x4xf32>
    %196 = vector.shape_cast %195 : vector<1x16x1x4xf32> to vector<16x4xf32>
    %cst_91 = arith.constant dense<0.000000e+00> : vector<4x4xf32>
    %197 = tpu.matmul %4, %196, %cst_91 {dimension_numbers = #tpu.dot_dimension_numbers<[1], [0], [0], [1], [0, 0, 1, 1], [], []>} : vector<4x16xf32>, vector<16x4xf32>, vector<4x4xf32> -> vector<4x4xf32>
    %198 = vector.broadcast %5 : vector<4x1xf32> to vector<4x4xf32>
    %199 = arith.addf %197, %198 : vector<4x4xf32>
    %cst_92 = arith.constant 0.000000e+00 : f32
    %200 = vector.broadcast %cst_92 : f32 to vector<4x4xf32>
    %201 = arith.maximumf %199, %200 : vector<4x4xf32>
    %cst_93 = arith.constant dense<0.000000e+00> : vector<4x16xf32>
    %202 = tpu.matmul %201, %11, %cst_93 {dimension_numbers = #tpu.dot_dimension_numbers<[1], [0], [0], [1], [0, 0, 1, 1], [], []>} : vector<4x4xf32>, vector<4x16xf32>, vector<4x16xf32> -> vector<4x16xf32>
    %cst_94 = arith.constant dense<0.000000e+00> : vector<3x16xf32>
    %203 = tpu.matmul %8, %202, %cst_94 {dimension_numbers = #tpu.dot_dimension_numbers<[1], [0], [0], [1], [0, 0, 1, 1], [], []>} : vector<3x4xf32>, vector<4x16xf32>, vector<3x16xf32> -> vector<3x16xf32>
    %c0_95 = arith.constant 0 : index
    %c0_96 = arith.constant 0 : index
    %c2_97 = arith.constant 2 : index
    %c0_98 = arith.constant 0 : index
    %204 = vector.load %arg3[%c0_95, %c0_96, %c2_97, %c0_98] : memref<1x8x8x8xf32, #tpu.memory_space<vmem>>, vector<1x8x1x8xf32>
    %205 = vector.shape_cast %204 : vector<1x8x1x8xf32> to vector<8x8xf32>
    %cst_99 = arith.constant dense<0.000000e+00> : vector<4x8xf32>
    %206 = tpu.matmul %2, %205, %cst_99 {dimension_numbers = #tpu.dot_dimension_numbers<[1], [0], [0], [1], [0, 0, 1, 1], [], []>} : vector<4x8xf32>, vector<8x8xf32>, vector<4x8xf32> -> vector<4x8xf32>
    %207 = vector.broadcast %3 : vector<4x1xf32> to vector<4x8xf32>
    %208 = arith.addf %206, %207 : vector<4x8xf32>
    %cst_100 = arith.constant 0.000000e+00 : f32
    %209 = vector.broadcast %cst_100 : f32 to vector<4x8xf32>
    %210 = arith.maximumf %208, %209 : vector<4x8xf32>
    %cst_101 = arith.constant dense<0.000000e+00> : vector<4x16xf32>
    %211 = tpu.matmul %210, %10, %cst_101 {dimension_numbers = #tpu.dot_dimension_numbers<[1], [0], [0], [1], [0, 0, 1, 1], [], []>} : vector<4x8xf32>, vector<8x16xf32>, vector<4x16xf32> -> vector<4x16xf32>
    %cst_102 = arith.constant dense<0.000000e+00> : vector<3x16xf32>
    %212 = tpu.matmul %7, %211, %cst_102 {dimension_numbers = #tpu.dot_dimension_numbers<[1], [0], [0], [1], [0, 0, 1, 1], [], []>} : vector<3x4xf32>, vector<4x16xf32>, vector<3x16xf32> -> vector<3x16xf32>
    %c0_103 = arith.constant 0 : index
    %c0_104 = arith.constant 0 : index
    %c4 = arith.constant 4 : index
    %c0_105 = arith.constant 0 : index
    %213 = vector.load %arg2[%c0_103, %c0_104, %c4, %c0_105] : memref<1x4x16x16xf32, #tpu.memory_space<vmem>>, vector<1x4x1x16xf32>
    %214 = vector.shape_cast %213 : vector<1x4x1x16xf32> to vector<4x16xf32>
    %cst_106 = arith.constant dense<0.000000e+00> : vector<4x16xf32>
    %215 = tpu.matmul %0, %214, %cst_106 {dimension_numbers = #tpu.dot_dimension_numbers<[1], [0], [0], [1], [0, 0, 1, 1], [], []>} : vector<4x4xf32>, vector<4x16xf32>, vector<4x16xf32> -> vector<4x16xf32>
    %216 = vector.broadcast %1 : vector<4x1xf32> to vector<4x16xf32>
    %217 = arith.addf %215, %216 : vector<4x16xf32>
    %cst_107 = arith.constant 0.000000e+00 : f32
    %218 = vector.broadcast %cst_107 : f32 to vector<4x16xf32>
    %219 = arith.maximumf %217, %218 : vector<4x16xf32>
    %cst_108 = arith.constant dense<0.000000e+00> : vector<3x16xf32>
    %220 = tpu.matmul %6, %219, %cst_108 {dimension_numbers = #tpu.dot_dimension_numbers<[1], [0], [0], [1], [0, 0, 1, 1], [], []>} : vector<3x4xf32>, vector<4x16xf32>, vector<3x16xf32> -> vector<3x16xf32>
    %221 = arith.addf %220, %212 : vector<3x16xf32>
    %222 = arith.addf %221, %203 : vector<3x16xf32>
    %223 = vector.broadcast %9 : vector<3x1xf32> to vector<3x16xf32>
    %224 = arith.addf %222, %223 : vector<3x16xf32>
    %225 = vector.extract_strided_slice %224 {offsets = [0, 0], sizes = [1, 16], strides = [1, 1]} : vector<3x16xf32> to vector<1x16xf32>
    %226 = vector.extract_strided_slice %224 {offsets = [1, 0], sizes = [1, 16], strides = [1, 1]} : vector<3x16xf32> to vector<1x16xf32>
    %227 = vector.extract_strided_slice %224 {offsets = [2, 0], sizes = [1, 16], strides = [1, 1]} : vector<3x16xf32> to vector<1x16xf32>
    %228 = arith.maximumf %226, %227 : vector<1x16xf32>
    %229 = arith.maximumf %225, %228 : vector<1x16xf32>
    %230 = arith.subf %225, %229 : vector<1x16xf32>
    %231 = math.exp %230 : vector<1x16xf32>
    %232 = arith.subf %226, %229 : vector<1x16xf32>
    %233 = math.exp %232 : vector<1x16xf32>
    %234 = arith.subf %227, %229 : vector<1x16xf32>
    %235 = math.exp %234 : vector<1x16xf32>
    %236 = arith.addf %231, %233 : vector<1x16xf32>
    %237 = arith.addf %236, %235 : vector<1x16xf32>
    %238 = tpu.reciprocal %237 : vector<1x16xf32> -> vector<1x16xf32>
    %239 = vector.broadcast %231 : vector<1x16xf32> to vector<4x16xf32>
    %240 = arith.mulf %239, %219 : vector<4x16xf32>
    %241 = vector.broadcast %233 : vector<1x16xf32> to vector<4x16xf32>
    %242 = arith.mulf %241, %211 : vector<4x16xf32>
    %243 = arith.addf %240, %242 : vector<4x16xf32>
    %244 = vector.broadcast %235 : vector<1x16xf32> to vector<4x16xf32>
    %245 = arith.mulf %244, %202 : vector<4x16xf32>
    %246 = arith.addf %243, %245 : vector<4x16xf32>
    %247 = vector.broadcast %238 : vector<1x16xf32> to vector<4x16xf32>
    %248 = arith.mulf %246, %247 : vector<4x16xf32>
    %c0_109 = arith.constant 0 : index
    %c0_110 = arith.constant 0 : index
    %c4_111 = arith.constant 4 : index
    %c0_112 = arith.constant 0 : index
    %249 = vector.load %arg17[%c0_109, %c0_110, %c4_111, %c0_112] : memref<1x4x16x16xf32, #tpu.memory_space<vmem>>, vector<1x4x1x16xf32>
    %250 = vector.shape_cast %249 : vector<1x4x1x16xf32> to vector<4x16xf32>
    %251 = vector.shape_cast %248 : vector<4x16xf32> to vector<1x4x1x16xf32>
    tpu.vector_store %arg17[%c0_109, %c0_110, %c4_111, %c0_112], %251 {strides = array<i32>} : memref<1x4x16x16xf32, #tpu.memory_space<vmem>>, vector<1x4x1x16xf32>,
    %c0_113 = arith.constant 0 : index
    %c0_114 = arith.constant 0 : index
    %c5 = arith.constant 5 : index
    %c0_115 = arith.constant 0 : index
    %252 = vector.load %arg2[%c0_113, %c0_114, %c5, %c0_115] : memref<1x4x16x16xf32, #tpu.memory_space<vmem>>, vector<1x4x1x16xf32>
    %253 = vector.shape_cast %252 : vector<1x4x1x16xf32> to vector<4x16xf32>
    %cst_116 = arith.constant dense<0.000000e+00> : vector<4x16xf32>
    %254 = tpu.matmul %0, %253, %cst_116 {dimension_numbers = #tpu.dot_dimension_numbers<[1], [0], [0], [1], [0, 0, 1, 1], [], []>} : vector<4x4xf32>, vector<4x16xf32>, vector<4x16xf32> -> vector<4x16xf32>
    %255 = vector.broadcast %1 : vector<4x1xf32> to vector<4x16xf32>
    %256 = arith.addf %254, %255 : vector<4x16xf32>
    %cst_117 = arith.constant 0.000000e+00 : f32
    %257 = vector.broadcast %cst_117 : f32 to vector<4x16xf32>
    %258 = arith.maximumf %256, %257 : vector<4x16xf32>
    %cst_118 = arith.constant dense<0.000000e+00> : vector<3x16xf32>
    %259 = tpu.matmul %6, %258, %cst_118 {dimension_numbers = #tpu.dot_dimension_numbers<[1], [0], [0], [1], [0, 0, 1, 1], [], []>} : vector<3x4xf32>, vector<4x16xf32>, vector<3x16xf32> -> vector<3x16xf32>
    %260 = arith.addf %259, %212 : vector<3x16xf32>
    %261 = arith.addf %260, %203 : vector<3x16xf32>
    %262 = vector.broadcast %9 : vector<3x1xf32> to vector<3x16xf32>
    %263 = arith.addf %261, %262 : vector<3x16xf32>
    %264 = vector.extract_strided_slice %263 {offsets = [0, 0], sizes = [1, 16], strides = [1, 1]} : vector<3x16xf32> to vector<1x16xf32>
    %265 = vector.extract_strided_slice %263 {offsets = [1, 0], sizes = [1, 16], strides = [1, 1]} : vector<3x16xf32> to vector<1x16xf32>
    %266 = vector.extract_strided_slice %263 {offsets = [2, 0], sizes = [1, 16], strides = [1, 1]} : vector<3x16xf32> to vector<1x16xf32>
    %267 = arith.maximumf %265, %266 : vector<1x16xf32>
    %268 = arith.maximumf %264, %267 : vector<1x16xf32>
    %269 = arith.subf %264, %268 : vector<1x16xf32>
    %270 = math.exp %269 : vector<1x16xf32>
    %271 = arith.subf %265, %268 : vector<1x16xf32>
    %272 = math.exp %271 : vector<1x16xf32>
    %273 = arith.subf %266, %268 : vector<1x16xf32>
    %274 = math.exp %273 : vector<1x16xf32>
    %275 = arith.addf %270, %272 : vector<1x16xf32>
    %276 = arith.addf %275, %274 : vector<1x16xf32>
    %277 = tpu.reciprocal %276 : vector<1x16xf32> -> vector<1x16xf32>
    %278 = vector.broadcast %270 : vector<1x16xf32> to vector<4x16xf32>
    %279 = arith.mulf %278, %258 : vector<4x16xf32>
    %280 = vector.broadcast %272 : vector<1x16xf32> to vector<4x16xf32>
    %281 = arith.mulf %280, %211 : vector<4x16xf32>
    %282 = arith.addf %279, %281 : vector<4x16xf32>
    %283 = vector.broadcast %274 : vector<1x16xf32> to vector<4x16xf32>
    %284 = arith.mulf %283, %202 : vector<4x16xf32>
    %285 = arith.addf %282, %284 : vector<4x16xf32>
    %286 = vector.broadcast %277 : vector<1x16xf32> to vector<4x16xf32>
    %287 = arith.mulf %285, %286 : vector<4x16xf32>
    %c0_119 = arith.constant 0 : index
    %c0_120 = arith.constant 0 : index
    %c5_121 = arith.constant 5 : index
    %c0_122 = arith.constant 0 : index
    %288 = vector.load %arg17[%c0_119, %c0_120, %c5_121, %c0_122] : memref<1x4x16x16xf32, #tpu.memory_space<vmem>>, vector<1x4x1x16xf32>
    %289 = vector.shape_cast %288 : vector<1x4x1x16xf32> to vector<4x16xf32>
    %290 = vector.shape_cast %287 : vector<4x16xf32> to vector<1x4x1x16xf32>
    tpu.vector_store %arg17[%c0_119, %c0_120, %c5_121, %c0_122], %290 {strides = array<i32>} : memref<1x4x16x16xf32, #tpu.memory_space<vmem>>, vector<1x4x1x16xf32>,
    %c0_123 = arith.constant 0 : index
    %c0_124 = arith.constant 0 : index
    %c3_125 = arith.constant 3 : index
    %c0_126 = arith.constant 0 : index
    %291 = vector.load %arg3[%c0_123, %c0_124, %c3_125, %c0_126] : memref<1x8x8x8xf32, #tpu.memory_space<vmem>>, vector<1x8x1x8xf32>
    %292 = vector.shape_cast %291 : vector<1x8x1x8xf32> to vector<8x8xf32>
    %cst_127 = arith.constant dense<0.000000e+00> : vector<4x8xf32>
    %293 = tpu.matmul %2, %292, %cst_127 {dimension_numbers = #tpu.dot_dimension_numbers<[1], [0], [0], [1], [0, 0, 1, 1], [], []>} : vector<4x8xf32>, vector<8x8xf32>, vector<4x8xf32> -> vector<4x8xf32>
    %294 = vector.broadcast %3 : vector<4x1xf32> to vector<4x8xf32>
    %295 = arith.addf %293, %294 : vector<4x8xf32>
    %cst_128 = arith.constant 0.000000e+00 : f32
    %296 = vector.broadcast %cst_128 : f32 to vector<4x8xf32>
    %297 = arith.maximumf %295, %296 : vector<4x8xf32>
    %cst_129 = arith.constant dense<0.000000e+00> : vector<4x16xf32>
    %298 = tpu.matmul %297, %10, %cst_129 {dimension_numbers = #tpu.dot_dimension_numbers<[1], [0], [0], [1], [0, 0, 1, 1], [], []>} : vector<4x8xf32>, vector<8x16xf32>, vector<4x16xf32> -> vector<4x16xf32>
    %cst_130 = arith.constant dense<0.000000e+00> : vector<3x16xf32>
    %299 = tpu.matmul %7, %298, %cst_130 {dimension_numbers = #tpu.dot_dimension_numbers<[1], [0], [0], [1], [0, 0, 1, 1], [], []>} : vector<3x4xf32>, vector<4x16xf32>, vector<3x16xf32> -> vector<3x16xf32>
    %c0_131 = arith.constant 0 : index
    %c0_132 = arith.constant 0 : index
    %c6 = arith.constant 6 : index
    %c0_133 = arith.constant 0 : index
    %300 = vector.load %arg2[%c0_131, %c0_132, %c6, %c0_133] : memref<1x4x16x16xf32, #tpu.memory_space<vmem>>, vector<1x4x1x16xf32>
    %301 = vector.shape_cast %300 : vector<1x4x1x16xf32> to vector<4x16xf32>
    %cst_134 = arith.constant dense<0.000000e+00> : vector<4x16xf32>
    %302 = tpu.matmul %0, %301, %cst_134 {dimension_numbers = #tpu.dot_dimension_numbers<[1], [0], [0], [1], [0, 0, 1, 1], [], []>} : vector<4x4xf32>, vector<4x16xf32>, vector<4x16xf32> -> vector<4x16xf32>
    %303 = vector.broadcast %1 : vector<4x1xf32> to vector<4x16xf32>
    %304 = arith.addf %302, %303 : vector<4x16xf32>
    %cst_135 = arith.constant 0.000000e+00 : f32
    %305 = vector.broadcast %cst_135 : f32 to vector<4x16xf32>
    %306 = arith.maximumf %304, %305 : vector<4x16xf32>
    %cst_136 = arith.constant dense<0.000000e+00> : vector<3x16xf32>
    %307 = tpu.matmul %6, %306, %cst_136 {dimension_numbers = #tpu.dot_dimension_numbers<[1], [0], [0], [1], [0, 0, 1, 1], [], []>} : vector<3x4xf32>, vector<4x16xf32>, vector<3x16xf32> -> vector<3x16xf32>
    %308 = arith.addf %307, %299 : vector<3x16xf32>
    %309 = arith.addf %308, %203 : vector<3x16xf32>
    %310 = vector.broadcast %9 : vector<3x1xf32> to vector<3x16xf32>
    %311 = arith.addf %309, %310 : vector<3x16xf32>
    %312 = vector.extract_strided_slice %311 {offsets = [0, 0], sizes = [1, 16], strides = [1, 1]} : vector<3x16xf32> to vector<1x16xf32>
    %313 = vector.extract_strided_slice %311 {offsets = [1, 0], sizes = [1, 16], strides = [1, 1]} : vector<3x16xf32> to vector<1x16xf32>
    %314 = vector.extract_strided_slice %311 {offsets = [2, 0], sizes = [1, 16], strides = [1, 1]} : vector<3x16xf32> to vector<1x16xf32>
    %315 = arith.maximumf %313, %314 : vector<1x16xf32>
    %316 = arith.maximumf %312, %315 : vector<1x16xf32>
    %317 = arith.subf %312, %316 : vector<1x16xf32>
    %318 = math.exp %317 : vector<1x16xf32>
    %319 = arith.subf %313, %316 : vector<1x16xf32>
    %320 = math.exp %319 : vector<1x16xf32>
    %321 = arith.subf %314, %316 : vector<1x16xf32>
    %322 = math.exp %321 : vector<1x16xf32>
    %323 = arith.addf %318, %320 : vector<1x16xf32>
    %324 = arith.addf %323, %322 : vector<1x16xf32>
    %325 = tpu.reciprocal %324 : vector<1x16xf32> -> vector<1x16xf32>
    %326 = vector.broadcast %318 : vector<1x16xf32> to vector<4x16xf32>
    %327 = arith.mulf %326, %306 : vector<4x16xf32>
    %328 = vector.broadcast %320 : vector<1x16xf32> to vector<4x16xf32>
    %329 = arith.mulf %328, %298 : vector<4x16xf32>
    %330 = arith.addf %327, %329 : vector<4x16xf32>
    %331 = vector.broadcast %322 : vector<1x16xf32> to vector<4x16xf32>
    %332 = arith.mulf %331, %202 : vector<4x16xf32>
    %333 = arith.addf %330, %332 : vector<4x16xf32>
    %334 = vector.broadcast %325 : vector<1x16xf32> to vector<4x16xf32>
    %335 = arith.mulf %333, %334 : vector<4x16xf32>
    %c0_137 = arith.constant 0 : index
    %c0_138 = arith.constant 0 : index
    %c6_139 = arith.constant 6 : index
    %c0_140 = arith.constant 0 : index
    %336 = vector.load %arg17[%c0_137, %c0_138, %c6_139, %c0_140] : memref<1x4x16x16xf32, #tpu.memory_space<vmem>>, vector<1x4x1x16xf32>
    %337 = vector.shape_cast %336 : vector<1x4x1x16xf32> to vector<4x16xf32>
    %338 = vector.shape_cast %335 : vector<4x16xf32> to vector<1x4x1x16xf32>
    tpu.vector_store %arg17[%c0_137, %c0_138, %c6_139, %c0_140], %338 {strides = array<i32>} : memref<1x4x16x16xf32, #tpu.memory_space<vmem>>, vector<1x4x1x16xf32>,
    %c0_141 = arith.constant 0 : index
    %c0_142 = arith.constant 0 : index
    %c7 = arith.constant 7 : index
    %c0_143 = arith.constant 0 : index
    %339 = vector.load %arg2[%c0_141, %c0_142, %c7, %c0_143] : memref<1x4x16x16xf32, #tpu.memory_space<vmem>>, vector<1x4x1x16xf32>
    %340 = vector.shape_cast %339 : vector<1x4x1x16xf32> to vector<4x16xf32>
    %cst_144 = arith.constant dense<0.000000e+00> : vector<4x16xf32>
    %341 = tpu.matmul %0, %340, %cst_144 {dimension_numbers = #tpu.dot_dimension_numbers<[1], [0], [0], [1], [0, 0, 1, 1], [], []>} : vector<4x4xf32>, vector<4x16xf32>, vector<4x16xf32> -> vector<4x16xf32>
    %342 = vector.broadcast %1 : vector<4x1xf32> to vector<4x16xf32>
    %343 = arith.addf %341, %342 : vector<4x16xf32>
    %cst_145 = arith.constant 0.000000e+00 : f32
    %344 = vector.broadcast %cst_145 : f32 to vector<4x16xf32>
    %345 = arith.maximumf %343, %344 : vector<4x16xf32>
    %cst_146 = arith.constant dense<0.000000e+00> : vector<3x16xf32>
    %346 = tpu.matmul %6, %345, %cst_146 {dimension_numbers = #tpu.dot_dimension_numbers<[1], [0], [0], [1], [0, 0, 1, 1], [], []>} : vector<3x4xf32>, vector<4x16xf32>, vector<3x16xf32> -> vector<3x16xf32>
    %347 = arith.addf %346, %299 : vector<3x16xf32>
    %348 = arith.addf %347, %203 : vector<3x16xf32>
    %349 = vector.broadcast %9 : vector<3x1xf32> to vector<3x16xf32>
    %350 = arith.addf %348, %349 : vector<3x16xf32>
    %351 = vector.extract_strided_slice %350 {offsets = [0, 0], sizes = [1, 16], strides = [1, 1]} : vector<3x16xf32> to vector<1x16xf32>
    %352 = vector.extract_strided_slice %350 {offsets = [1, 0], sizes = [1, 16], strides = [1, 1]} : vector<3x16xf32> to vector<1x16xf32>
    %353 = vector.extract_strided_slice %350 {offsets = [2, 0], sizes = [1, 16], strides = [1, 1]} : vector<3x16xf32> to vector<1x16xf32>
    %354 = arith.maximumf %352, %353 : vector<1x16xf32>
    %355 = arith.maximumf %351, %354 : vector<1x16xf32>
    %356 = arith.subf %351, %355 : vector<1x16xf32>
    %357 = math.exp %356 : vector<1x16xf32>
    %358 = arith.subf %352, %355 : vector<1x16xf32>
    %359 = math.exp %358 : vector<1x16xf32>
    %360 = arith.subf %353, %355 : vector<1x16xf32>
    %361 = math.exp %360 : vector<1x16xf32>
    %362 = arith.addf %357, %359 : vector<1x16xf32>
    %363 = arith.addf %362, %361 : vector<1x16xf32>
    %364 = tpu.reciprocal %363 : vector<1x16xf32> -> vector<1x16xf32>
    %365 = vector.broadcast %357 : vector<1x16xf32> to vector<4x16xf32>
    %366 = arith.mulf %365, %345 : vector<4x16xf32>
    %367 = vector.broadcast %359 : vector<1x16xf32> to vector<4x16xf32>
    %368 = arith.mulf %367, %298 : vector<4x16xf32>
    %369 = arith.addf %366, %368 : vector<4x16xf32>
    %370 = vector.broadcast %361 : vector<1x16xf32> to vector<4x16xf32>
    %371 = arith.mulf %370, %202 : vector<4x16xf32>
    %372 = arith.addf %369, %371 : vector<4x16xf32>
    %373 = vector.broadcast %364 : vector<1x16xf32> to vector<4x16xf32>
    %374 = arith.mulf %372, %373 : vector<4x16xf32>
    %c0_147 = arith.constant 0 : index
    %c0_148 = arith.constant 0 : index
    %c7_149 = arith.constant 7 : index
    %c0_150 = arith.constant 0 : index
    %375 = vector.load %arg17[%c0_147, %c0_148, %c7_149, %c0_150] : memref<1x4x16x16xf32, #tpu.memory_space<vmem>>, vector<1x4x1x16xf32>
    %376 = vector.shape_cast %375 : vector<1x4x1x16xf32> to vector<4x16xf32>
    %377 = vector.shape_cast %374 : vector<4x16xf32> to vector<1x4x1x16xf32>
    tpu.vector_store %arg17[%c0_147, %c0_148, %c7_149, %c0_150], %377 {strides = array<i32>} : memref<1x4x16x16xf32, #tpu.memory_space<vmem>>, vector<1x4x1x16xf32>,
    %c0_151 = arith.constant 0 : index
    %c0_152 = arith.constant 0 : index
    %c2_153 = arith.constant 2 : index
    %c0_154 = arith.constant 0 : index
    %378 = vector.load %arg4[%c0_151, %c0_152, %c2_153, %c0_154] : memref<1x16x4x4xf32, #tpu.memory_space<vmem>>, vector<1x16x1x4xf32>
    %379 = vector.shape_cast %378 : vector<1x16x1x4xf32> to vector<16x4xf32>
    %cst_155 = arith.constant dense<0.000000e+00> : vector<4x4xf32>
    %380 = tpu.matmul %4, %379, %cst_155 {dimension_numbers = #tpu.dot_dimension_numbers<[1], [0], [0], [1], [0, 0, 1, 1], [], []>} : vector<4x16xf32>, vector<16x4xf32>, vector<4x4xf32> -> vector<4x4xf32>
    %381 = vector.broadcast %5 : vector<4x1xf32> to vector<4x4xf32>
    %382 = arith.addf %380, %381 : vector<4x4xf32>
    %cst_156 = arith.constant 0.000000e+00 : f32
    %383 = vector.broadcast %cst_156 : f32 to vector<4x4xf32>
    %384 = arith.maximumf %382, %383 : vector<4x4xf32>
    %cst_157 = arith.constant dense<0.000000e+00> : vector<4x16xf32>
    %385 = tpu.matmul %384, %11, %cst_157 {dimension_numbers = #tpu.dot_dimension_numbers<[1], [0], [0], [1], [0, 0, 1, 1], [], []>} : vector<4x4xf32>, vector<4x16xf32>, vector<4x16xf32> -> vector<4x16xf32>
    %cst_158 = arith.constant dense<0.000000e+00> : vector<3x16xf32>
    %386 = tpu.matmul %8, %385, %cst_158 {dimension_numbers = #tpu.dot_dimension_numbers<[1], [0], [0], [1], [0, 0, 1, 1], [], []>} : vector<3x4xf32>, vector<4x16xf32>, vector<3x16xf32> -> vector<3x16xf32>
    %c0_159 = arith.constant 0 : index
    %c0_160 = arith.constant 0 : index
    %c4_161 = arith.constant 4 : index
    %c0_162 = arith.constant 0 : index
    %387 = vector.load %arg3[%c0_159, %c0_160, %c4_161, %c0_162] : memref<1x8x8x8xf32, #tpu.memory_space<vmem>>, vector<1x8x1x8xf32>
    %388 = vector.shape_cast %387 : vector<1x8x1x8xf32> to vector<8x8xf32>
    %cst_163 = arith.constant dense<0.000000e+00> : vector<4x8xf32>
    %389 = tpu.matmul %2, %388, %cst_163 {dimension_numbers = #tpu.dot_dimension_numbers<[1], [0], [0], [1], [0, 0, 1, 1], [], []>} : vector<4x8xf32>, vector<8x8xf32>, vector<4x8xf32> -> vector<4x8xf32>
    %390 = vector.broadcast %3 : vector<4x1xf32> to vector<4x8xf32>
    %391 = arith.addf %389, %390 : vector<4x8xf32>
    %cst_164 = arith.constant 0.000000e+00 : f32
    %392 = vector.broadcast %cst_164 : f32 to vector<4x8xf32>
    %393 = arith.maximumf %391, %392 : vector<4x8xf32>
    %cst_165 = arith.constant dense<0.000000e+00> : vector<4x16xf32>
    %394 = tpu.matmul %393, %10, %cst_165 {dimension_numbers = #tpu.dot_dimension_numbers<[1], [0], [0], [1], [0, 0, 1, 1], [], []>} : vector<4x8xf32>, vector<8x16xf32>, vector<4x16xf32> -> vector<4x16xf32>
    %cst_166 = arith.constant dense<0.000000e+00> : vector<3x16xf32>
    %395 = tpu.matmul %7, %394, %cst_166 {dimension_numbers = #tpu.dot_dimension_numbers<[1], [0], [0], [1], [0, 0, 1, 1], [], []>} : vector<3x4xf32>, vector<4x16xf32>, vector<3x16xf32> -> vector<3x16xf32>
    %c0_167 = arith.constant 0 : index
    %c0_168 = arith.constant 0 : index
    %c8 = arith.constant 8 : index
    %c0_169 = arith.constant 0 : index
    %396 = vector.load %arg2[%c0_167, %c0_168, %c8, %c0_169] : memref<1x4x16x16xf32, #tpu.memory_space<vmem>>, vector<1x4x1x16xf32>
    %397 = vector.shape_cast %396 : vector<1x4x1x16xf32> to vector<4x16xf32>
    %cst_170 = arith.constant dense<0.000000e+00> : vector<4x16xf32>
    %398 = tpu.matmul %0, %397, %cst_170 {dimension_numbers = #tpu.dot_dimension_numbers<[1], [0], [0], [1], [0, 0, 1, 1], [], []>} : vector<4x4xf32>, vector<4x16xf32>, vector<4x16xf32> -> vector<4x16xf32>
    %399 = vector.broadcast %1 : vector<4x1xf32> to vector<4x16xf32>
    %400 = arith.addf %398, %399 : vector<4x16xf32>
    %cst_171 = arith.constant 0.000000e+00 : f32
    %401 = vector.broadcast %cst_171 : f32 to vector<4x16xf32>
    %402 = arith.maximumf %400, %401 : vector<4x16xf32>
    %cst_172 = arith.constant dense<0.000000e+00> : vector<3x16xf32>
    %403 = tpu.matmul %6, %402, %cst_172 {dimension_numbers = #tpu.dot_dimension_numbers<[1], [0], [0], [1], [0, 0, 1, 1], [], []>} : vector<3x4xf32>, vector<4x16xf32>, vector<3x16xf32> -> vector<3x16xf32>
    %404 = arith.addf %403, %395 : vector<3x16xf32>
    %405 = arith.addf %404, %386 : vector<3x16xf32>
    %406 = vector.broadcast %9 : vector<3x1xf32> to vector<3x16xf32>
    %407 = arith.addf %405, %406 : vector<3x16xf32>
    %408 = vector.extract_strided_slice %407 {offsets = [0, 0], sizes = [1, 16], strides = [1, 1]} : vector<3x16xf32> to vector<1x16xf32>
    %409 = vector.extract_strided_slice %407 {offsets = [1, 0], sizes = [1, 16], strides = [1, 1]} : vector<3x16xf32> to vector<1x16xf32>
    %410 = vector.extract_strided_slice %407 {offsets = [2, 0], sizes = [1, 16], strides = [1, 1]} : vector<3x16xf32> to vector<1x16xf32>
    %411 = arith.maximumf %409, %410 : vector<1x16xf32>
    %412 = arith.maximumf %408, %411 : vector<1x16xf32>
    %413 = arith.subf %408, %412 : vector<1x16xf32>
    %414 = math.exp %413 : vector<1x16xf32>
    %415 = arith.subf %409, %412 : vector<1x16xf32>
    %416 = math.exp %415 : vector<1x16xf32>
    %417 = arith.subf %410, %412 : vector<1x16xf32>
    %418 = math.exp %417 : vector<1x16xf32>
    %419 = arith.addf %414, %416 : vector<1x16xf32>
    %420 = arith.addf %419, %418 : vector<1x16xf32>
    %421 = tpu.reciprocal %420 : vector<1x16xf32> -> vector<1x16xf32>
    %422 = vector.broadcast %414 : vector<1x16xf32> to vector<4x16xf32>
    %423 = arith.mulf %422, %402 : vector<4x16xf32>
    %424 = vector.broadcast %416 : vector<1x16xf32> to vector<4x16xf32>
    %425 = arith.mulf %424, %394 : vector<4x16xf32>
    %426 = arith.addf %423, %425 : vector<4x16xf32>
    %427 = vector.broadcast %418 : vector<1x16xf32> to vector<4x16xf32>
    %428 = arith.mulf %427, %385 : vector<4x16xf32>
    %429 = arith.addf %426, %428 : vector<4x16xf32>
    %430 = vector.broadcast %421 : vector<1x16xf32> to vector<4x16xf32>
    %431 = arith.mulf %429, %430 : vector<4x16xf32>
    %c0_173 = arith.constant 0 : index
    %c0_174 = arith.constant 0 : index
    %c8_175 = arith.constant 8 : index
    %c0_176 = arith.constant 0 : index
    %432 = vector.load %arg17[%c0_173, %c0_174, %c8_175, %c0_176] : memref<1x4x16x16xf32, #tpu.memory_space<vmem>>, vector<1x4x1x16xf32>
    %433 = vector.shape_cast %432 : vector<1x4x1x16xf32> to vector<4x16xf32>
    %434 = vector.shape_cast %431 : vector<4x16xf32> to vector<1x4x1x16xf32>
    tpu.vector_store %arg17[%c0_173, %c0_174, %c8_175, %c0_176], %434 {strides = array<i32>} : memref<1x4x16x16xf32, #tpu.memory_space<vmem>>, vector<1x4x1x16xf32>,
    %c0_177 = arith.constant 0 : index
    %c0_178 = arith.constant 0 : index
    %c9 = arith.constant 9 : index
    %c0_179 = arith.constant 0 : index
    %435 = vector.load %arg2[%c0_177, %c0_178, %c9, %c0_179] : memref<1x4x16x16xf32, #tpu.memory_space<vmem>>, vector<1x4x1x16xf32>
    %436 = vector.shape_cast %435 : vector<1x4x1x16xf32> to vector<4x16xf32>
    %cst_180 = arith.constant dense<0.000000e+00> : vector<4x16xf32>
    %437 = tpu.matmul %0, %436, %cst_180 {dimension_numbers = #tpu.dot_dimension_numbers<[1], [0], [0], [1], [0, 0, 1, 1], [], []>} : vector<4x4xf32>, vector<4x16xf32>, vector<4x16xf32> -> vector<4x16xf32>
    %438 = vector.broadcast %1 : vector<4x1xf32> to vector<4x16xf32>
    %439 = arith.addf %437, %438 : vector<4x16xf32>
    %cst_181 = arith.constant 0.000000e+00 : f32
    %440 = vector.broadcast %cst_181 : f32 to vector<4x16xf32>
    %441 = arith.maximumf %439, %440 : vector<4x16xf32>
    %cst_182 = arith.constant dense<0.000000e+00> : vector<3x16xf32>
    %442 = tpu.matmul %6, %441, %cst_182 {dimension_numbers = #tpu.dot_dimension_numbers<[1], [0], [0], [1], [0, 0, 1, 1], [], []>} : vector<3x4xf32>, vector<4x16xf32>, vector<3x16xf32> -> vector<3x16xf32>
    %443 = arith.addf %442, %395 : vector<3x16xf32>
    %444 = arith.addf %443, %386 : vector<3x16xf32>
    %445 = vector.broadcast %9 : vector<3x1xf32> to vector<3x16xf32>
    %446 = arith.addf %444, %445 : vector<3x16xf32>
    %447 = vector.extract_strided_slice %446 {offsets = [0, 0], sizes = [1, 16], strides = [1, 1]} : vector<3x16xf32> to vector<1x16xf32>
    %448 = vector.extract_strided_slice %446 {offsets = [1, 0], sizes = [1, 16], strides = [1, 1]} : vector<3x16xf32> to vector<1x16xf32>
    %449 = vector.extract_strided_slice %446 {offsets = [2, 0], sizes = [1, 16], strides = [1, 1]} : vector<3x16xf32> to vector<1x16xf32>
    %450 = arith.maximumf %448, %449 : vector<1x16xf32>
    %451 = arith.maximumf %447, %450 : vector<1x16xf32>
    %452 = arith.subf %447, %451 : vector<1x16xf32>
    %453 = math.exp %452 : vector<1x16xf32>
    %454 = arith.subf %448, %451 : vector<1x16xf32>
    %455 = math.exp %454 : vector<1x16xf32>
    %456 = arith.subf %449, %451 : vector<1x16xf32>
    %457 = math.exp %456 : vector<1x16xf32>
    %458 = arith.addf %453, %455 : vector<1x16xf32>
    %459 = arith.addf %458, %457 : vector<1x16xf32>
    %460 = tpu.reciprocal %459 : vector<1x16xf32> -> vector<1x16xf32>
    %461 = vector.broadcast %453 : vector<1x16xf32> to vector<4x16xf32>
    %462 = arith.mulf %461, %441 : vector<4x16xf32>
    %463 = vector.broadcast %455 : vector<1x16xf32> to vector<4x16xf32>
    %464 = arith.mulf %463, %394 : vector<4x16xf32>
    %465 = arith.addf %462, %464 : vector<4x16xf32>
    %466 = vector.broadcast %457 : vector<1x16xf32> to vector<4x16xf32>
    %467 = arith.mulf %466, %385 : vector<4x16xf32>
    %468 = arith.addf %465, %467 : vector<4x16xf32>
    %469 = vector.broadcast %460 : vector<1x16xf32> to vector<4x16xf32>
    %470 = arith.mulf %468, %469 : vector<4x16xf32>
    %c0_183 = arith.constant 0 : index
    %c0_184 = arith.constant 0 : index
    %c9_185 = arith.constant 9 : index
    %c0_186 = arith.constant 0 : index
    %471 = vector.load %arg17[%c0_183, %c0_184, %c9_185, %c0_186] : memref<1x4x16x16xf32, #tpu.memory_space<vmem>>, vector<1x4x1x16xf32>
    %472 = vector.shape_cast %471 : vector<1x4x1x16xf32> to vector<4x16xf32>
    %473 = vector.shape_cast %470 : vector<4x16xf32> to vector<1x4x1x16xf32>
    tpu.vector_store %arg17[%c0_183, %c0_184, %c9_185, %c0_186], %473 {strides = array<i32>} : memref<1x4x16x16xf32, #tpu.memory_space<vmem>>, vector<1x4x1x16xf32>,
    %c0_187 = arith.constant 0 : index
    %c0_188 = arith.constant 0 : index
    %c5_189 = arith.constant 5 : index
    %c0_190 = arith.constant 0 : index
    %474 = vector.load %arg3[%c0_187, %c0_188, %c5_189, %c0_190] : memref<1x8x8x8xf32, #tpu.memory_space<vmem>>, vector<1x8x1x8xf32>
    %475 = vector.shape_cast %474 : vector<1x8x1x8xf32> to vector<8x8xf32>
    %cst_191 = arith.constant dense<0.000000e+00> : vector<4x8xf32>
    %476 = tpu.matmul %2, %475, %cst_191 {dimension_numbers = #tpu.dot_dimension_numbers<[1], [0], [0], [1], [0, 0, 1, 1], [], []>} : vector<4x8xf32>, vector<8x8xf32>, vector<4x8xf32> -> vector<4x8xf32>
    %477 = vector.broadcast %3 : vector<4x1xf32> to vector<4x8xf32>
    %478 = arith.addf %476, %477 : vector<4x8xf32>
    %cst_192 = arith.constant 0.000000e+00 : f32
    %479 = vector.broadcast %cst_192 : f32 to vector<4x8xf32>
    %480 = arith.maximumf %478, %479 : vector<4x8xf32>
    %cst_193 = arith.constant dense<0.000000e+00> : vector<4x16xf32>
    %481 = tpu.matmul %480, %10, %cst_193 {dimension_numbers = #tpu.dot_dimension_numbers<[1], [0], [0], [1], [0, 0, 1, 1], [], []>} : vector<4x8xf32>, vector<8x16xf32>, vector<4x16xf32> -> vector<4x16xf32>
    %cst_194 = arith.constant dense<0.000000e+00> : vector<3x16xf32>
    %482 = tpu.matmul %7, %481, %cst_194 {dimension_numbers = #tpu.dot_dimension_numbers<[1], [0], [0], [1], [0, 0, 1, 1], [], []>} : vector<3x4xf32>, vector<4x16xf32>, vector<3x16xf32> -> vector<3x16xf32>
    %c0_195 = arith.constant 0 : index
    %c0_196 = arith.constant 0 : index
    %c10 = arith.constant 10 : index
    %c0_197 = arith.constant 0 : index
    %483 = vector.load %arg2[%c0_195, %c0_196, %c10, %c0_197] : memref<1x4x16x16xf32, #tpu.memory_space<vmem>>, vector<1x4x1x16xf32>
    %484 = vector.shape_cast %483 : vector<1x4x1x16xf32> to vector<4x16xf32>
    %cst_198 = arith.constant dense<0.000000e+00> : vector<4x16xf32>
    %485 = tpu.matmul %0, %484, %cst_198 {dimension_numbers = #tpu.dot_dimension_numbers<[1], [0], [0], [1], [0, 0, 1, 1], [], []>} : vector<4x4xf32>, vector<4x16xf32>, vector<4x16xf32> -> vector<4x16xf32>
    %486 = vector.broadcast %1 : vector<4x1xf32> to vector<4x16xf32>
    %487 = arith.addf %485, %486 : vector<4x16xf32>
    %cst_199 = arith.constant 0.000000e+00 : f32
    %488 = vector.broadcast %cst_199 : f32 to vector<4x16xf32>
    %489 = arith.maximumf %487, %488 : vector<4x16xf32>
    %cst_200 = arith.constant dense<0.000000e+00> : vector<3x16xf32>
    %490 = tpu.matmul %6, %489, %cst_200 {dimension_numbers = #tpu.dot_dimension_numbers<[1], [0], [0], [1], [0, 0, 1, 1], [], []>} : vector<3x4xf32>, vector<4x16xf32>, vector<3x16xf32> -> vector<3x16xf32>
    %491 = arith.addf %490, %482 : vector<3x16xf32>
    %492 = arith.addf %491, %386 : vector<3x16xf32>
    %493 = vector.broadcast %9 : vector<3x1xf32> to vector<3x16xf32>
    %494 = arith.addf %492, %493 : vector<3x16xf32>
    %495 = vector.extract_strided_slice %494 {offsets = [0, 0], sizes = [1, 16], strides = [1, 1]} : vector<3x16xf32> to vector<1x16xf32>
    %496 = vector.extract_strided_slice %494 {offsets = [1, 0], sizes = [1, 16], strides = [1, 1]} : vector<3x16xf32> to vector<1x16xf32>
    %497 = vector.extract_strided_slice %494 {offsets = [2, 0], sizes = [1, 16], strides = [1, 1]} : vector<3x16xf32> to vector<1x16xf32>
    %498 = arith.maximumf %496, %497 : vector<1x16xf32>
    %499 = arith.maximumf %495, %498 : vector<1x16xf32>
    %500 = arith.subf %495, %499 : vector<1x16xf32>
    %501 = math.exp %500 : vector<1x16xf32>
    %502 = arith.subf %496, %499 : vector<1x16xf32>
    %503 = math.exp %502 : vector<1x16xf32>
    %504 = arith.subf %497, %499 : vector<1x16xf32>
    %505 = math.exp %504 : vector<1x16xf32>
    %506 = arith.addf %501, %503 : vector<1x16xf32>
    %507 = arith.addf %506, %505 : vector<1x16xf32>
    %508 = tpu.reciprocal %507 : vector<1x16xf32> -> vector<1x16xf32>
    %509 = vector.broadcast %501 : vector<1x16xf32> to vector<4x16xf32>
    %510 = arith.mulf %509, %489 : vector<4x16xf32>
    %511 = vector.broadcast %503 : vector<1x16xf32> to vector<4x16xf32>
    %512 = arith.mulf %511, %481 : vector<4x16xf32>
    %513 = arith.addf %510, %512 : vector<4x16xf32>
    %514 = vector.broadcast %505 : vector<1x16xf32> to vector<4x16xf32>
    %515 = arith.mulf %514, %385 : vector<4x16xf32>
    %516 = arith.addf %513, %515 : vector<4x16xf32>
    %517 = vector.broadcast %508 : vector<1x16xf32> to vector<4x16xf32>
    %518 = arith.mulf %516, %517 : vector<4x16xf32>
    %c0_201 = arith.constant 0 : index
    %c0_202 = arith.constant 0 : index
    %c10_203 = arith.constant 10 : index
    %c0_204 = arith.constant 0 : index
    %519 = vector.load %arg17[%c0_201, %c0_202, %c10_203, %c0_204] : memref<1x4x16x16xf32, #tpu.memory_space<vmem>>, vector<1x4x1x16xf32>
    %520 = vector.shape_cast %519 : vector<1x4x1x16xf32> to vector<4x16xf32>
    %521 = vector.shape_cast %518 : vector<4x16xf32> to vector<1x4x1x16xf32>
    tpu.vector_store %arg17[%c0_201, %c0_202, %c10_203, %c0_204], %521 {strides = array<i32>} : memref<1x4x16x16xf32, #tpu.memory_space<vmem>>, vector<1x4x1x16xf32>,
    %c0_205 = arith.constant 0 : index
    %c0_206 = arith.constant 0 : index
    %c11 = arith.constant 11 : index
    %c0_207 = arith.constant 0 : index
    %522 = vector.load %arg2[%c0_205, %c0_206, %c11, %c0_207] : memref<1x4x16x16xf32, #tpu.memory_space<vmem>>, vector<1x4x1x16xf32>
    %523 = vector.shape_cast %522 : vector<1x4x1x16xf32> to vector<4x16xf32>
    %cst_208 = arith.constant dense<0.000000e+00> : vector<4x16xf32>
    %524 = tpu.matmul %0, %523, %cst_208 {dimension_numbers = #tpu.dot_dimension_numbers<[1], [0], [0], [1], [0, 0, 1, 1], [], []>} : vector<4x4xf32>, vector<4x16xf32>, vector<4x16xf32> -> vector<4x16xf32>
    %525 = vector.broadcast %1 : vector<4x1xf32> to vector<4x16xf32>
    %526 = arith.addf %524, %525 : vector<4x16xf32>
    %cst_209 = arith.constant 0.000000e+00 : f32
    %527 = vector.broadcast %cst_209 : f32 to vector<4x16xf32>
    %528 = arith.maximumf %526, %527 : vector<4x16xf32>
    %cst_210 = arith.constant dense<0.000000e+00> : vector<3x16xf32>
    %529 = tpu.matmul %6, %528, %cst_210 {dimension_numbers = #tpu.dot_dimension_numbers<[1], [0], [0], [1], [0, 0, 1, 1], [], []>} : vector<3x4xf32>, vector<4x16xf32>, vector<3x16xf32> -> vector<3x16xf32>
    %530 = arith.addf %529, %482 : vector<3x16xf32>
    %531 = arith.addf %530, %386 : vector<3x16xf32>
    %532 = vector.broadcast %9 : vector<3x1xf32> to vector<3x16xf32>
    %533 = arith.addf %531, %532 : vector<3x16xf32>
    %534 = vector.extract_strided_slice %533 {offsets = [0, 0], sizes = [1, 16], strides = [1, 1]} : vector<3x16xf32> to vector<1x16xf32>
    %535 = vector.extract_strided_slice %533 {offsets = [1, 0], sizes = [1, 16], strides = [1, 1]} : vector<3x16xf32> to vector<1x16xf32>
    %536 = vector.extract_strided_slice %533 {offsets = [2, 0], sizes = [1, 16], strides = [1, 1]} : vector<3x16xf32> to vector<1x16xf32>
    %537 = arith.maximumf %535, %536 : vector<1x16xf32>
    %538 = arith.maximumf %534, %537 : vector<1x16xf32>
    %539 = arith.subf %534, %538 : vector<1x16xf32>
    %540 = math.exp %539 : vector<1x16xf32>
    %541 = arith.subf %535, %538 : vector<1x16xf32>
    %542 = math.exp %541 : vector<1x16xf32>
    %543 = arith.subf %536, %538 : vector<1x16xf32>
    %544 = math.exp %543 : vector<1x16xf32>
    %545 = arith.addf %540, %542 : vector<1x16xf32>
    %546 = arith.addf %545, %544 : vector<1x16xf32>
    %547 = tpu.reciprocal %546 : vector<1x16xf32> -> vector<1x16xf32>
    %548 = vector.broadcast %540 : vector<1x16xf32> to vector<4x16xf32>
    %549 = arith.mulf %548, %528 : vector<4x16xf32>
    %550 = vector.broadcast %542 : vector<1x16xf32> to vector<4x16xf32>
    %551 = arith.mulf %550, %481 : vector<4x16xf32>
    %552 = arith.addf %549, %551 : vector<4x16xf32>
    %553 = vector.broadcast %544 : vector<1x16xf32> to vector<4x16xf32>
    %554 = arith.mulf %553, %385 : vector<4x16xf32>
    %555 = arith.addf %552, %554 : vector<4x16xf32>
    %556 = vector.broadcast %547 : vector<1x16xf32> to vector<4x16xf32>
    %557 = arith.mulf %555, %556 : vector<4x16xf32>
    %c0_211 = arith.constant 0 : index
    %c0_212 = arith.constant 0 : index
    %c11_213 = arith.constant 11 : index
    %c0_214 = arith.constant 0 : index
    %558 = vector.load %arg17[%c0_211, %c0_212, %c11_213, %c0_214] : memref<1x4x16x16xf32, #tpu.memory_space<vmem>>, vector<1x4x1x16xf32>
    %559 = vector.shape_cast %558 : vector<1x4x1x16xf32> to vector<4x16xf32>
    %560 = vector.shape_cast %557 : vector<4x16xf32> to vector<1x4x1x16xf32>
    tpu.vector_store %arg17[%c0_211, %c0_212, %c11_213, %c0_214], %560 {strides = array<i32>} : memref<1x4x16x16xf32, #tpu.memory_space<vmem>>, vector<1x4x1x16xf32>,
    %c0_215 = arith.constant 0 : index
    %c0_216 = arith.constant 0 : index
    %c3_217 = arith.constant 3 : index
    %c0_218 = arith.constant 0 : index
    %561 = vector.load %arg4[%c0_215, %c0_216, %c3_217, %c0_218] : memref<1x16x4x4xf32, #tpu.memory_space<vmem>>, vector<1x16x1x4xf32>
    %562 = vector.shape_cast %561 : vector<1x16x1x4xf32> to vector<16x4xf32>
    %cst_219 = arith.constant dense<0.000000e+00> : vector<4x4xf32>
    %563 = tpu.matmul %4, %562, %cst_219 {dimension_numbers = #tpu.dot_dimension_numbers<[1], [0], [0], [1], [0, 0, 1, 1], [], []>} : vector<4x16xf32>, vector<16x4xf32>, vector<4x4xf32> -> vector<4x4xf32>
    %564 = vector.broadcast %5 : vector<4x1xf32> to vector<4x4xf32>
    %565 = arith.addf %563, %564 : vector<4x4xf32>
    %cst_220 = arith.constant 0.000000e+00 : f32
    %566 = vector.broadcast %cst_220 : f32 to vector<4x4xf32>
    %567 = arith.maximumf %565, %566 : vector<4x4xf32>
    %cst_221 = arith.constant dense<0.000000e+00> : vector<4x16xf32>
    %568 = tpu.matmul %567, %11, %cst_221 {dimension_numbers = #tpu.dot_dimension_numbers<[1], [0], [0], [1], [0, 0, 1, 1], [], []>} : vector<4x4xf32>, vector<4x16xf32>, vector<4x16xf32> -> vector<4x16xf32>
    %cst_222 = arith.constant dense<0.000000e+00> : vector<3x16xf32>
    %569 = tpu.matmul %8, %568, %cst_222 {dimension_numbers = #tpu.dot_dimension_numbers<[1], [0], [0], [1], [0, 0, 1, 1], [], []>} : vector<3x4xf32>, vector<4x16xf32>, vector<3x16xf32> -> vector<3x16xf32>
    %c0_223 = arith.constant 0 : index
    %c0_224 = arith.constant 0 : index
    %c6_225 = arith.constant 6 : index
    %c0_226 = arith.constant 0 : index
    %570 = vector.load %arg3[%c0_223, %c0_224, %c6_225, %c0_226] : memref<1x8x8x8xf32, #tpu.memory_space<vmem>>, vector<1x8x1x8xf32>
    %571 = vector.shape_cast %570 : vector<1x8x1x8xf32> to vector<8x8xf32>
    %cst_227 = arith.constant dense<0.000000e+00> : vector<4x8xf32>
    %572 = tpu.matmul %2, %571, %cst_227 {dimension_numbers = #tpu.dot_dimension_numbers<[1], [0], [0], [1], [0, 0, 1, 1], [], []>} : vector<4x8xf32>, vector<8x8xf32>, vector<4x8xf32> -> vector<4x8xf32>
    %573 = vector.broadcast %3 : vector<4x1xf32> to vector<4x8xf32>
    %574 = arith.addf %572, %573 : vector<4x8xf32>
    %cst_228 = arith.constant 0.000000e+00 : f32
    %575 = vector.broadcast %cst_228 : f32 to vector<4x8xf32>
    %576 = arith.maximumf %574, %575 : vector<4x8xf32>
    %cst_229 = arith.constant dense<0.000000e+00> : vector<4x16xf32>
    %577 = tpu.matmul %576, %10, %cst_229 {dimension_numbers = #tpu.dot_dimension_numbers<[1], [0], [0], [1], [0, 0, 1, 1], [], []>} : vector<4x8xf32>, vector<8x16xf32>, vector<4x16xf32> -> vector<4x16xf32>
    %cst_230 = arith.constant dense<0.000000e+00> : vector<3x16xf32>
    %578 = tpu.matmul %7, %577, %cst_230 {dimension_numbers = #tpu.dot_dimension_numbers<[1], [0], [0], [1], [0, 0, 1, 1], [], []>} : vector<3x4xf32>, vector<4x16xf32>, vector<3x16xf32> -> vector<3x16xf32>
    %c0_231 = arith.constant 0 : index
    %c0_232 = arith.constant 0 : index
    %c12 = arith.constant 12 : index
    %c0_233 = arith.constant 0 : index
    %579 = vector.load %arg2[%c0_231, %c0_232, %c12, %c0_233] : memref<1x4x16x16xf32, #tpu.memory_space<vmem>>, vector<1x4x1x16xf32>
    %580 = vector.shape_cast %579 : vector<1x4x1x16xf32> to vector<4x16xf32>
    %cst_234 = arith.constant dense<0.000000e+00> : vector<4x16xf32>
    %581 = tpu.matmul %0, %580, %cst_234 {dimension_numbers = #tpu.dot_dimension_numbers<[1], [0], [0], [1], [0, 0, 1, 1], [], []>} : vector<4x4xf32>, vector<4x16xf32>, vector<4x16xf32> -> vector<4x16xf32>
    %582 = vector.broadcast %1 : vector<4x1xf32> to vector<4x16xf32>
    %583 = arith.addf %581, %582 : vector<4x16xf32>
    %cst_235 = arith.constant 0.000000e+00 : f32
    %584 = vector.broadcast %cst_235 : f32 to vector<4x16xf32>
    %585 = arith.maximumf %583, %584 : vector<4x16xf32>
    %cst_236 = arith.constant dense<0.000000e+00> : vector<3x16xf32>
    %586 = tpu.matmul %6, %585, %cst_236 {dimension_numbers = #tpu.dot_dimension_numbers<[1], [0], [0], [1], [0, 0, 1, 1], [], []>} : vector<3x4xf32>, vector<4x16xf32>, vector<3x16xf32> -> vector<3x16xf32>
    %587 = arith.addf %586, %578 : vector<3x16xf32>
    %588 = arith.addf %587, %569 : vector<3x16xf32>
    %589 = vector.broadcast %9 : vector<3x1xf32> to vector<3x16xf32>
    %590 = arith.addf %588, %589 : vector<3x16xf32>
    %591 = vector.extract_strided_slice %590 {offsets = [0, 0], sizes = [1, 16], strides = [1, 1]} : vector<3x16xf32> to vector<1x16xf32>
    %592 = vector.extract_strided_slice %590 {offsets = [1, 0], sizes = [1, 16], strides = [1, 1]} : vector<3x16xf32> to vector<1x16xf32>
    %593 = vector.extract_strided_slice %590 {offsets = [2, 0], sizes = [1, 16], strides = [1, 1]} : vector<3x16xf32> to vector<1x16xf32>
    %594 = arith.maximumf %592, %593 : vector<1x16xf32>
    %595 = arith.maximumf %591, %594 : vector<1x16xf32>
    %596 = arith.subf %591, %595 : vector<1x16xf32>
    %597 = math.exp %596 : vector<1x16xf32>
    %598 = arith.subf %592, %595 : vector<1x16xf32>
    %599 = math.exp %598 : vector<1x16xf32>
    %600 = arith.subf %593, %595 : vector<1x16xf32>
    %601 = math.exp %600 : vector<1x16xf32>
    %602 = arith.addf %597, %599 : vector<1x16xf32>
    %603 = arith.addf %602, %601 : vector<1x16xf32>
    %604 = tpu.reciprocal %603 : vector<1x16xf32> -> vector<1x16xf32>
    %605 = vector.broadcast %597 : vector<1x16xf32> to vector<4x16xf32>
    %606 = arith.mulf %605, %585 : vector<4x16xf32>
    %607 = vector.broadcast %599 : vector<1x16xf32> to vector<4x16xf32>
    %608 = arith.mulf %607, %577 : vector<4x16xf32>
    %609 = arith.addf %606, %608 : vector<4x16xf32>
    %610 = vector.broadcast %601 : vector<1x16xf32> to vector<4x16xf32>
    %611 = arith.mulf %610, %568 : vector<4x16xf32>
    %612 = arith.addf %609, %611 : vector<4x16xf32>
    %613 = vector.broadcast %604 : vector<1x16xf32> to vector<4x16xf32>
    %614 = arith.mulf %612, %613 : vector<4x16xf32>
    %c0_237 = arith.constant 0 : index
    %c0_238 = arith.constant 0 : index
    %c12_239 = arith.constant 12 : index
    %c0_240 = arith.constant 0 : index
    %615 = vector.load %arg17[%c0_237, %c0_238, %c12_239, %c0_240] : memref<1x4x16x16xf32, #tpu.memory_space<vmem>>, vector<1x4x1x16xf32>
    %616 = vector.shape_cast %615 : vector<1x4x1x16xf32> to vector<4x16xf32>
    %617 = vector.shape_cast %614 : vector<4x16xf32> to vector<1x4x1x16xf32>
    tpu.vector_store %arg17[%c0_237, %c0_238, %c12_239, %c0_240], %617 {strides = array<i32>} : memref<1x4x16x16xf32, #tpu.memory_space<vmem>>, vector<1x4x1x16xf32>,
    %c0_241 = arith.constant 0 : index
    %c0_242 = arith.constant 0 : index
    %c13 = arith.constant 13 : index
    %c0_243 = arith.constant 0 : index
    %618 = vector.load %arg2[%c0_241, %c0_242, %c13, %c0_243] : memref<1x4x16x16xf32, #tpu.memory_space<vmem>>, vector<1x4x1x16xf32>
    %619 = vector.shape_cast %618 : vector<1x4x1x16xf32> to vector<4x16xf32>
    %cst_244 = arith.constant dense<0.000000e+00> : vector<4x16xf32>
    %620 = tpu.matmul %0, %619, %cst_244 {dimension_numbers = #tpu.dot_dimension_numbers<[1], [0], [0], [1], [0, 0, 1, 1], [], []>} : vector<4x4xf32>, vector<4x16xf32>, vector<4x16xf32> -> vector<4x16xf32>
    %621 = vector.broadcast %1 : vector<4x1xf32> to vector<4x16xf32>
    %622 = arith.addf %620, %621 : vector<4x16xf32>
    %cst_245 = arith.constant 0.000000e+00 : f32
    %623 = vector.broadcast %cst_245 : f32 to vector<4x16xf32>
    %624 = arith.maximumf %622, %623 : vector<4x16xf32>
    %cst_246 = arith.constant dense<0.000000e+00> : vector<3x16xf32>
    %625 = tpu.matmul %6, %624, %cst_246 {dimension_numbers = #tpu.dot_dimension_numbers<[1], [0], [0], [1], [0, 0, 1, 1], [], []>} : vector<3x4xf32>, vector<4x16xf32>, vector<3x16xf32> -> vector<3x16xf32>
    %626 = arith.addf %625, %578 : vector<3x16xf32>
    %627 = arith.addf %626, %569 : vector<3x16xf32>
    %628 = vector.broadcast %9 : vector<3x1xf32> to vector<3x16xf32>
    %629 = arith.addf %627, %628 : vector<3x16xf32>
    %630 = vector.extract_strided_slice %629 {offsets = [0, 0], sizes = [1, 16], strides = [1, 1]} : vector<3x16xf32> to vector<1x16xf32>
    %631 = vector.extract_strided_slice %629 {offsets = [1, 0], sizes = [1, 16], strides = [1, 1]} : vector<3x16xf32> to vector<1x16xf32>
    %632 = vector.extract_strided_slice %629 {offsets = [2, 0], sizes = [1, 16], strides = [1, 1]} : vector<3x16xf32> to vector<1x16xf32>
    %633 = arith.maximumf %631, %632 : vector<1x16xf32>
    %634 = arith.maximumf %630, %633 : vector<1x16xf32>
    %635 = arith.subf %630, %634 : vector<1x16xf32>
    %636 = math.exp %635 : vector<1x16xf32>
    %637 = arith.subf %631, %634 : vector<1x16xf32>
    %638 = math.exp %637 : vector<1x16xf32>
    %639 = arith.subf %632, %634 : vector<1x16xf32>
    %640 = math.exp %639 : vector<1x16xf32>
    %641 = arith.addf %636, %638 : vector<1x16xf32>
    %642 = arith.addf %641, %640 : vector<1x16xf32>
    %643 = tpu.reciprocal %642 : vector<1x16xf32> -> vector<1x16xf32>
    %644 = vector.broadcast %636 : vector<1x16xf32> to vector<4x16xf32>
    %645 = arith.mulf %644, %624 : vector<4x16xf32>
    %646 = vector.broadcast %638 : vector<1x16xf32> to vector<4x16xf32>
    %647 = arith.mulf %646, %577 : vector<4x16xf32>
    %648 = arith.addf %645, %647 : vector<4x16xf32>
    %649 = vector.broadcast %640 : vector<1x16xf32> to vector<4x16xf32>
    %650 = arith.mulf %649, %568 : vector<4x16xf32>
    %651 = arith.addf %648, %650 : vector<4x16xf32>
    %652 = vector.broadcast %643 : vector<1x16xf32> to vector<4x16xf32>
    %653 = arith.mulf %651, %652 : vector<4x16xf32>
    %c0_247 = arith.constant 0 : index
    %c0_248 = arith.constant 0 : index
    %c13_249 = arith.constant 13 : index
    %c0_250 = arith.constant 0 : index
    %654 = vector.load %arg17[%c0_247, %c0_248, %c13_249, %c0_250] : memref<1x4x16x16xf32, #tpu.memory_space<vmem>>, vector<1x4x1x16xf32>
    %655 = vector.shape_cast %654 : vector<1x4x1x16xf32> to vector<4x16xf32>
    %656 = vector.shape_cast %653 : vector<4x16xf32> to vector<1x4x1x16xf32>
    tpu.vector_store %arg17[%c0_247, %c0_248, %c13_249, %c0_250], %656 {strides = array<i32>} : memref<1x4x16x16xf32, #tpu.memory_space<vmem>>, vector<1x4x1x16xf32>,
    %c0_251 = arith.constant 0 : index
    %c0_252 = arith.constant 0 : index
    %c7_253 = arith.constant 7 : index
    %c0_254 = arith.constant 0 : index
    %657 = vector.load %arg3[%c0_251, %c0_252, %c7_253, %c0_254] : memref<1x8x8x8xf32, #tpu.memory_space<vmem>>, vector<1x8x1x8xf32>
    %658 = vector.shape_cast %657 : vector<1x8x1x8xf32> to vector<8x8xf32>
    %cst_255 = arith.constant dense<0.000000e+00> : vector<4x8xf32>
    %659 = tpu.matmul %2, %658, %cst_255 {dimension_numbers = #tpu.dot_dimension_numbers<[1], [0], [0], [1], [0, 0, 1, 1], [], []>} : vector<4x8xf32>, vector<8x8xf32>, vector<4x8xf32> -> vector<4x8xf32>
    %660 = vector.broadcast %3 : vector<4x1xf32> to vector<4x8xf32>
    %661 = arith.addf %659, %660 : vector<4x8xf32>
    %cst_256 = arith.constant 0.000000e+00 : f32
    %662 = vector.broadcast %cst_256 : f32 to vector<4x8xf32>
    %663 = arith.maximumf %661, %662 : vector<4x8xf32>
    %cst_257 = arith.constant dense<0.000000e+00> : vector<4x16xf32>
    %664 = tpu.matmul %663, %10, %cst_257 {dimension_numbers = #tpu.dot_dimension_numbers<[1], [0], [0], [1], [0, 0, 1, 1], [], []>} : vector<4x8xf32>, vector<8x16xf32>, vector<4x16xf32> -> vector<4x16xf32>
    %cst_258 = arith.constant dense<0.000000e+00> : vector<3x16xf32>
    %665 = tpu.matmul %7, %664, %cst_258 {dimension_numbers = #tpu.dot_dimension_numbers<[1], [0], [0], [1], [0, 0, 1, 1], [], []>} : vector<3x4xf32>, vector<4x16xf32>, vector<3x16xf32> -> vector<3x16xf32>
    %c0_259 = arith.constant 0 : index
    %c0_260 = arith.constant 0 : index
    %c14 = arith.constant 14 : index
    %c0_261 = arith.constant 0 : index
    %666 = vector.load %arg2[%c0_259, %c0_260, %c14, %c0_261] : memref<1x4x16x16xf32, #tpu.memory_space<vmem>>, vector<1x4x1x16xf32>
    %667 = vector.shape_cast %666 : vector<1x4x1x16xf32> to vector<4x16xf32>
    %cst_262 = arith.constant dense<0.000000e+00> : vector<4x16xf32>
    %668 = tpu.matmul %0, %667, %cst_262 {dimension_numbers = #tpu.dot_dimension_numbers<[1], [0], [0], [1], [0, 0, 1, 1], [], []>} : vector<4x4xf32>, vector<4x16xf32>, vector<4x16xf32> -> vector<4x16xf32>
    %669 = vector.broadcast %1 : vector<4x1xf32> to vector<4x16xf32>
    %670 = arith.addf %668, %669 : vector<4x16xf32>
    %cst_263 = arith.constant 0.000000e+00 : f32
    %671 = vector.broadcast %cst_263 : f32 to vector<4x16xf32>
    %672 = arith.maximumf %670, %671 : vector<4x16xf32>
    %cst_264 = arith.constant dense<0.000000e+00> : vector<3x16xf32>
    %673 = tpu.matmul %6, %672, %cst_264 {dimension_numbers = #tpu.dot_dimension_numbers<[1], [0], [0], [1], [0, 0, 1, 1], [], []>} : vector<3x4xf32>, vector<4x16xf32>, vector<3x16xf32> -> vector<3x16xf32>
    %674 = arith.addf %673, %665 : vector<3x16xf32>
    %675 = arith.addf %674, %569 : vector<3x16xf32>
    %676 = vector.broadcast %9 : vector<3x1xf32> to vector<3x16xf32>
    %677 = arith.addf %675, %676 : vector<3x16xf32>
    %678 = vector.extract_strided_slice %677 {offsets = [0, 0], sizes = [1, 16], strides = [1, 1]} : vector<3x16xf32> to vector<1x16xf32>
    %679 = vector.extract_strided_slice %677 {offsets = [1, 0], sizes = [1, 16], strides = [1, 1]} : vector<3x16xf32> to vector<1x16xf32>
    %680 = vector.extract_strided_slice %677 {offsets = [2, 0], sizes = [1, 16], strides = [1, 1]} : vector<3x16xf32> to vector<1x16xf32>
    %681 = arith.maximumf %679, %680 : vector<1x16xf32>
    %682 = arith.maximumf %678, %681 : vector<1x16xf32>
    %683 = arith.subf %678, %682 : vector<1x16xf32>
    %684 = math.exp %683 : vector<1x16xf32>
    %685 = arith.subf %679, %682 : vector<1x16xf32>
    %686 = math.exp %685 : vector<1x16xf32>
    %687 = arith.subf %680, %682 : vector<1x16xf32>
    %688 = math.exp %687 : vector<1x16xf32>
    %689 = arith.addf %684, %686 : vector<1x16xf32>
    %690 = arith.addf %689, %688 : vector<1x16xf32>
    %691 = tpu.reciprocal %690 : vector<1x16xf32> -> vector<1x16xf32>
    %692 = vector.broadcast %684 : vector<1x16xf32> to vector<4x16xf32>
    %693 = arith.mulf %692, %672 : vector<4x16xf32>
    %694 = vector.broadcast %686 : vector<1x16xf32> to vector<4x16xf32>
    %695 = arith.mulf %694, %664 : vector<4x16xf32>
    %696 = arith.addf %693, %695 : vector<4x16xf32>
    %697 = vector.broadcast %688 : vector<1x16xf32> to vector<4x16xf32>
    %698 = arith.mulf %697, %568 : vector<4x16xf32>
    %699 = arith.addf %696, %698 : vector<4x16xf32>
    %700 = vector.broadcast %691 : vector<1x16xf32> to vector<4x16xf32>
    %701 = arith.mulf %699, %700 : vector<4x16xf32>
    %c0_265 = arith.constant 0 : index
    %c0_266 = arith.constant 0 : index
    %c14_267 = arith.constant 14 : index
    %c0_268 = arith.constant 0 : index
    %702 = vector.load %arg17[%c0_265, %c0_266, %c14_267, %c0_268] : memref<1x4x16x16xf32, #tpu.memory_space<vmem>>, vector<1x4x1x16xf32>
    %703 = vector.shape_cast %702 : vector<1x4x1x16xf32> to vector<4x16xf32>
    %704 = vector.shape_cast %701 : vector<4x16xf32> to vector<1x4x1x16xf32>
    tpu.vector_store %arg17[%c0_265, %c0_266, %c14_267, %c0_268], %704 {strides = array<i32>} : memref<1x4x16x16xf32, #tpu.memory_space<vmem>>, vector<1x4x1x16xf32>,
    %c0_269 = arith.constant 0 : index
    %c0_270 = arith.constant 0 : index
    %c15 = arith.constant 15 : index
    %c0_271 = arith.constant 0 : index
    %705 = vector.load %arg2[%c0_269, %c0_270, %c15, %c0_271] : memref<1x4x16x16xf32, #tpu.memory_space<vmem>>, vector<1x4x1x16xf32>
    %706 = vector.shape_cast %705 : vector<1x4x1x16xf32> to vector<4x16xf32>
    %cst_272 = arith.constant dense<0.000000e+00> : vector<4x16xf32>
    %707 = tpu.matmul %0, %706, %cst_272 {dimension_numbers = #tpu.dot_dimension_numbers<[1], [0], [0], [1], [0, 0, 1, 1], [], []>} : vector<4x4xf32>, vector<4x16xf32>, vector<4x16xf32> -> vector<4x16xf32>
    %708 = vector.broadcast %1 : vector<4x1xf32> to vector<4x16xf32>
    %709 = arith.addf %707, %708 : vector<4x16xf32>
    %cst_273 = arith.constant 0.000000e+00 : f32
    %710 = vector.broadcast %cst_273 : f32 to vector<4x16xf32>
    %711 = arith.maximumf %709, %710 : vector<4x16xf32>
    %cst_274 = arith.constant dense<0.000000e+00> : vector<3x16xf32>
    %712 = tpu.matmul %6, %711, %cst_274 {dimension_numbers = #tpu.dot_dimension_numbers<[1], [0], [0], [1], [0, 0, 1, 1], [], []>} : vector<3x4xf32>, vector<4x16xf32>, vector<3x16xf32> -> vector<3x16xf32>
    %713 = arith.addf %712, %665 : vector<3x16xf32>
    %714 = arith.addf %713, %569 : vector<3x16xf32>
    %715 = vector.broadcast %9 : vector<3x1xf32> to vector<3x16xf32>
    %716 = arith.addf %714, %715 : vector<3x16xf32>
    %717 = vector.extract_strided_slice %716 {offsets = [0, 0], sizes = [1, 16], strides = [1, 1]} : vector<3x16xf32> to vector<1x16xf32>
    %718 = vector.extract_strided_slice %716 {offsets = [1, 0], sizes = [1, 16], strides = [1, 1]} : vector<3x16xf32> to vector<1x16xf32>
    %719 = vector.extract_strided_slice %716 {offsets = [2, 0], sizes = [1, 16], strides = [1, 1]} : vector<3x16xf32> to vector<1x16xf32>
    %720 = arith.maximumf %718, %719 : vector<1x16xf32>
    %721 = arith.maximumf %717, %720 : vector<1x16xf32>
    %722 = arith.subf %717, %721 : vector<1x16xf32>
    %723 = math.exp %722 : vector<1x16xf32>
    %724 = arith.subf %718, %721 : vector<1x16xf32>
    %725 = math.exp %724 : vector<1x16xf32>
    %726 = arith.subf %719, %721 : vector<1x16xf32>
    %727 = math.exp %726 : vector<1x16xf32>
    %728 = arith.addf %723, %725 : vector<1x16xf32>
    %729 = arith.addf %728, %727 : vector<1x16xf32>
    %730 = tpu.reciprocal %729 : vector<1x16xf32> -> vector<1x16xf32>
    %731 = vector.broadcast %723 : vector<1x16xf32> to vector<4x16xf32>
    %732 = arith.mulf %731, %711 : vector<4x16xf32>
    %733 = vector.broadcast %725 : vector<1x16xf32> to vector<4x16xf32>
    %734 = arith.mulf %733, %664 : vector<4x16xf32>
    %735 = arith.addf %732, %734 : vector<4x16xf32>
    %736 = vector.broadcast %727 : vector<1x16xf32> to vector<4x16xf32>
    %737 = arith.mulf %736, %568 : vector<4x16xf32>
    %738 = arith.addf %735, %737 : vector<4x16xf32>
    %739 = vector.broadcast %730 : vector<1x16xf32> to vector<4x16xf32>
    %740 = arith.mulf %738, %739 : vector<4x16xf32>
    %c0_275 = arith.constant 0 : index
    %c0_276 = arith.constant 0 : index
    %c15_277 = arith.constant 15 : index
    %c0_278 = arith.constant 0 : index
    %741 = vector.load %arg17[%c0_275, %c0_276, %c15_277, %c0_278] : memref<1x4x16x16xf32, #tpu.memory_space<vmem>>, vector<1x4x1x16xf32>
    %742 = vector.shape_cast %741 : vector<1x4x1x16xf32> to vector<4x16xf32>
    %743 = vector.shape_cast %740 : vector<4x16xf32> to vector<1x4x1x16xf32>
    tpu.vector_store %arg17[%c0_275, %c0_276, %c15_277, %c0_278], %743 {strides = array<i32>} : memref<1x4x16x16xf32, #tpu.memory_space<vmem>>, vector<1x4x1x16xf32>,
    return
  }
  func.func @transform_0(%arg0: i32, %arg1: i32) -> (i32, i32, i32, i32) {
    %c0_i32 = arith.constant 0 : i32
    %c0_i32_0 = arith.constant 0 : i32
    %c0_i32_1 = arith.constant 0 : i32
    return %arg0, %c0_i32, %arg1, %c0_i32_0 : i32, i32, i32, i32
  }
  func.func @transform_1(%arg0: i32, %arg1: i32) -> (i32, i32, i32, i32) {
    %c0_i32 = arith.constant 0 : i32
    %c0_i32_0 = arith.constant 0 : i32
    %c0_i32_1 = arith.constant 0 : i32
    return %arg0, %c0_i32, %arg1, %c0_i32_0 : i32, i32, i32, i32
  }
  func.func @transform_2(%arg0: i32, %arg1: i32) -> (i32, i32, i32, i32) {
    %c0_i32 = arith.constant 0 : i32
    %c0_i32_0 = arith.constant 0 : i32
    %c0_i32_1 = arith.constant 0 : i32
    return %arg0, %c0_i32, %arg1, %c0_i32_0 : i32, i32, i32, i32
  }
  func.func @transform_3(%arg0: i32, %arg1: i32) -> (i32, i32) {
    %c0_i32 = arith.constant 0 : i32
    %c0_i32_0 = arith.constant 0 : i32
    %c0_i32_1 = arith.constant 0 : i32
    return %c0_i32, %c0_i32_0 : i32, i32
  }
  func.func @transform_4(%arg0: i32, %arg1: i32) -> (i32, i32) {
    %c0_i32 = arith.constant 0 : i32
    %c0_i32_0 = arith.constant 0 : i32
    %c0_i32_1 = arith.constant 0 : i32
    return %c0_i32, %c0_i32_0 : i32, i32
  }
  func.func @transform_5(%arg0: i32, %arg1: i32) -> (i32, i32) {
    %c0_i32 = arith.constant 0 : i32
    %c0_i32_0 = arith.constant 0 : i32
    %c0_i32_1 = arith.constant 0 : i32
    return %c0_i32, %c0_i32_0 : i32, i32
  }
  func.func @transform_6(%arg0: i32, %arg1: i32) -> (i32, i32) {
    %c0_i32 = arith.constant 0 : i32
    %c0_i32_0 = arith.constant 0 : i32
    %c0_i32_1 = arith.constant 0 : i32
    return %c0_i32, %c0_i32_0 : i32, i32
  }
  func.func @transform_7(%arg0: i32, %arg1: i32) -> (i32, i32) {
    %c0_i32 = arith.constant 0 : i32
    %c0_i32_0 = arith.constant 0 : i32
    %c0_i32_1 = arith.constant 0 : i32
    return %c0_i32, %c0_i32_0 : i32, i32
  }
  func.func @transform_8(%arg0: i32, %arg1: i32) -> (i32, i32) {
    %c0_i32 = arith.constant 0 : i32
    %c0_i32_0 = arith.constant 0 : i32
    %c0_i32_1 = arith.constant 0 : i32
    return %c0_i32, %c0_i32_0 : i32, i32
  }
  func.func @transform_9(%arg0: i32, %arg1: i32) -> (i32, i32) {
    %c0_i32 = arith.constant 0 : i32
    %c0_i32_0 = arith.constant 0 : i32
    %c0_i32_1 = arith.constant 0 : i32
    return %c0_i32, %c0_i32_0 : i32, i32
  }
  func.func @transform_10(%arg0: i32, %arg1: i32) -> (i32, i32) {
    %c0_i32 = arith.constant 0 : i32
    %c0_i32_0 = arith.constant 0 : i32
    %c0_i32_1 = arith.constant 0 : i32
    return %c0_i32, %c0_i32_0 : i32, i32
  }
  func.func @transform_11(%arg0: i32, %arg1: i32) -> (i32, i32) {
    %c0_i32 = arith.constant 0 : i32
    %c0_i32_0 = arith.constant 0 : i32
    %c0_i32_1 = arith.constant 0 : i32
    return %c0_i32, %c0_i32_0 : i32, i32
  }
  func.func @transform_12(%arg0: i32, %arg1: i32) -> (i32, i32) {
    %c0_i32 = arith.constant 0 : i32
    %c0_i32_0 = arith.constant 0 : i32
    %c0_i32_1 = arith.constant 0 : i32
    return %c0_i32, %c0_i32_0 : i32, i32
  }
  func.func @transform_13(%arg0: i32, %arg1: i32) -> (i32, i32) {
    %c0_i32 = arith.constant 0 : i32
    %c0_i32_0 = arith.constant 0 : i32
    %c0_i32_1 = arith.constant 0 : i32
    return %c0_i32, %c0_i32_0 : i32, i32
  }
  func.func @transform_14(%arg0: i32, %arg1: i32) -> (i32, i32) {
    %c0_i32 = arith.constant 0 : i32
    %c0_i32_0 = arith.constant 0 : i32
    %c0_i32_1 = arith.constant 0 : i32
    return %c0_i32, %c0_i32_0 : i32, i32
  }
  func.func @transform_15(%arg0: i32, %arg1: i32) -> (i32, i32, i32, i32) {
    %c0_i32 = arith.constant 0 : i32
    %c0_i32_0 = arith.constant 0 : i32
    %c0_i32_1 = arith.constant 0 : i32
    return %arg0, %c0_i32, %arg1, %c0_i32_0 : i32, i32, i32, i32
  }
}

</mosaic_0001>

<bundles_post_ra>
// kernel: tpu_custom_call.1
= control target key start
LH: loop header
LB: loop body
LE: loop exit
PB: predicated region body
PF: predicated region fallthrough
CT: control target
= control target key end

     0   :  { %s5916_s0 = inlined_call_operand.vmem [shape: f32[2,4,16,16], index: 0, kind: input, shape index: {}]   ;;  %s5917_s1 = inlined_call_operand.hbm [shape: f32[2,8,8,8], index: 1, kind: input, shape index: {}]   ;;  %s5918_s2 = inlined_call_operand.vmem [shape: f32[2,16,4,4], index: 2, kind: input, shape index: {}]   ;;  %s5919_s3 = inlined_call_operand.vmem [shape: f32[8,16], index: 3, kind: input, shape index: {}]   ;;  %s5920_s4 = inlined_call_operand.vmem [shape: f32[4,16], index: 4, kind: input, shape index: {}]   ;;  %s5921_s5 = inlined_call_operand.vmem [shape: f32[4,4], index: 5, kind: input, shape index: {}]   ;;  %s5922_s6 = inlined_call_operand.vmem [shape: f32[4,1], index: 6, kind: input, shape index: {}]   ;;  %s5923_s7 = inlined_call_operand.vmem [shape: f32[4,8], index: 7, kind: input, shape index: {}]   ;;  %s5924_s8 = inlined_call_operand.vmem [shape: f32[4,1], index: 8, kind: input, shape index: {}]   ;;  %s5925_s9 = inlined_call_operand.vmem [shape: f32[4,16], index: 9, kind: input, shape index: {}]   ;;  %s5926_s10 = inlined_call_operand.vmem [shape: f32[4,1], index: 10, kind: input, shape index: {}]   ;;  %s5927_s11 = inlined_call_operand.vmem [shape: f32[3,4], index: 11, kind: input, shape index: {}]   ;;  %s5928_s12 = inlined_call_operand.vmem [shape: f32[3,4], index: 12, kind: input, shape index: {}]   ;;  %s5929_s13 = inlined_call_operand.vmem [shape: f32[3,4], index: 13, kind: input, shape index: {}]   ;;  %s5930_s14 = inlined_call_operand.vmem [shape: f32[3,1], index: 14, kind: input, shape index: {}]   ;;  %s5931_s15 = inlined_call_operand.hbm [shape: f32[2,4,16,16], index: 15, kind: output, shape index: {}]  }
   0x1   :  { %5942 = sst [smem:[#allocation13_spill]] %s5916_s0 }
   0x2   :  { %5943 = sst [smem:[#allocation14_spill]] %s5917_s1 }
   0x3   :  { %5944 = sst [smem:[#allocation15_spill]] %s5918_s2 }
   0x4   :  { %5945 = sst [smem:[#allocation16_spill]] %s5927_s11 }
   0x5   :  { %5946 = sst [smem:[#allocation17_spill]] %s5928_s12 }
   0x6   :  { %5947 = sst [smem:[#allocation18_spill]] %s5929_s13 }
   0x7   :  { %5948 = sst [smem:[#allocation19_spill]] %s5930_s14 }
   0x8   :  { %5949 = sst [smem:[#allocation20_spill]] %s5931_s15 }
   0x9   :  { %20 = vsyncpa [#allocation3], 0 }
   0xa   :  { %22 = vsyncpa [#allocation3 + $0x1], 0 }
   0xb   :  { %23 = vsyncpa [#allocation4], 0 }
   0xc   :  { %25 = vsyncpa [#allocation4 + $0x1], 0  ;;  %s4686_s18 = smov 0   ;;  %s4688_s19 = smov 0  }
   0xd   :  { %s4690_s20 = smov 0   ;;  %s4692_s21 = smov 0  }
   0xe   :  { %s4694_s22 = smov 0   ;;  %s4696_s23 = smov 0  }
   0xf LB: > { %5950 = sst [smem:[#allocation8_spill]] %s4579_s18  ;;  %s4137_s24 = sadd.s32 4294967295, %s4599_s23   ;;  %s4599_s23 = sphi %s4696_s23, %s31_s23   ;;  %s4595_s22 = sphi %s4694_s22, %s5973_s22   ;;  %s4591_s21 = sphi %s4692_s21, %s5972_s21   ;;  %s4587_s20 = sphi %s4690_s20, %s5976_s20   ;;  %s4583_s19 = sphi %s4688_s19, %s5975_s19   ;;  %s4579_s18 = sphi %s4686_s18, %s5974_s18  }
  0x10   : > { %5951 = sst [smem:[#allocation9_spill]] %s4595_s22  ;;  %s4138_s25 = sadd.s32 4294967294, %s4599_s23  }
  0x11   : > { %s43_s26 = sadd.s32 1, %s4595_s22  ;;  %s80_s27 = sadd.s32 1, %s4587_s20 }
  0x12   : > { %p45_p0 = scmp.ge.s32.totalorder %s43_s26, 2  ;;  %p87_p1 = scmp.ne.s32.totalorder %s4587_s20, %s4583_s19 }
  0x13   : > { %p88_p2 = scmp.eq.s32.totalorder %s4599_s23, 0  ;;  %p93_p3 = scmp.ne.s32.totalorder %s4583_s19, %s4579_s18 }
  0x14   : > { %s5978_s26 = smov (%p45_p0, %s43_s26), 0  ;;  %p94_p5 = scmp.eq.s32.totalorder %s4137_s24, 0 }
  0x15   : > { %5952 = sst [smem:[#allocation10_spill]] %s5978_s26  ;;  %p4727_p4 = por %p88_p2, %p87_p1 }
  0x16   : > { %s75_s29 = ssub.s32 %s4595_s22, %s5978_s26  ;;  %p399_p6 = scmp.eq.s32.totalorder %s4137_s24, 1 }
  0x17   : > { %p78_p7 = scmp.eq.s32.totalorder %s75_s29, 0  ;;  %p4733_p8 = por %p94_p5, %p93_p3 }
  0x18   : > { %p4737_p9 = por %p399_p6, %p87_p1  ;;  %p405_p10 = scmp.eq.s32.totalorder %s4138_s25, 1 }
  0x19   : > { %s4742_s17 = scalar_select %p78_p7, %s4587_s20, %s80_s27  }
  0x1a   : > { %s5955_s16 = scalar_select %p4737_p9, 1, 0 }
  0x1b   : > { %5957 = sst [smem:[#allocation12_spill]] %s4742_s17  ;;  %p4744_p11 = por %p405_p10, %p93_p3 }
  0x1c   : > { %5956 = sst [smem:[#allocation11_spill]] %s5955_s16  ;;  %p4140_p12 = scmp.ge.s32.totalorder %s4599_s23, 2 }
  0x1d   : > { %p4288_p13 = scmp.lt.s32.totalorder %s4599_s23, 2  ;;  %s474_s24 = sand.u32 1, %s4587_s20  }
  0x1e   : > { %s4141_s29 = sshll.u32 %s474_s24, 6  ;;  %s4272_s26 = sshll.u32 %s4595_s22, 6 }
  0x1f   : > { %s5959_s1 = sld [smem:[#allocation14_spill]]  ;;  %s478_s11 = scalar_lea.vmem [#allocation2], %s4141_s29 }
  0x20   : > { %s487_s16 = sshll.u32 %s478_s11, 4  ;;  %p4281_p0 = pnand %p4288_p13, %p4727_p4  ;;  %s488_s16 = int_to_ptr.vmem [resolvable:$true] %s487_s16 }
  0x21   : > { %p4144_p1 = scmp.ge.s32.totalorder %s4599_s23, 1  ;;  %s475_s25 = scalar_lea.sflag [#allocation3], %s474_s24 }
  0x22   : > { %s4601_s27 = smov 128   ;;  %s4602_s17 = smov 8  }
  0x23   : > { %p506_p2 = scmp.lt.s32.totalorder %s4599_s23, 3 }
  0x25   : > { %s484_s13 = scalar_lea.hbm %s5959_s1, %s4272_s26  ;;  %p507_p3 = pnand %p4144_p1, %p506_p2 }
  0x26   : > { %s485_s14 = sshll.u32 %s484_s13, 4  ;;  %s4760_s22 = sand.u32 (!%p507_p3), 1, %s4583_s19   ;;  %s486_s14 = int_to_ptr.hbm [resolvable:$true] %s485_s14 }
  0x27   : > { %4283 = dma.hbm_to_vmem [thread:$0]  (!%p4281_p0), %s486_s14, 1024, %s488_s16, %s475_s25, %s4601_s27, %s4601_s27, %s4602_s17  }
  0x28   : > { %510 = sbr.rel (%p507_p3) target bundleno = 1966 (0x7ae), region = 80  ;;  %s4145_s11 = sshll.u32 (!%p507_p3), %s4760_s22, 6 }
  0x29   : > { %s513_s12 = scalar_lea.sflag (!%p507_p3), [#allocation3], %s4760_s22  ;;  %s4766_s13 = scalar_lea.vmem (!%p507_p3), [#allocation2], %s4145_s11 }
  0x2d   : > { %4570 = dma.done.wait (%p4733_p8), %s513_s12, 1024  }
  0x2e   : > { %4572 = vsyncadd (%p4733_p8), %s513_s12, 4294966272  ;;  %p582_p4 = scmp.lt.s32.totalorder %s4591_s21, 1  ;;  %v4603_v0 = vmov 0   ;;  %s5960_s2 = sld [smem:[#allocation15_spill]]  ;;  %vm650_vm0 = vcmask 1041409   ;;  %vm653_vm1 = vcmask 1042434  }
  0x2f   : > { %4343 = vset.pattern.permute.xlu0 %v4603_v0  ;;  %4344 = vset.pattern.permute.xlu1 %v4603_v0  ;;  %vm656_vm2 = vcmask 1043459   ;;  %vm659_vm3 = vcmask 1044484   ;;  %vm662_vm4 = vcmask 1045509   ;;  %vm665_vm5 = vcmask 1046534   ;;  %v765_v16 = vld [vmem:[%s4766_s13] sm:$0x1] }
  0x30   : > { %s4774_s14 = scalar_select %p582_p4, %s4591_s21, 1  ;;  %v766_v17 = vld [vmem:[%s4766_s13 + $0x8] sm:$0x1]  ;;  %v767_v18 = vld [vmem:[%s4766_s13 + $0x10] sm:$0x1]  ;;  %vm668_vm6 = vcmask 1047559  }
  0x31   : > { %v768_v20 = vld [vmem:[%s4766_s13 + $0x18] sm:$0x1]  ;;  %v769_v21 = vld [vmem:[%s4766_s13 + $0x20] sm:$0x1]  ;;  %v770_v22 = vld [vmem:[%s4766_s13 + $0x28] sm:$0x1] }
  0x32   : > { %s4273_s15 = sshll.u32 %s4774_s14, 6  ;;  %v771_v25 = vld [vmem:[%s4766_s13 + $0x30] sm:$0x1]  ;;  %v786_v26 = vrot.slane %v766_v17, 7  ;;  %v788_v27 = vrot.slane %v767_v18, 6  ;;  %v790_v30 = vrot.slane %v768_v20, 5 }
  0x33   : > { %v772_v29 = vld [vmem:[%s4766_s13 + $0x38] sm:$0x1]  ;;  %v792_v31 = vrot.slane %v769_v21, 4  ;;  %v794_v34 = vrot.slane %v770_v22, 3  ;;  %v796_v35 = vrot.slane %v771_v25, 2  ;;  %vm801_vm7 = vcmask 64512  }
  0x34   : > { %s4782_s16 = scalar_lea.vmem %s5960_s2, %s4273_s15  ;;  %v787_v33 = vsel %vm650_vm0, %v786_v26, %v765_v16  ;;  %v798_v44 = vrot.slane %v772_v29, 1  ;;  %s5961_s0 = sld [smem:[#allocation13_spill]]  ;;  %v4827_v48 = vld [vmem:[%s5923_s7] sm:$0xf]  ;;  %vm5941_vm8 = vcmask 130048   ;;  %vm715_vm9 = vcmask 1043456  }
  0x35   : > { %v620_v1 = vld [vmem:[%s4782_s16 + $0x20] sm:$0x1]  ;;  %v621_v2 = vld [vmem:[%s4782_s16 + $0x24] sm:$0x1]  ;;  %v622_v3 = vld [vmem:[%s4782_s16 + $0x28] sm:$0x1]  ;;  %v789_v38 = vsel %vm653_vm1, %v788_v27, %v787_v33 }
  0x36   : > { %v623_v4 = vld [vmem:[%s4782_s16 + $0x2c] sm:$0x1]  ;;  %v624_v5 = vld [vmem:[%s4782_s16 + $0x30] sm:$0x1]  ;;  %v625_v6 = vld [vmem:[%s4782_s16 + $0x34] sm:$0x1]  ;;  %v791_v43 = vsel %vm656_vm2, %v790_v30, %v789_v38 }
  0x37   : > { %v626_v7 = vld [vmem:[%s4782_s16 + $0x38] sm:$0x1]  ;;  %v670_v8 = vrot.slane %v621_v2, 7  ;;  %v672_v9 = vrot.slane %v622_v3, 6  ;;  %v627_v10 = vld [vmem:[%s4782_s16 + $0x3c] sm:$0x1]  ;;  %v793_v47 = vsel %vm659_vm3, %v792_v31, %v791_v43 }
  0x38   : > { %v674_v11 = vrot.slane %v623_v4, 5  ;;  %v676_v12 = vrot.slane %v624_v5, 4  ;;  %v678_v13 = vrot.slane %v625_v6, 3  ;;  %v680_v14 = vrot.slane %v626_v7, 2  ;;  %v613_v36 = vld [vmem:[%s4782_s16 + $0x4] sm:$0x1] }
  0x39   : > { %v671_v15 = vsel %vm650_vm0, %v670_v8, %v620_v1  ;;  %v682_v24 = vrot.slane %v627_v10, 1  ;;  %v614_v39 = vld [vmem:[%s4782_s16 + $0x8] sm:$0x1]  ;;  %v615_v40 = vld [vmem:[%s4782_s16 + $0xc] sm:$0x1]  ;;  %v649_v50 = vrot.slane %v613_v36, 7  ;;  %v795_v53 = vsel %vm662_vm4, %v794_v34, %v793_v47 }
  0x3a   : > { %v673_v19 = vsel %vm653_vm1, %v672_v9, %v671_v15  ;;  %v616_v41 = vld [vmem:[%s4782_s16 + $0x10] sm:$0x1]  ;;  %v612_v45 = vld [vmem:[%s4782_s16] sm:$0x1]  ;;  %v617_v46 = vld [vmem:[%s4782_s16 + $0x14] sm:$0x1]  ;;  %s4821_s24 = scalar_lea.vmem %s5961_s0, %s4273_s15  ;;  %v797_v57 = vsel %vm665_vm5, %v796_v35, %v795_v53 }
  0x3b   : > { %v675_v23 = vsel %vm656_vm2, %v674_v11, %v673_v19  ;;  %v618_v49 = vld [vmem:[%s4782_s16 + $0x18] sm:$0x1]  ;;  %v652_v51 = vrot.slane %v614_v39, 6  ;;  %v655_v52 = vrot.slane %v615_v40, 5  ;;  %v619_v54 = vld [vmem:[%s4782_s16 + $0x1c] sm:$0x1]  ;;  %v651_v58 = vsel %vm650_vm0, %v649_v50, %v612_v45 }
  0x3c   : > { %v677_v28 = vsel %vm659_vm3, %v676_v12, %v675_v23  ;;  %v658_v55 = vrot.slane %v616_v41, 4  ;;  %v605_v56 = vld [vmem:[%s5926_s10] sm:$0xf]  ;;  %v661_v59 = vrot.slane %v617_v46, 3  ;;  %v876_v61 = vld [vmem:[%s4821_s24 + $0x10] sm:$0x1]  ;;  %v799_v62 = vsel %vm668_vm6, %v798_v44, %v797_v57 }
  0x3d   : > { %v679_v32 = vsel %vm662_vm4, %v678_v13, %v677_v28  ;;  %630 = vperm.xlu0 %4343, %v605_v56   ;;  %v875_v60 = vld [vmem:[%s4821_s24] sm:$0x1]  ;;  %v654_v63 = vsel %vm653_vm1, %v652_v51, %v651_v58  ;;  %v664_v0 = vrot.slane %v618_v49, 2  ;;  %v878_v2 = vld [vmem:[%s4821_s24 + $0x30] sm:$0x1]  ;;  %v888_v3 = vrot.slane %v876_v61, 7  ;;  %820 = vmatpush.msra.mxu3 %v799_v62 }
  0x3e   : > { %v681_v37 = vsel %vm665_vm5, %v680_v14, %v679_v32  ;;  %v877_v1 = vld [vmem:[%s4821_s24 + $0x20] sm:$0x1]  ;;  %v657_v4 = vsel %vm656_vm2, %v655_v52, %v654_v63  ;;  %v667_v5 = vrot.slane %v619_v54, 1  ;;  %v892_v7 = vrot.slane %v878_v2, 5  ;;  %4156 = vmatmul.msk.f32.vlgmr.msra.gmra.mxu3 %vm801_vm7, %v4827_v48  ;;  %v1146_v11 = vld [vmem:[%s4766_s13 + $0x1] sm:$0x1] }
  0x3f   : > { %v683_v42 = vsel %vm668_vm6, %v682_v24, %v681_v37  ;;  %v890_v6 = vrot.slane %v877_v1, 6  ;;  %v660_v8 = vsel %vm659_vm3, %v658_v55, %v657_v4  ;;  %v4850_v9 = vld [vmem:[%s5925_s9] sm:$0xf]  ;;  %v889_v10 = vsel %vm650_vm0, %v888_v3, %v875_v60  ;;  %v1147_v12 = vld [vmem:[%s4766_s13 + $0x9] sm:$0x1]  ;;  %s5962_s30 = sld [smem:[#allocation19_spill]] }
  0x40   : > { %704 = vmatpush.msra.mxu0 %v683_v42  ;;  %v1148_v13 = vld [vmem:[%s4766_s13 + $0x11] sm:$0x1]  ;;  %v663_v14 = vsel %vm662_vm4, %v661_v59, %v660_v8  ;;  %v1149_v16 = vld [vmem:[%s4766_s13 + $0x19] sm:$0x1]  ;;  %v1150_v17 = vld [vmem:[%s4766_s13 + $0x21] sm:$0x1] }
  0x41   : > { %v891_v15 = vsel %vm653_vm1, %v890_v6, %v889_v10  ;;  %v1151_v18 = vld [vmem:[%s4766_s13 + $0x29] sm:$0x1]  ;;  %v666_v19 = vsel %vm665_vm5, %v664_v0, %v663_v14  ;;  %v603_v21 = vld [vmem:[%s5924_s8] sm:$0xf]  ;;  %v1152_v22 = vld [vmem:[%s4766_s13 + $0x31] sm:$0x1] }
  0x42   : > { %v893_v20 = vsel %vm656_vm2, %v892_v7, %v891_v15  ;;  %v1162_v23 = vrot.slane %v1147_v12, 7  ;;  %v1164_v24 = vrot.slane %v1148_v13, 6  ;;  %v669_v25 = vsel %vm668_vm6, %v667_v5, %v666_v19  ;;  %v1153_v26 = vld [vmem:[%s4766_s13 + $0x39] sm:$0x1]  ;;  %v601_v29 = vld [vmem:[%s5922_s6] sm:$0xf] }
  0x43   : > { %4160 = vmatpush.msk.msrb.mxu3 %vm715_vm9, %v893_v20  ;;  %v1166_v27 = vrot.slane %v1149_v16, 5  ;;  %v1168_v28 = vrot.slane %v1150_v17, 4  ;;  %705 = vmatpush.msra.mxu0 %v669_v25  ;;  %v1170_v31 = vrot.slane %v1151_v18, 3  ;;  %v4879_v32 = vld [vmem:[%s5921_s5] sm:$0xf]  ;;  %vm711_vm10 = vcmask 31744  }
  0x44   : > { %v1163_v30 = vsel %vm650_vm0, %v1162_v23, %v1146_v11  ;;  %881 = vperm.xlu1 %4344, %v601_v29   ;;  %4151 = vmatmul.msk.f32.vlgmr.msra.gmra.mxu0 %vm5941_vm8, %v4850_v9  ;;  %v1172_v34 = vrot.slane %v1152_v22, 2  ;;  %v1174_v36 = vrot.slane %v1153_v26, 1  ;;  %v4894_v41 = vld [vmem:[%s5920_s4] sm:$0xf]  ;;  %v1020_v43 = vld [vmem:[%s4821_s24 + $0x11] sm:$0x1] }
  0x45   : > { %775 = vperm.xlu0 %4343, %v603_v21   ;;  %v1165_v33 = vsel %vm653_vm1, %v1164_v24, %v1163_v30  ;;  %4152 = vmatpush.msk.msra.mxu1 %vm715_vm9, %v4894_v41  ;;  %v4901_v42 = vld [vmem:[%s5919_s3] sm:$0xff]  ;;  %v1027_v46 = vrot.slane %v1020_v43, 7  ;;  %v1022_v50 = vld [vmem:[%s4821_s24 + $0x31] sm:$0x1]  ;;  %v1372_v58 = vld [vmem:[%s4821_s24 + $0x13] sm:$0x1] }
  0x46   : > { %v1167_v35 = vsel %vm656_vm2, %v1166_v27, %v1165_v33  ;;  %4161 = vmatmul.msk.f32.vlgmr.msrb.gmra.mxu3 %vm711_vm10, %v4879_v32  ;;  %v609_v44 = vld [vmem:[%s5962_s30] sm:$0x7]  ;;  %v1031_v53 = vrot.slane %v1022_v50, 5  ;;  %v1373_v61 = vld [vmem:[%s4821_s24 + $0x23] sm:$0x1]  ;;  %v1379_v62 = vrot.slane %v1372_v58, 7 }
  0x47   : > { %v1169_v37 = vsel %vm659_vm3, %v1168_v28, %v1167_v35  ;;  %844 = vmatpush.msrb.mxu1 %v4901_v42  ;;  %v1021_v45 = vld [vmem:[%s4821_s24 + $0x21] sm:$0x1]  ;;  %v1371_v63 = vld [vmem:[%s4821_s24 + $0x3] sm:$0x1]  ;;  %v1374_v3 = vld [vmem:[%s4821_s24 + $0x33] sm:$0x1] }
  0x48   : > { %v1171_v38 = vsel %vm662_vm4, %v1170_v31, %v1169_v37  ;;  %v1019_v47 = vld [vmem:[%s4821_s24 + $0x1] sm:$0x1]  ;;  %v1029_v51 = vrot.slane %v1021_v45, 6  ;;  %v1381_v4 = vrot.slane %v1373_v61, 6  ;;  %v1380_v5 = vsel %vm650_vm0, %v1379_v62, %v1371_v63  ;;  %s5963_s25 = sld [smem:[#allocation16_spill]]  ;;  %s5118_s30 = scalar_lea.vmem [#allocation5], %s4145_s11 }
  0x49   : > { %v1173_v39 = vsel %vm665_vm5, %v1172_v34, %v1171_v38  ;;  %v1028_v52 = vsel %vm650_vm0, %v1027_v46, %v1019_v47  ;;  %v1383_v8 = vrot.slane %v1374_v3, 5  ;;  %v1507_v18 = vld [vmem:[%s4782_s16 + $0x25] sm:$0x1]  ;;  %s5964_s14 = sld [smem:[#allocation18_spill]]  ;;  %v1508_v21 = vld [vmem:[%s4782_s16 + $0x29] sm:$0x1] }
  0x4a   : > { %v1175_v40 = vsel %vm668_vm6, %v1174_v36, %v1173_v39  ;;  %v1030_v55 = vsel %vm653_vm1, %v1029_v51, %v1028_v52  ;;  %v1382_v11 = vsel %vm653_vm1, %v1381_v4, %v1380_v5  ;;  %v1499_v19 = vld [vmem:[%s4782_s16 + $0x5] sm:$0x1]  ;;  %v1544_v22 = vrot.slane %v1507_v18, 7  ;;  %v1506_v24 = vld [vmem:[%s4782_s16 + $0x21] sm:$0x1]  ;;  %s5965_s28 = sld [smem:[#allocation17_spill]] }
  0x4b   : > { %1192 = vmatpush.msra.mxu3 %v1175_v40  ;;  %v1032_v60 = vsel %vm656_vm2, %v1031_v53, %v1030_v55  ;;  %v1384_v14 = vsel %vm656_vm2, %v1383_v8, %v1382_v11  ;;  %v1500_v25 = vld [vmem:[%s4782_s16 + $0x9] sm:$0x1]  ;;  %v1530_v26 = vrot.slane %v1499_v19, 7  ;;  %v1509_v27 = vld [vmem:[%s4782_s16 + $0x2d] sm:$0x1]  ;;  %v1546_v28 = vrot.slane %v1508_v21, 6 }
  0x4c   : > { %949 = vperm.xlu1 %4344, %v609_v44   ;;  %v1498_v29 = vld [vmem:[%s4782_s16 + $0x1] sm:$0x1]  ;;  %v1545_v30 = vsel %vm650_vm0, %v1544_v22, %v1506_v24  ;;  %v1501_v31 = vld [vmem:[%s4782_s16 + $0xd] sm:$0x1]  ;;  %v1532_v33 = vrot.slane %v1500_v25, 6  ;;  %v1548_v35 = vrot.slane %v1509_v27, 5 }
  0x4d   : > { %v1510_v34 = vld [vmem:[%s4782_s16 + $0x31] sm:$0x1]  ;;  %v1531_v36 = vsel %vm650_vm0, %v1530_v26, %v1498_v29  ;;  %v1628_v37 = vld [vmem:[%s4766_s13 + $0xa] sm:$0x1]  ;;  %v1245_v38 = vld [vmem:[%s4821_s24 + $0x12] sm:$0x1]  ;;  %v1547_v39 = vsel %vm653_vm1, %v1546_v28, %v1545_v30 }
  0x4e   : > { %4168 = vmatmul.msk.f32.vlgmr.msra.gmra.mxu3 %vm801_vm7, %v4827_v48  ;;  %v4937_v13 = vld [vmem:[%s5963_s25] sm:$0x7]  ;;  %v1502_v43 = vld [vmem:[%s4782_s16 + $0x11] sm:$0x1]  ;;  %v1534_v44 = vrot.slane %v1501_v31, 5  ;;  %v1550_v47 = vrot.slane %v1510_v34, 4  ;;  %v1533_v50 = vsel %vm653_vm1, %v1532_v33, %v1531_v36  ;;  %v1549_v55 = vsel %vm656_vm2, %v1548_v35, %v1547_v39 }
  0x4f   : > { %v4959_v20 = vld [vmem:[%s5964_s14] sm:$0x7]  ;;  %v1511_v46 = vld [vmem:[%s4782_s16 + $0x35] sm:$0x1]  ;;  %v1629_v51 = vld [vmem:[%s4766_s13 + $0x12] sm:$0x1] }
  0x50   : > { %v4982_v40 = vld [vmem:[%s5965_s28] sm:$0x7]  ;;  %v1643_v52 = vrot.slane %v1628_v37, 7  ;;  %v1512_v61 = vld [vmem:[%s4782_s16 + $0x39] sm:$0x1]  ;;  %v1552_v62 = vrot.slane %v1511_v46, 3  ;;  %v1535_v63 = vsel %vm656_vm2, %v1534_v44, %v1533_v50  ;;  %v1551_v5 = vsel %vm659_vm3, %v1550_v47, %v1549_v55 }
  0x51   : > { %v1246_v53 = vld [vmem:[%s4821_s24 + $0x22] sm:$0x1]  ;;  %v1645_v3 = vrot.slane %v1629_v51, 6  ;;  %v1247_v8 = vld [vmem:[%s4821_s24 + $0x32] sm:$0x1]  ;;  %vm1014_vm15 = vcmask 122880  }
  0x52   : > { %v1244_v58 = vld [vmem:[%s4821_s24 + $0x2] sm:$0x1]  ;;  %v1254_v4 = vrot.slane %v1246_v53, 6  ;;  %v1504_v11 = vld [vmem:[%s4782_s16 + $0x19] sm:$0x1]  ;;  %v1553_v21 = vsel %vm662_vm4, %v1552_v62, %v1551_v5  ;;  %v1256_v26 = vrot.slane %v1247_v8, 5 }
  0x53   : > { %v1631_v18 = vld [vmem:[%s4766_s13 + $0x22] sm:$0x1]  ;;  %v1505_v27 = vld [vmem:[%s4782_s16 + $0x1d] sm:$0x1]  ;;  %v1540_v28 = vrot.slane %v1504_v11, 2  ;;  %s4275_s27 = sshll.u32 %s4591_s21, 6 }
  0x54   : > { %v1632_v33 = vld [vmem:[%s4766_s13 + $0x2a] sm:$0x1]  ;;  %v1649_v34 = vrot.slane %v1631_v18, 4  ;;  %v1542_v39 = vrot.slane %v1505_v27, 1  ;;  %v1633_v46 = vld [vmem:[%s4766_s13 + $0x32] sm:$0x1] }
  0x55   : > { %v1651_v47 = vrot.slane %v1632_v33, 3  ;;  %v1634_v53 = vld [vmem:[%s4766_s13 + $0x3a] sm:$0x1]  ;;  %v1853_v5 = vld [vmem:[%s4821_s24 + $0x15] sm:$0x1]  ;;  %s5968_s15 = sld [smem:[#allocation20_spill]] }
  0x56   : > { %v1854_v8 = vld [vmem:[%s4821_s24 + $0x25] sm:$0x1]  ;;  %s4012_s21 = sshll.u32 %s5118_s30, 4  ;;  %s4013_s21 = int_to_ptr.vmem [resolvable:$true] %s4012_s21 }
  0x5b   : > { %s4011_s26 = scalar_lea.hbm %s5968_s15, %s4275_s27 }
  0x5c   : > { %s4014_s17 = sshll.u32 %s4011_s26, 4  ;;  %s4015_s17 = int_to_ptr.hbm [resolvable:$true] %s4014_s17 }
  0xaf   : > { %v4910_v49 = vpop.permute.xlu0 %630 }
  0xb6   : > { %v4925_v2 = vpop.permute.xlu1 %881 }
  0xb7   : > { %v4921_v0 = vpop.permute.xlu0 %775 }
  0xc1   : > { %v707_v54 = vpop.f32.mrf.mxu0  ;;  %v822_v57 = vpop.f32.mrf.mxu3 }
  0xc2   : > { %v708_v56 = vadd.f32 %v707_v54, %v4910_v49  ;;  %v823_v1 = vadd.f32 %v822_v57, %v4921_v0  ;;  %v1252_v54 = vrot.slane %v1245_v38, 7 }
  0xc4   : > { %v710_v59 = vmax.f32 %v708_v56, 0.0  ;;  %v825_v10 = vmax.f32 %v823_v1, 0.0  ;;  %v1627_v56 = vld [vmem:[%s4766_s13 + $0x2] sm:$0x1]  ;;  %v1630_v1 = vld [vmem:[%s4766_s13 + $0x1a] sm:$0x1] }
  0xc5   : > { %v1647_v19 = vrot.slane %v1630_v1, 5 }
  0xc6   : > { %4153 = vmatmul.msk.f32.vlgmr.msra.gmra.mxu1 %vm711_vm10, %v710_v59  ;;  %v1503_v59 = vld [vmem:[%s4782_s16 + $0x15] sm:$0x1] }
  0xc7   : > { %4164 = vmatpush.msk.msra.mxu1 %vm715_vm9, %v1032_v60  ;;  %v1536_v60 = vrot.slane %v1502_v43, 4 }
  0xc9   : > { %v916_v6 = vpop.f32.mrf.mxu3 }
  0xca   : > { %v4930_v7 = vadd.f32 %v916_v6, %v4925_v2  ;;  %v1644_v6 = vsel %vm650_vm0, %v1643_v52, %v1627_v56 }
  0xcb   : > { %v1646_v22 = vsel %vm653_vm1, %v1645_v3, %v1644_v6  ;;  %v5067_v6 = vpop.permute.xlu1 %949 }
  0xcc   : > { %v919_v12 = vmax.f32 %v4930_v7, 0.0  ;;  %v1648_v37 = vsel %vm656_vm2, %v1647_v19, %v1646_v22 }
  0xcd   : > { %v1650_v51 = vsel %vm659_vm3, %v1649_v34, %v1648_v37 }
  0xce   : > { %4157 = vmatmul.msk.f32.vlgmr.msrb.gmra.mxu1 %vm801_vm7, %v825_v10  ;;  %4162 = vmatpush.msk.msrb.mxu0 %vm715_vm9, %v919_v12  ;;  %v1253_v10 = vsel %vm650_vm0, %v1252_v54, %v1244_v58  ;;  %v1653_v54 = vrot.slane %v1633_v46, 2  ;;  %v1652_v55 = vsel %vm662_vm4, %v1651_v47, %v1650_v51  ;;  %v1655_v58 = vrot.slane %v1634_v53, 1 }
  0xcf   : > { %4163 = vmatmul.msk.f32.vlgmr.msrb.gmra.mxu0 %vm711_vm10, %v4937_v13  ;;  %v1255_v25 = vsel %vm653_vm1, %v1254_v4, %v1253_v10  ;;  %v1860_v10 = vrot.slane %v1853_v5, 7 }
  0xd0   : > { %1216 = vmatpush.msra.mxu0 %v4901_v42  ;;  %v1257_v43 = vsel %vm656_vm2, %v1256_v26, %v1255_v25 }
  0xd1   : > { %v1194_v15 = vpop.f32.mrf.mxu3 }
  0xd2   : > { %4176 = vmatpush.msk.msrb.mxu0 %vm715_vm9, %v1384_v14  ;;  %v1195_v16 = vadd.f32 %v1194_v15, %v4921_v0  ;;  %v1538_v14 = vrot.slane %v1503_v59, 3  ;;  %v1513_v15 = vld [vmem:[%s4782_s16 + $0x3d] sm:$0x1] }
  0xd3   : > { %v1556_v30 = vrot.slane %v1513_v15, 1  ;;  %v1855_v15 = vld [vmem:[%s4821_s24 + $0x35] sm:$0x1] }
  0xd4   : > { %v1197_v17 = vmax.f32 %v1195_v16, 0.0  ;;  %v1554_v16 = vrot.slane %v1512_v61, 2 }
  0xd6   : > { %4165 = vmatmul.msk.f32.vlgmr.msra.gmra.mxu1 %vm711_vm10, %v4879_v32  ;;  %v1555_v36 = vsel %vm665_vm5, %v1554_v16, %v1553_v21 }
  0xd7   : > { %4169 = vmatmul.msk.f32.vlgmr.msra.gmra.mxu0 %vm801_vm7, %v1197_v17  ;;  %v1537_v17 = vsel %vm659_vm3, %v1536_v60, %v1535_v63  ;;  %v1557_v50 = vsel %vm668_vm6, %v1556_v30, %v1555_v36  ;;  %v1654_v60 = vsel %vm665_vm5, %v1653_v54, %v1652_v55 }
  0xd8   : > { %v1539_v31 = vsel %vm662_vm4, %v1538_v14, %v1537_v17  ;;  %v1656_v62 = vsel %vm668_vm6, %v1655_v58, %v1654_v60  ;;  %v1852_v14 = vld [vmem:[%s4821_s24 + $0x5] sm:$0x1]  ;;  %v1864_v17 = vrot.slane %v1855_v15, 5 }
  0xd9   : > { %v1541_v44 = vsel %vm665_vm5, %v1540_v28, %v1539_v31 }
  0xda   : > { %v1543_v52 = vsel %vm668_vm6, %v1542_v39, %v1541_v44 }
  0xdf   : > { %4177 = vmatmul.msk.f32.vlgmr.msrb.gmra.mxu0 %vm711_vm10, %v4879_v32 }
 0x143   : > { %v4962_v23 = vpop.f32.mrf.mxu1 }
 0x144   : > { %4154 = vmatpush.msk.msra.mxu2 %vm715_vm9, %v4962_v23 }
 0x145   : > { %4155 = vmatmul.msk.f32.vlgmr.msra.gmra.mxu2 %vm711_vm10, %v4959_v20 }
 0x14b   : > { %v4985_v45 = vpop.f32.mrf.mxu1 }
 0x14c   : > { %4158 = vmatpush.msk.msrb.mxu2 %vm715_vm9, %v4985_v45  ;;  %v4997_v57 = vpop.f32.mrf.mxu0 }
 0x14d   : > { %4159 = vmatmul.msk.f32.vlgmr.msrb.gmra.mxu2 %vm711_vm10, %v4982_v40 }
 0x153   : > { %v1052_v24 = vpop.f32.mrf.mxu1 }
 0x154   : > { %v5017_v29 = vadd.f32 %v1052_v24, %v4925_v2  ;;  %v5021_v35 = vpop.f32.mrf.mxu0 }
 0x155   : > { %4170 = vmatpush.msk.msrb.mxu1 %vm715_vm9, %v5021_v35 }
 0x156   : > { %v1055_v38 = vmax.f32 %v5017_v29, 0.0  ;;  %4171 = vmatmul.msk.f32.vlgmr.msrb.gmra.mxu1 %vm711_vm10, %v4982_v40 }
 0x158   : > { %4166 = vmatpush.msk.msra.mxu2 %vm715_vm9, %v1055_v38 }
 0x159   : > { %4167 = vmatmul.msk.f32.vlgmr.msra.gmra.mxu2 %vm711_vm10, %v4937_v13 }
 0x15a   : > { %4172 = vmatpush.msk.msrb.mxu2 %vm715_vm9, %v1257_v43 }
 0x15c   : > { %1574 = vmatpush.msra.mxu2 %v1557_v50  ;;  %v1404_v56 = vpop.f32.mrf.mxu0 }
 0x15d   : > { %v5045_v59 = vadd.f32 %v1404_v56, %v4925_v2 }
 0x15e   : > { %1575 = vmatpush.msra.mxu2 %v1543_v52 }
 0x15f   : > { %v1407_v61 = vmax.f32 %v5045_v59, 0.0 }
 0x161   : > { %4173 = vmatmul.msk.f32.vlgmr.msrb.gmra.mxu2 %vm711_vm10, %v4879_v32  ;;  %4178 = vmatpush.msk.msra.mxu1 %vm715_vm9, %v1407_v61 }
 0x162   : > { %1697 = vmatpush.msrb.mxu2 %v4901_v42  ;;  %4179 = vmatmul.msk.f32.vlgmr.msra.gmra.mxu1 %vm711_vm10, %v4937_v13 }
 0x163   : > { %1673 = vmatpush.msrb.mxu1 %v1656_v62 }
 0x169   : > { %4180 = vmatmul.msk.f32.vlgmr.msra.gmra.mxu2 %vm5941_vm8, %v4850_v9  ;;  %v1862_v9 = vrot.slane %v1854_v8, 6 }
 0x16a   : > { %4185 = vmatmul.msk.f32.vlgmr.msrb.gmra.mxu1 %vm801_vm7, %v4827_v48  ;;  %v1861_v48 = vsel %vm650_vm0, %v1860_v10, %v1852_v14 }
 0x1c8   : > { %v5062_v63 = vpop.f32.mrf.mxu2 }
 0x1d0   : > { %v872_v1 = vpop.f32.mrf.mxu2 }
 0x1d1   : > { %v944_v3 = vadd.f32 %v4997_v57, %v872_v1  ;;  %v1863_v57 = vsel %vm653_vm1, %v1862_v9, %v1861_v48 }
 0x1d2   : > { %v1865_v19 = vsel %vm656_vm2, %v1864_v17, %v1863_v57 }
 0x1d3   : > { %v946_v4 = vadd.f32 %v944_v3, %v5062_v63  ;;  %v5073_v16 = vpop.f32.mrf.mxu1  ;;  %4193 = vmatpush.msk.msra.mxu2 %vm715_vm9, %v1865_v19 }
 0x1d5   : > { %v952_v11 = vadd.f32 %v5067_v6, %v946_v4 }
 0x1d7   : > { %v954_v18 = vrot.slane %v952_v11, 1 }
 0x1d9   : > { %v956_v21 = vmax.f32 %v952_v11, %v954_v18 }
 0x1db   : > { %v958_v22 = vrot.slane %v956_v21, 1 }
 0x1dc   : > { %v1076_v24 = vpop.f32.mrf.mxu2 }
 0x1dd   : > { %v960_v25 = vmax.f32 %v952_v11, %v958_v22  ;;  %v1077_v26 = vadd.f32 %v1076_v24, %v872_v1 }
 0x1df   : > { %v961_v27 = vsub.f32 %v952_v11, %v960_v25  ;;  %v965_v28 = vrot.slane %v960_v25, 7  ;;  %v970_v30 = vrot.slane %v960_v25, 6  ;;  %v1079_v31 = vadd.f32 %v1077_v26, %v5062_v63  ;;  %v1428_v33 = vpop.f32.mrf.mxu1 }
 0x1e0   : > { %v1429_v43 = vadd.f32 %v1428_v33, %v5073_v16 }
 0x1e1   : > { %v967_v34 = vsub.f32 %v952_v11, %v965_v28  ;;  %v972_v36 = vsub.f32 %v952_v11, %v970_v30  ;;  %v1080_v37 = vadd.f32 %v1079_v31, %v5067_v6  ;;  %v962_v39 = vmul.f32 1.442695, %v961_v27 }
 0x1e2   : > { %v1431_v50 = vadd.f32 %v1429_v43, %v5062_v63 }
 0x1e3   : > { %v968_v44 = vmul.f32 1.442695, %v967_v34  ;;  %v973_v46 = vmul.f32 1.442695, %v972_v36  ;;  %v1082_v47 = vrot.slane %v1080_v37, 1 }
 0x1e4   : > { %v1277_v51 = vpop.f32.mrf.mxu2  ;;  %v1432_v54 = vadd.f32 %v1431_v50, %v5067_v6 }
 0x1e5   : > { %4345 = vpow2.f32 %v968_v44  ;;  %v1084_v52 = vmax.f32 %v1080_v37, %v1082_v47  ;;  %v5084_v53 = vadd.f32 %v1277_v51, %v4925_v2 }
 0x1e6   : > { %4347 = vpow2.f32 %v973_v46  ;;  %v1434_v58 = vrot.slane %v1432_v54, 1 }
 0x1e7   : > { %4349 = vpow2.f32 %v962_v39  ;;  %v1086_v55 = vrot.slane %v1084_v52, 1  ;;  %v1280_v56 = vmax.f32 %v5084_v53, 0.0  ;;  %v1675_v60 = vpop.f32.mrf.mxu1 }
 0x1e8   : > { %v1676_v1 = vadd.f32 %v1675_v60, %v4921_v0  ;;  %v1436_v3 = vmax.f32 %v1432_v54, %v1434_v58 }
 0x1e9   : > { %v1088_v62 = vmax.f32 %v1080_v37, %v1086_v55  ;;  %4174 = vmatpush.msk.msrb.mxu3 %vm715_vm9, %v1280_v56 }
 0x1ea   : > { %4175 = vmatmul.msk.f32.vlgmr.msrb.gmra.mxu3 %vm711_vm10, %v4937_v13  ;;  %v1678_v11 = vmax.f32 %v1676_v1, 0.0  ;;  %v1438_v9 = vrot.slane %v1436_v3, 1 }
 0x1eb   : > { %v4346_v4 = vpop.eup %4345  ;;  %v1089_v5 = vsub.f32 %v1080_v37, %v1088_v62  ;;  %v1093_v8 = vrot.slane %v1088_v62, 7  ;;  %v1098_v10 = vrot.slane %v1088_v62, 6  ;;  %4181 = vmatpush.msk.msra.mxu3 %vm715_vm9, %v4894_v41 }
 0x1ec   : > { %v5096_v14 = vpop.eup %4347  ;;  %v976_v15 = vrot.slane %v4346_v4, 1  ;;  %v1577_v48 = vpop.f32.mrf.mxu2  ;;  %4186 = vmatmul.msk.f32.vlgmr.msrb.gmra.mxu2 %vm801_vm7, %v1678_v11  ;;  %v1440_v24 = vmax.f32 %v1432_v54, %v1438_v9  ;;  %v999_v47 = vperm.slane %v4346_v4, 1 }
 0x1ed   : > { %v4350_v17 = vpop.eup %4349  ;;  %v1090_v18 = vmul.f32 1.442695, %v1089_v5  ;;  %v1095_v57 = vsub.f32 %v1080_v37, %v1093_v8  ;;  %v980_v21 = vrot.slane %v5096_v14, 2  ;;  %v1100_v22 = vsub.f32 %v1080_v37, %v1098_v10 }
 0x1ee   : > { %v978_v19 = vadd.f32 %v4350_v17, %v976_v15  ;;  %v1578_v26 = vadd.f32 %v1577_v48, %v4910_v49  ;;  %v1445_v28 = vrot.slane %v1440_v24, 7  ;;  %v1450_v30 = vrot.slane %v1440_v24, 6 }
 0x1ef   : > { %v1096_v25 = vmul.f32 1.442695, %v1095_v57  ;;  %4351 = vpow2.f32 %v1090_v18  ;;  %v1101_v41 = vmul.f32 1.442695, %v1100_v22  ;;  %v1441_v33 = vsub.f32 %v1432_v54, %v1440_v24 }
 0x1f0   : > { %v982_v27 = vadd.f32 %v980_v21, %v978_v19  ;;  %v1580_v31 = vmax.f32 %v1578_v26, 0.0  ;;  %v1447_v34 = vsub.f32 %v1432_v54, %v1445_v28  ;;  %v1452_v36 = vsub.f32 %v1432_v54, %v1450_v30 }
 0x1f1   : > { %4353 = vpow2.f32 %v1096_v25  ;;  %v1442_v43 = vmul.f32 1.442695, %v1441_v33  ;;  %v997_v58 = vperm.slane %v4350_v17, 0  ;;  %v1000_v1 = vmul.f32 %v999_v47, %v4985_v45 }
 0x1f2   : > { %4355 = vrcp.f32 %v982_v27  ;;  %4182 = vmatmul.msk.f32.vlgmr.msra.gmra.mxu3 %vm711_vm10, %v1580_v31  ;;  %v1448_v39 = vmul.f32 1.442695, %v1447_v34  ;;  %v1453_v44 = vmul.f32 1.442695, %v1452_v36  ;;  %v994_v3 = vand.u32 2147483648, %v982_v27 }
 0x1f3   : > { %4357 = vpow2.f32 %v1101_v41  ;;  %v1002_v5 = vperm.slane %v5096_v14, 2  ;;  %v992_v11 = vand.u32 2147483647, %v982_v27  ;;  %v998_v15 = vmul.f32 %v997_v58, %v919_v12 }
 0x1f4   : > { %4194 = vmatmul.msk.f32.vlgmr.msra.gmra.mxu2 %vm711_vm10, %v4879_v32  ;;  %4359 = vpow2.f32 %v1448_v39  ;;  %vm988_vm12 = vweird.f32 %v982_v27  ;;  %v995_v19 = vor.u32 1.1754944e-38, %v994_v3 }
 0x1f5   : > { %v4352_v37 = vpop.eup %4351  ;;  %4361 = vpow2.f32 %v1453_v44  ;;  %v1001_v17 = vadd.f32 %v1000_v1, %v998_v15  ;;  %v1003_v14 = vmul.f32 %v1002_v5, %v4962_v23  ;;  %vm993_vm14 = vcmp.eq.f32.partialorder %v992_v11, 8.507059e+37 }
 0x1f6   : > { %4363 = vpow2.f32 %v1442_v43 }
 0x1f7   : > { %v4354_v46 = vpop.eup %4353  ;;  %v1004_v25 = vadd.f32 %v1003_v14, %v1001_v17 }
 0x1f8   : > { %v4356_v50 = vpop.eup %4355  ;;  %v1104_v51 = vrot.slane %v4354_v46, 1  ;;  %v1127_v12 = vperm.slane %v4354_v46, 1 }
 0x1f9   : > { %v5104_v52 = vpop.eup %4357  ;;  %v984_v55 = vmul.f32 %v4356_v50, %v982_v27  ;;  %vm989_vm11 = vweird.f32 %v4356_v50  ;;  %v1125_v27 = vperm.slane %v4352_v37, 0 }
 0x1fa   : > { %v1106_v60 = vadd.f32 %v4352_v37, %v1104_v51  ;;  %v1108_v54 = vrot.slane %v5104_v52, 2  ;;  %v4360_v4 = vpop.eup %4359  ;;  %vm990_vm13 = vmor %vm988_vm12, %vm989_vm11  ;;  %v1128_v33 = vmul.f32 %v1127_v12, %v4985_v45  ;;  %v1130_v47 = vperm.slane %v5104_v52, 2 }
 0x1fb   : > { %v985_v62 = vsub.f32 1.0, %v984_v55  ;;  %v5111_v9 = vpop.eup %4361  ;;  %v1456_v18 = vrot.slane %v4360_v4, 1  ;;  %v1126_v37 = vmul.f32 %v1125_v27, %v1055_v38  ;;  %v1981_v27 = vld [vmem:[%s4766_s13 + $0x13] sm:$0x1] }
 0x1fc   : > { %v1110_v8 = vadd.f32 %v1108_v54, %v1106_v60  ;;  %v4364_v57 = vpop.eup %4363  ;;  %v1460_v24 = vrot.slane %v5111_v9, 2 }
 0x1fd   : > { %v986_v10 = vmul.f32 %v4356_v50, %v985_v62  ;;  %v1458_v22 = vadd.f32 %v4364_v57, %v1456_v18  ;;  %v1129_v58 = vadd.f32 %v1128_v33, %v1126_v37  ;;  %v1477_v60 = vperm.slane %v4364_v57, 0  ;;  %v1982_v33 = vld [vmem:[%s4766_s13 + $0x1b] sm:$0x1]  ;;  %v2341_v37 = vld [vmem:[%s4782_s16 + $0x2a] sm:$0x1] }
 0x1fe   : > { %4365 = vrcp.f32 %v1110_v8  ;;  %v1122_v44 = vand.u32 2147483648, %v1110_v8  ;;  %v1120_v46 = vand.u32 2147483647, %v1110_v8  ;;  %vm1116_vm12 = vweird.f32 %v1110_v8 }
 0x1ff   : > { %v987_v48 = vadd.f32 %v4356_v50, %v986_v10  ;;  %v1462_v41 = vadd.f32 %v1460_v24, %v1458_v22  ;;  %v1131_v62 = vmul.f32 %v1130_v47, %v4962_v23  ;;  %v2339_v47 = vld [vmem:[%s4782_s16 + $0x22] sm:$0x1] }
 0x200   : > { %v1123_v29 = vor.u32 1.1754944e-38, %v1122_v44  ;;  %v2340_v44 = vld [vmem:[%s4782_s16 + $0x26] sm:$0x1] }
 0x201   : > { %v991_v21 = vsel %vm990_vm13, %v4356_v50, %v987_v48  ;;  %4367 = vrcp.f32 %v1462_v41  ;;  %v1479_v50 = vperm.slane %v4360_v4, 1  ;;  %v1132_v5 = vadd.f32 %v1131_v62, %v1129_v58  ;;  %v2332_v58 = vld [vmem:[%s4782_s16 + $0x6] sm:$0x1]  ;;  %v1727_v62 = vld [vmem:[%s4821_s24 + $0x24] sm:$0x1] }
 0x202   : > { %v996_v7 = vsel %vm993_vm14, %v995_v19, %v991_v21  ;;  %vm1121_vm14 = vcmp.eq.f32.partialorder %v1120_v46, 8.507059e+37  ;;  %v1474_v10 = vand.u32 2147483648, %v1462_v41  ;;  %v1472_v15 = vand.u32 2147483647, %v1462_v41 }
 0x203   : > { %v1005_v26 = vperm.slane %v996_v7, 0  ;;  %v1480_v52 = vmul.f32 %v1479_v50, %v5021_v35  ;;  %v1482_v48 = vperm.slane %v5111_v9, 2  ;;  %v2377_v50 = vrot.slane %v2340_v44, 7 }
 0x204   : > { %v4366_v28 = vpop.eup %4365  ;;  %v1475_v59 = vor.u32 1.1754944e-38, %v1474_v10  ;;  %v2334_v10 = vld [vmem:[%s4782_s16 + $0xe] sm:$0x1] }
 0x205   : > { %v1006_v30 = vmul.f32 %v1005_v26, %v1004_v25  ;;  %v1112_v31 = vmul.f32 %v4366_v28, %v1110_v8  ;;  %vm1117_vm11 = vweird.f32 %v4366_v28  ;;  %v1478_v8 = vmul.f32 %v1477_v60, %v1407_v61  ;;  %v2342_v60 = vld [vmem:[%s4782_s16 + $0x2e] sm:$0x1] }
 0x206   : > { %vm1118_vm13 = vmor %vm1116_vm12, %vm1117_vm11  ;;  %vm1468_vm11 = vweird.f32 %v1462_v41  ;;  %v1483_v9 = vmul.f32 %v1482_v48, %v4962_v23 }
 0x207   : > { %v1008_v34 = vrot.slane %v1006_v30, 1  ;;  %v1009_v36 = vrot.slane %v1006_v30, 2  ;;  %v1010_v39 = vrot.slane %v1006_v30, 3  ;;  %1015 = vst.msk [vmem:[%s5118_s30] sm:$0x1] %vm1014_vm15, %v1006_v30  ;;  %v1113_v43 = vsub.f32 1.0, %v1112_v31  ;;  %v4368_v51 = vpop.eup %4367 }
 0x208   : > { %v1464_v38 = vmul.f32 %v4368_v51, %v1462_v41  ;;  %vm1469_vm8 = vweird.f32 %v4368_v51  ;;  %v1481_v57 = vadd.f32 %v1480_v52, %v1478_v8  ;;  %v1979_v31 = vld [vmem:[%s4766_s13 + $0x3] sm:$0x1]  ;;  %v2378_v52 = vsel %vm650_vm0, %v2377_v50, %v2339_v47 }
 0x209   : > { %1016 = vst.msk [vmem:[%s5118_s30 + $0x10] sm:$0x1] %vm1014_vm15, %v1008_v34  ;;  %v1114_v45 = vmul.f32 %v4366_v28, %v1113_v43  ;;  %vm1470_vm12 = vmor %vm1468_vm11, %vm1469_vm8  ;;  %v1997_v34 = vrot.slane %v1981_v27, 6  ;;  %v1999_v43 = vrot.slane %v1982_v33, 5  ;;  %vm5966_vm8 = vcmask 130048  }
 0x20a   : > { %1017 = vst.msk [vmem:[%s5118_s30 + $0x20] sm:$0x1] %vm1014_vm15, %v1009_v36  ;;  %v1465_v3 = vsub.f32 1.0, %v1464_v38  ;;  %v1484_v24 = vadd.f32 %v1483_v9, %v1481_v57  ;;  %v2331_v38 = vld [vmem:[%s4782_s16 + $0x2] sm:$0x1] }
 0x20b   : > { %1018 = vst.msk [vmem:[%s5118_s30 + $0x30] sm:$0x1] %vm1014_vm15, %v1010_v39  ;;  %v1115_v55 = vadd.f32 %v4366_v28, %v1114_v45  ;;  %v1983_v39 = vld [vmem:[%s4766_s13 + $0x23] sm:$0x1]  ;;  %v1726_v45 = vld [vmem:[%s4821_s24 + $0x14] sm:$0x1] }
 0x20c   : > { %v1466_v11 = vmul.f32 %v4368_v51, %v1465_v3 }
 0x20d   : > { %v1119_v54 = vsel %vm1118_vm13, %v4366_v28, %v1115_v55  ;;  %vm1473_vm13 = vcmp.eq.f32.partialorder %v1472_v15, 8.507059e+37  ;;  %v1980_v28 = vld [vmem:[%s4766_s13 + $0xb] sm:$0x1]  ;;  %v2001_v55 = vrot.slane %v1983_v39, 4  ;;  %v1985_v15 = vld [vmem:[%s4766_s13 + $0x33] sm:$0x1] }
 0x20e   : > { %v1124_v1 = vsel %vm1121_vm14, %v1123_v29, %v1119_v54  ;;  %v1467_v18 = vadd.f32 %v4368_v51, %v1466_v11  ;;  %v1995_v30 = vrot.slane %v1980_v28, 7  ;;  %v2379_v29 = vrot.slane %v2341_v37, 6  ;;  %v2077_v39 = vld [vmem:[%s4821_s24 + $0x6] sm:$0x1] }
 0x20f   : > { %v1133_v4 = vperm.slane %v1124_v1, 0  ;;  %v2363_v54 = vrot.slane %v2332_v58, 7  ;;  %v1733_v1 = vrot.slane %v1726_v45, 7  ;;  %v2080_v58 = vld [vmem:[%s4821_s24 + $0x36] sm:$0x1] }
 0x210   : > { %v1471_v61 = vsel %vm1470_vm12, %v4368_v51, %v1467_v18  ;;  %v1996_v36 = vsel %vm650_vm0, %v1995_v30, %v1979_v31  ;;  %v1984_v51 = vld [vmem:[%s4766_s13 + $0x2b] sm:$0x1]  ;;  %v2381_v18 = vrot.slane %v2342_v60, 5  ;;  %v2079_v31 = vld [vmem:[%s4821_s24 + $0x26] sm:$0x1] }
 0x211   : > { %v1134_v17 = vmul.f32 %v1133_v4, %v1132_v5  ;;  %v1476_v22 = vsel %vm1473_vm13, %v1475_v59, %v1471_v61  ;;  %v1998_v46 = vsel %vm653_vm1, %v1997_v34, %v1996_v36  ;;  %v2333_v5 = vld [vmem:[%s4782_s16 + $0xa] sm:$0x1]  ;;  %v1725_v4 = vld [vmem:[%s4821_s24 + $0x4] sm:$0x1]  ;;  %v2003_v48 = vrot.slane %v1984_v51, 3 }
 0x212   : > { %v1485_v7 = vperm.slane %v1476_v22, 0  ;;  %v2000_v3 = vsel %vm656_vm2, %v1999_v43, %v1998_v46  ;;  %v2365_v8 = vrot.slane %v2333_v5, 6  ;;  %v2364_v57 = vsel %vm650_vm0, %v2363_v54, %v2331_v38  ;;  %v1728_v61 = vld [vmem:[%s4821_s24 + $0x34] sm:$0x1]  ;;  %v2336_v43 = vld [vmem:[%s4782_s16 + $0x16] sm:$0x1] }
 0x213   : > { %v1136_v19 = vrot.slane %v1134_v17, 1  ;;  %v1137_v14 = vrot.slane %v1134_v17, 2  ;;  %v1138_v21 = vrot.slane %v1134_v17, 3  ;;  %1142 = vst.msk [vmem:[%s5118_s30 + $0x1] sm:$0x1] %vm1014_vm15, %v1134_v17  ;;  %v2380_v59 = vsel %vm653_vm1, %v2379_v29, %v2378_v52 }
 0x214   : > { %v1486_v12 = vmul.f32 %v1485_v7, %v1484_v24  ;;  %v2343_v17 = vld [vmem:[%s4782_s16 + $0x32] sm:$0x1]  ;;  %v1734_v9 = vsel %vm650_vm0, %v1733_v1, %v1725_v4  ;;  %v1735_v22 = vrot.slane %v1727_v62, 6  ;;  %v2367_v7 = vrot.slane %v2334_v10, 5  ;;  %v2345_v46 = vld [vmem:[%s4782_s16 + $0x3a] sm:$0x1] }
 0x215   : > { %1143 = vst.msk [vmem:[%s5118_s30 + $0x11] sm:$0x1] %vm1014_vm15, %v1136_v19  ;;  %v2335_v24 = vld [vmem:[%s4782_s16 + $0x12] sm:$0x1]  ;;  %v2383_v28 = vrot.slane %v2343_v17, 4  ;;  %v2366_v27 = vsel %vm653_vm1, %v2365_v8, %v2364_v57  ;;  %v1737_v36 = vrot.slane %v1728_v61, 5 }
 0x216   : > { %1144 = vst.msk [vmem:[%s5118_s30 + $0x21] sm:$0x1] %vm1014_vm15, %v1137_v14  ;;  %v1488_v25 = vrot.slane %v1486_v12, 1  ;;  %v1489_v26 = vrot.slane %v1486_v12, 2  ;;  %v1490_v41 = vrot.slane %v1486_v12, 3  ;;  %v2002_v14 = vsel %vm659_vm3, %v2001_v55, %v2000_v3 }
 0x217   : > { %1145 = vst.msk [vmem:[%s5118_s30 + $0x31] sm:$0x1] %vm1014_vm15, %v1138_v21  ;;  %v2078_v21 = vld [vmem:[%s4821_s24 + $0x16] sm:$0x1]  ;;  %v2004_v30 = vsel %vm662_vm4, %v2003_v48, %v2002_v14  ;;  %v2369_v44 = vrot.slane %v2335_v24, 4  ;;  %v1736_v37 = vsel %vm653_vm1, %v1735_v22, %v1734_v9  ;;  %v2368_v50 = vsel %vm656_vm2, %v2367_v7, %v2366_v27 }
 0x218   : > { %1494 = vst.msk [vmem:[%s5118_s30 + $0x3] sm:$0x1] %vm1014_vm15, %v1486_v12  ;;  %v2085_v33 = vrot.slane %v2078_v21, 7  ;;  %v2087_v60 = vrot.slane %v2079_v31, 6  ;;  %v2337_v38 = vld [vmem:[%s4782_s16 + $0x1a] sm:$0x1]  ;;  %v1738_v3 = vsel %vm656_vm2, %v1737_v36, %v1736_v37 }
 0x219   : > { %1495 = vst.msk [vmem:[%s5118_s30 + $0x13] sm:$0x1] %vm1014_vm15, %v1488_v25  ;;  %v2371_v54 = vrot.slane %v2336_v43, 3  ;;  %v2346_v52 = vld [vmem:[%s4782_s16 + $0x3e] sm:$0x1]  ;;  %v2387_v5 = vrot.slane %v2345_v46, 2  ;;  %v2370_v4 = vsel %vm659_vm3, %v2369_v44, %v2368_v50 }
 0x21a   : > { %1496 = vst.msk [vmem:[%s5118_s30 + $0x23] sm:$0x1] %vm1014_vm15, %v1489_v26  ;;  %v1986_v26 = vld [vmem:[%s4766_s13 + $0x3b] sm:$0x1]  ;;  %v2086_v29 = vsel %vm650_vm0, %v2085_v33, %v2077_v39  ;;  %v2089_v8 = vrot.slane %v2080_v58, 5  ;;  %v2373_v57 = vrot.slane %v2337_v38, 2 }
 0x21b   : > { %1497 = vst.msk [vmem:[%s5118_s30 + $0x33] sm:$0x1] %vm1014_vm15, %v1490_v41  ;;  %v2344_v41 = vld [vmem:[%s4782_s16 + $0x36] sm:$0x1]  ;;  %v2007_v45 = vrot.slane %v1986_v26, 1  ;;  %v2088_v17 = vsel %vm653_vm1, %v2087_v60, %v2086_v29  ;;  %v2389_v14 = vrot.slane %v2346_v52, 1  ;;  %v2372_v21 = vsel %vm662_vm4, %v2371_v54, %v2370_v4 }
 0x21c   : > { %v2385_v47 = vrot.slane %v2344_v41, 3  ;;  %v2374_v26 = vsel %vm665_vm5, %v2373_v57, %v2372_v21  ;;  %v2204_v57 = vld [vmem:[%s4821_s24 + $0x7] sm:$0x1] }
 0x26d   : > { %v1301_v11 = vpop.f32.mrf.mxu3 }
 0x26e   : > { %v1302_v19 = vadd.f32 %v1301_v11, %v5073_v16  ;;  %v2005_v16 = vrot.slane %v1985_v15, 2 }
 0x26f   : > { %v5185_v25 = vpop.f32.mrf.mxu2 }
 0x270   : > { %v1304_v12 = vadd.f32 %v1302_v19, %v5062_v63  ;;  %4187 = vmatpush.msk.msrb.mxu3 %vm715_vm9, %v5185_v25  ;;  %v2382_v63 = vsel %vm656_vm2, %v2381_v18, %v2380_v59  ;;  %v2006_v55 = vsel %vm665_vm5, %v2005_v16, %v2004_v30  ;;  %v2338_v18 = vld [vmem:[%s4782_s16 + $0x1e] sm:$0x1] }
 0x271   : > { %4188 = vmatmul.msk.f32.vlgmr.msrb.gmra.mxu3 %vm711_vm10, %v4982_v40  ;;  %v2384_v40 = vsel %vm659_vm3, %v2383_v28, %v2382_v63  ;;  %v2008_v10 = vsel %vm668_vm6, %v2007_v45, %v2006_v55  ;;  %v2375_v22 = vrot.slane %v2338_v18, 1 }
 0x272   : > { %v1305_v34 = vadd.f32 %v1304_v12, %v5067_v6  ;;  %v2386_v11 = vsel %vm662_vm4, %v2385_v47, %v2384_v40 }
 0x273   : > { %v2388_v61 = vsel %vm665_vm5, %v2387_v5, %v2386_v11  ;;  %v2376_v27 = vsel %vm668_vm6, %v2375_v22, %v2374_v26 }
 0x274   : > { %v1307_v51 = vrot.slane %v1305_v34, 1  ;;  %v2390_v16 = vsel %vm668_vm6, %v2389_v14, %v2388_v61  ;;  %v2207_v14 = vld [vmem:[%s4821_s24 + $0x37] sm:$0x1] }
 0x275   : > { %v5208_v1 = vpop.f32.mrf.mxu3  ;;  %v2216_v22 = vrot.slane %v2207_v14, 5 }
 0x276   : > { %v1309_v62 = vmax.f32 %v1305_v34, %v1307_v51  ;;  %4183 = vmatpush.msk.msra.mxu0 %vm715_vm9, %v5208_v1 }
 0x277   : > { %4184 = vmatmul.msk.f32.vlgmr.msra.gmra.mxu0 %vm711_vm10, %v4959_v20  ;;  %v1885_v48 = vpop.f32.mrf.mxu2  ;;  %v2090_v20 = vsel %vm656_vm2, %v2089_v8, %v2088_v17  ;;  %v2206_v17 = vld [vmem:[%s4821_s24 + $0x27] sm:$0x1] }
 0x278   : > { %v1311_v15 = vrot.slane %v1309_v62, 1  ;;  %v5222_v19 = vadd.f32 %v1885_v48, %v4925_v2  ;;  %4189 = vmatpush.msk.msrb.mxu0 %vm715_vm9, %v1738_v3  ;;  %v2214_v21 = vrot.slane %v2206_v17, 6 }
 0x27a   : > { %v1313_v59 = vmax.f32 %v1305_v34, %v1311_v15  ;;  %2025 = vmatpush.msra.mxu0 %v2008_v10  ;;  %v1888_v9 = vmax.f32 %v5222_v19, 0.0 }
 0x27c   : > { %v1314_v24 = vsub.f32 %v1305_v34, %v1313_v59  ;;  %v1318_v7 = vrot.slane %v1313_v59, 7  ;;  %v1323_v12 = vrot.slane %v1313_v59, 6  ;;  %4195 = vmatpush.msk.msra.mxu3 %vm715_vm9, %v1888_v9 }
 0x27d   : > { %4196 = vmatmul.msk.f32.vlgmr.msra.gmra.mxu3 %vm711_vm10, %v4937_v13 }
 0x27e   : > { %v1320_v41 = vsub.f32 %v1305_v34, %v1318_v7  ;;  %v1325_v28 = vsub.f32 %v1305_v34, %v1323_v12  ;;  %4201 = vmatpush.msk.msrb.mxu3 %vm715_vm9, %v2090_v20  ;;  %v1315_v30 = vmul.f32 1.442695, %v1314_v24  ;;  %v5246_v34 = vld [vmem:[%s5923_s7] sm:$0xf] }
 0x27f   : > { %4190 = vmatmul.msk.f32.vlgmr.msrb.gmra.mxu0 %vm711_vm10, %v4879_v32 }
 0x280   : > { %v1321_v31 = vmul.f32 1.442695, %v1320_v41  ;;  %v1326_v33 = vmul.f32 1.442695, %v1325_v28  ;;  %2407 = vmatpush.msra.mxu3 %v2390_v16  ;;  %v5294_v28 = vld [vmem:[%s5919_s3] sm:$0xff] }
 0x282   : > { %4369 = vpow2.f32 %v1321_v31  ;;  %2408 = vmatpush.msra.mxu3 %v2376_v27 }
 0x283   : > { %4371 = vpow2.f32 %v1326_v33 }
 0x284   : > { %4373 = vpow2.f32 %v1315_v30 }
 0x285   : > { %4202 = vmatmul.msk.f32.vlgmr.msrb.gmra.mxu3 %vm711_vm10, %v4879_v32  ;;  %v5253_v32 = vld [vmem:[%s5925_s9] sm:$0xf] }
 0x286   : > { %2530 = vmatpush.msrb.mxu3 %v4901_v42 }
 0x287   : > { %4197 = vmatmul.msk.f32.vlgmr.msra.gmra.mxu0 %vm801_vm7, %v5246_v34 }
 0x288   : > { %v4370_v63 = vpop.eup %4369 }
 0x289   : > { %v4372_v36 = vpop.eup %4371  ;;  %v1329_v39 = vrot.slane %v4370_v63, 1  ;;  %v1352_v42 = vperm.slane %v4370_v63, 1 }
 0x28a   : > { %v4374_v43 = vpop.eup %4373  ;;  %v1333_v37 = vrot.slane %v4372_v36, 2  ;;  %v1355_v38 = vperm.slane %v4372_v36, 2 }
 0x28b   : > { %v1331_v44 = vadd.f32 %v4374_v43, %v1329_v39  ;;  %v1350_v47 = vperm.slane %v4374_v43, 0  ;;  %v1353_v55 = vmul.f32 %v1352_v42, %v5021_v35 }
 0x28c   : > { %v1356_v35 = vmul.f32 %v1355_v38, %v4962_v23  ;;  %v2205_v23 = vld [vmem:[%s4821_s24 + $0x17] sm:$0x1] }
 0x28d   : > { %v1335_v45 = vadd.f32 %v1333_v37, %v1331_v44  ;;  %4209 = vmatmul.msk.f32.vlgmr.msra.gmra.mxu3 %vm5966_vm8, %v5253_v32  ;;  %v1351_v60 = vmul.f32 %v1350_v47, %v1280_v56  ;;  %v2212_v18 = vrot.slane %v2205_v23, 7 }
 0x28f   : > { %4375 = vrcp.f32 %v1335_v45  ;;  %v1347_v58 = vand.u32 2147483648, %v1335_v45  ;;  %v1345_v29 = vand.u32 2147483647, %v1335_v45  ;;  %vm1341_vm11 = vweird.f32 %v1335_v45 }
 0x290   : > { %v1354_v62 = vadd.f32 %v1353_v55, %v1351_v60  ;;  %v2213_v59 = vsel %vm650_vm0, %v2212_v18, %v2204_v57 }
 0x291   : > { %v1348_v3 = vor.u32 1.1754944e-38, %v1347_v58  ;;  %vm1346_vm13 = vcmp.eq.f32.partialorder %v1345_v29, 8.507059e+37  ;;  %v2215_v24 = vsel %vm653_vm1, %v2214_v21, %v2213_v59  ;;  %v5326_v29 = vld [vmem:[%s5921_s5] sm:$0xf] }
 0x292   : > { %v1357_v56 = vadd.f32 %v1356_v35, %v1354_v62  ;;  %v2217_v16 = vsel %vm656_vm2, %v2216_v22, %v2215_v24 }
 0x295   : > { %v4376_v46 = vpop.eup %4375 }
 0x296   : > { %v1337_v50 = vmul.f32 %v4376_v46, %v1335_v45  ;;  %vm1342_vm14 = vweird.f32 %v4376_v46  ;;  %v5311_v45 = vld [vmem:[%s5963_s25] sm:$0x7] }
 0x297   : > { %vm1343_vm12 = vmor %vm1341_vm11, %vm1342_vm14 }
 0x298   : > { %v1338_v51 = vsub.f32 1.0, %v1337_v50  ;;  %v5318_v50 = vld [vmem:[%s5920_s4] sm:$0xf] }
 0x29a   : > { %v1339_v40 = vmul.f32 %v4376_v46, %v1338_v51 }
 0x29c   : > { %v1340_v54 = vadd.f32 %v4376_v46, %v1339_v40 }
 0x29e   : > { %v1344_v52 = vsel %vm1343_vm12, %v4376_v46, %v1340_v54 }
 0x29f   : > { %v1349_v53 = vsel %vm1346_vm13, %v1348_v3, %v1344_v52 }
 0x2a0   : > { %v1358_v5 = vperm.slane %v1349_v53, 0 }
 0x2a2   : > { %v1359_v4 = vmul.f32 %v1358_v5, %v1357_v56 }
 0x2a4   : > { %v1361_v10 = vrot.slane %v1359_v4, 1  ;;  %v1362_v8 = vrot.slane %v1359_v4, 2  ;;  %v1363_v11 = vrot.slane %v1359_v4, 3  ;;  %1367 = vst.msk [vmem:[%s5118_s30 + $0x2] sm:$0x1] %vm1014_vm15, %v1359_v4 }
 0x2a6   : > { %1368 = vst.msk [vmem:[%s5118_s30 + $0x12] sm:$0x1] %vm1014_vm15, %v1361_v10 }
 0x2a7   : > { %1369 = vst.msk [vmem:[%s5118_s30 + $0x22] sm:$0x1] %vm1014_vm15, %v1362_v8 }
 0x2a8   : > { %1370 = vst.msk [vmem:[%s5118_s30 + $0x32] sm:$0x1] %vm1014_vm15, %v1363_v11 }
 0x2f4   : > { %v5269_v15 = vpop.f32.mrf.mxu0  ;;  %v5272_v48 = vpop.f32.mrf.mxu3 }
 0x2fc   : > { %v1758_v61 = vpop.f32.mrf.mxu0 }
 0x2fd   : > { %v5279_v20 = vadd.f32 %v1758_v61, %v4925_v2 }
 0x2ff   : > { %v1761_v7 = vmax.f32 %v5279_v20, 0.0 }
 0x300   : > { %v1909_v12 = vpop.f32.mrf.mxu3 }
 0x301   : > { %4191 = vmatpush.msk.msra.mxu1 %vm715_vm9, %v1761_v7  ;;  %v1910_v26 = vadd.f32 %v1909_v12, %v5272_v48 }
 0x302   : > { %4192 = vmatmul.msk.f32.vlgmr.msra.gmra.mxu1 %vm711_vm10, %v4937_v13 }
 0x303   : > { %v1912_v41 = vadd.f32 %v1910_v26, %v5269_v15  ;;  %2049 = vmatpush.msrb.mxu1 %v5294_v28 }
 0x304   : > { %v2027_v27 = vpop.f32.mrf.mxu0 }
 0x305   : > { %4205 = vmatpush.msk.msra.mxu1 %vm715_vm9, %v2217_v16  ;;  %v1913_v30 = vadd.f32 %v1912_v41, %v5067_v6  ;;  %v2028_v31 = vadd.f32 %v2027_v27, %v4921_v0 }
 0x307   : > { %v1915_v33 = vrot.slane %v1913_v30, 1  ;;  %v2030_v63 = vmax.f32 %v2028_v31, 0.0 }
 0x308   : > { %v2110_v36 = vpop.f32.mrf.mxu3 }
 0x309   : > { %v1917_v13 = vmax.f32 %v1913_v30, %v1915_v33  ;;  %v5301_v39 = vadd.f32 %v2110_v36, %v4925_v2  ;;  %v2462_v36 = vld [vmem:[%s4766_s13 + $0x14] sm:$0x1] }
 0x30a   : > { %4198 = vmatmul.msk.f32.vlgmr.msrb.gmra.mxu1 %vm801_vm7, %v2030_v63  ;;  %v2461_v63 = vld [vmem:[%s4766_s13 + $0xc] sm:$0x1] }
 0x30b   : > { %v1919_v43 = vrot.slane %v1917_v13, 1  ;;  %v2113_v44 = vmax.f32 %v5301_v39, 0.0  ;;  %v2476_v13 = vrot.slane %v2461_v63, 7 }
 0x30d   : > { %v1921_v37 = vmax.f32 %v1913_v30, %v1919_v43  ;;  %4203 = vmatpush.msk.msrb.mxu0 %vm715_vm9, %v2113_v44  ;;  %v2460_v43 = vld [vmem:[%s4766_s13 + $0x4] sm:$0x1] }
 0x30e   : > { %4204 = vmatmul.msk.f32.vlgmr.msrb.gmra.mxu0 %vm711_vm10, %v5311_v45 }
 0x30f   : > { %v1922_v42 = vsub.f32 %v1913_v30, %v1921_v37  ;;  %v1926_v46 = vrot.slane %v1921_v37, 7  ;;  %v1931_v47 = vrot.slane %v1921_v37, 6  ;;  %4210 = vmatpush.msk.msra.mxu0 %vm715_vm9, %v5318_v50 }
 0x310   : > { %v2410_v51 = vpop.f32.mrf.mxu3 }
 0x311   : > { %v1928_v55 = vsub.f32 %v1913_v30, %v1926_v46  ;;  %v1933_v58 = vsub.f32 %v1913_v30, %v1931_v47  ;;  %v2411_v60 = vadd.f32 %v2410_v51, %v4910_v49  ;;  %v1923_v40 = vmul.f32 1.442695, %v1922_v42  ;;  %v2463_v42 = vld [vmem:[%s4766_s13 + $0x1c] sm:$0x1] }
 0x312   : > { %4206 = vmatmul.msk.f32.vlgmr.msra.gmra.mxu1 %vm711_vm10, %v5326_v29  ;;  %v2478_v46 = vrot.slane %v2462_v36, 6  ;;  %v2477_v51 = vsel %vm650_vm0, %v2476_v13, %v2460_v43  ;;  %v2467_v13 = vld [vmem:[%s4766_s13 + $0x3c] sm:$0x1] }
 0x313   : > { %v1929_v38 = vmul.f32 1.442695, %v1928_v55  ;;  %v1934_v54 = vmul.f32 1.442695, %v1933_v58  ;;  %v2413_v62 = vmax.f32 %v2411_v60, 0.0 }
 0x314   : > { %v2813_v55 = vld [vmem:[%s4766_s13 + $0xd] sm:$0x1]  ;;  %v2464_v58 = vld [vmem:[%s4766_s13 + $0x24] sm:$0x1]  ;;  %v2814_v60 = vld [vmem:[%s4766_s13 + $0x15] sm:$0x1] }
 0x315   : > { %4377 = vpow2.f32 %v1929_v38 }
 0x316   : > { %4379 = vpow2.f32 %v1934_v54  ;;  %4211 = vmatmul.msk.f32.vlgmr.msra.gmra.mxu0 %vm711_vm10, %v2413_v62  ;;  %v2480_v54 = vrot.slane %v2463_v42, 5  ;;  %v2812_v62 = vld [vmem:[%s4766_s13 + $0x5] sm:$0x1] }
 0x317   : > { %4381 = vpow2.f32 %v1923_v40  ;;  %v2828_v40 = vrot.slane %v2813_v55, 7 }
 0x31b   : > { %v4378_v3 = vpop.eup %4377 }
 0x31c   : > { %v4380_v52 = vpop.eup %4379  ;;  %v1937_v35 = vrot.slane %v4378_v3, 1  ;;  %v1960_v10 = vperm.slane %v4378_v3, 1  ;;  %v2815_v3 = vld [vmem:[%s4766_s13 + $0x1d] sm:$0x1] }
 0x31d   : > { %v4382_v53 = vpop.eup %4381  ;;  %v1941_v5 = vrot.slane %v4380_v52, 2  ;;  %v1963_v61 = vperm.slane %v4380_v52, 2  ;;  %v2830_v52 = vrot.slane %v2814_v60, 6 }
 0x31e   : > { %v1939_v56 = vadd.f32 %v4382_v53, %v1937_v35  ;;  %v1958_v11 = vperm.slane %v4382_v53, 0  ;;  %v1961_v18 = vmul.f32 %v1960_v10, %v5185_v25  ;;  %v2479_v35 = vsel %vm653_vm1, %v2478_v46, %v2477_v51  ;;  %v2819_v46 = vld [vmem:[%s4766_s13 + $0x3d] sm:$0x1] }
 0x31f   : > { %v1964_v19 = vmul.f32 %v1963_v61, %v5208_v1  ;;  %v2482_v10 = vrot.slane %v2464_v58, 4 }
 0x320   : > { %v1943_v4 = vadd.f32 %v1941_v5, %v1939_v56  ;;  %v1959_v14 = vmul.f32 %v1958_v11, %v1888_v9  ;;  %v2816_v56 = vld [vmem:[%s4766_s13 + $0x25] sm:$0x1]  ;;  %v2832_v5 = vrot.slane %v2815_v3, 5 }
 0x322   : > { %4383 = vrcp.f32 %v1943_v4  ;;  %v1955_v57 = vand.u32 2147483648, %v1943_v4  ;;  %v1953_v59 = vand.u32 2147483647, %v1943_v4  ;;  %vm1949_vm14 = vweird.f32 %v1943_v4 }
 0x323   : > { %v1962_v24 = vadd.f32 %v1961_v18, %v1959_v14  ;;  %v2834_v14 = vrot.slane %v2816_v56, 4  ;;  %v2840_v56 = vrot.slane %v2819_v46, 1 }
 0x324   : > { %v1956_v12 = vor.u32 1.1754944e-38, %v1955_v57  ;;  %vm1954_vm12 = vcmp.eq.f32.partialorder %v1953_v59, 8.507059e+37  ;;  %v2817_v57 = vld [vmem:[%s4766_s13 + $0x2d] sm:$0x1]  ;;  %v2466_v59 = vld [vmem:[%s4766_s13 + $0x34] sm:$0x1] }
 0x325   : > { %v1965_v16 = vadd.f32 %v1964_v19, %v1962_v24 }
 0x328   : > { %v4384_v8 = vpop.eup %4383 }
 0x329   : > { %v1945_v23 = vmul.f32 %v4384_v8, %v1943_v4  ;;  %vm1950_vm8 = vweird.f32 %v4384_v8  ;;  %v2465_v4 = vld [vmem:[%s4766_s13 + $0x2c] sm:$0x1] }
 0x32a   : > { %vm1951_vm11 = vmor %vm1949_vm14, %vm1950_vm8  ;;  %v2484_v61 = vrot.slane %v2465_v4, 3 }
 0x32b   : > { %v1946_v17 = vsub.f32 1.0, %v1945_v23 }
 0x32d   : > { %v1947_v21 = vmul.f32 %v4384_v8, %v1946_v17  ;;  %v2481_v17 = vsel %vm656_vm2, %v2480_v54, %v2479_v35  ;;  %v2488_v54 = vrot.slane %v2467_v13, 1 }
 0x32e   : > { %v2483_v19 = vsel %vm659_vm3, %v2482_v10, %v2481_v17 }
 0x32f   : > { %v1948_v22 = vadd.f32 %v4384_v8, %v1947_v21  ;;  %v2485_v43 = vsel %vm662_vm4, %v2484_v61, %v2483_v19 }
 0x331   : > { %v1952_v26 = vsel %vm1951_vm11, %v4384_v8, %v1948_v22  ;;  %v2559_v8 = vld [vmem:[%s4821_s24 + $0x18] sm:$0x1]  ;;  %v2560_v22 = vld [vmem:[%s4821_s24 + $0x28] sm:$0x1] }
 0x332   : > { %v1957_v9 = vsel %vm1954_vm12, %v1956_v12, %v1952_v26  ;;  %v2566_v24 = vrot.slane %v2559_v8, 7  ;;  %v5374_v26 = vld [vmem:[%s5965_s28] sm:$0x7] }
 0x333   : > { %v1966_v41 = vperm.slane %v1957_v9, 0  ;;  %v2558_v9 = vld [vmem:[%s4821_s24 + $0x8] sm:$0x1] }
 0x334   : > { %v2567_v42 = vsel %vm650_vm0, %v2566_v24, %v2558_v9 }
 0x335   : > { %v1967_v27 = vmul.f32 %v1966_v41, %v1965_v16  ;;  %v2818_v41 = vld [vmem:[%s4766_s13 + $0x35] sm:$0x1] }
 0x337   : > { %v1969_v30 = vrot.slane %v1967_v27, 1  ;;  %v1970_v31 = vrot.slane %v1967_v27, 2  ;;  %v1971_v33 = vrot.slane %v1967_v27, 3  ;;  %1975 = vst.msk [vmem:[%s5118_s30 + $0x5] sm:$0x1] %vm1014_vm15, %v1967_v27  ;;  %v2836_v27 = vrot.slane %v2817_v57, 3 }
 0x339   : > { %1976 = vst.msk [vmem:[%s5118_s30 + $0x15] sm:$0x1] %vm1014_vm15, %v1969_v30 }
 0x33a   : > { %1977 = vst.msk [vmem:[%s5118_s30 + $0x25] sm:$0x1] %vm1014_vm15, %v1970_v31  ;;  %v2486_v31 = vrot.slane %v2466_v59, 2 }
 0x33b   : > { %1978 = vst.msk [vmem:[%s5118_s30 + $0x35] sm:$0x1] %vm1014_vm15, %v1971_v33  ;;  %v2568_v33 = vrot.slane %v2560_v22, 6 }
 0x37f   : > { %v1782_v37 = vpop.f32.mrf.mxu1 }
 0x380   : > { %v1783_v47 = vadd.f32 %v1782_v37, %v5272_v48  ;;  %v2829_v48 = vsel %vm650_vm0, %v2828_v40, %v2812_v62  ;;  %v2561_v37 = vld [vmem:[%s4821_s24 + $0x38] sm:$0x1]  ;;  %v2569_v62 = vsel %vm653_vm1, %v2568_v33, %v2567_v42 }
 0x381   : > { %v2831_v11 = vsel %vm653_vm1, %v2830_v52, %v2829_v48  ;;  %v2570_v3 = vrot.slane %v2561_v37, 5 }
 0x382   : > { %v1785_v38 = vadd.f32 %v1783_v47, %v5269_v15  ;;  %v2833_v12 = vsel %vm656_vm2, %v2832_v5, %v2831_v11  ;;  %v2838_v47 = vrot.slane %v2818_v41, 2 }
 0x383   : > { %v2835_v63 = vsel %vm659_vm3, %v2834_v14, %v2833_v12  ;;  %v2571_v57 = vsel %vm656_vm2, %v2570_v3, %v2569_v62  ;;  %v4480_v14 = vld [vmem:[%s5964_s14] sm:$0x7]  ;;  %v2685_v3 = vld [vmem:[%s4821_s24 + $0x9] sm:$0x1] }
 0x384   : > { %v1786_v53 = vadd.f32 %v1785_v38, %v5067_v6  ;;  %v2837_v60 = vsel %vm662_vm4, %v2836_v27, %v2835_v63  ;;  %v2487_v38 = vsel %vm665_vm5, %v2486_v31, %v2485_v43 }
 0x385   : > { %v2839_v4 = vsel %vm665_vm5, %v2838_v47, %v2837_v60  ;;  %v2489_v17 = vsel %vm668_vm6, %v2488_v54, %v2487_v38  ;;  %v2686_v38 = vld [vmem:[%s4821_s24 + $0x19] sm:$0x1]  ;;  %v2687_v54 = vld [vmem:[%s4821_s24 + $0x29] sm:$0x1] }
 0x386   : > { %v1788_v23 = vrot.slane %v1786_v53, 1  ;;  %v2693_v62 = vrot.slane %v2686_v38, 7 }
 0x387   : > { %v5363_v18 = vpop.f32.mrf.mxu1 }
 0x388   : > { %v1790_v21 = vmax.f32 %v1786_v53, %v1788_v23  ;;  %4199 = vmatpush.msk.msrb.mxu2 %vm715_vm9, %v5363_v18 }
 0x389   : > { %4200 = vmatmul.msk.f32.vlgmr.msrb.gmra.mxu2 %vm711_vm10, %v5374_v26 }
 0x38a   : > { %v1792_v16 = vrot.slane %v1790_v21, 1 }
 0x38b   : > { %v5381_v30 = vpop.f32.mrf.mxu0 }
 0x38c   : > { %v1794_v36 = vmax.f32 %v1786_v53, %v1792_v16 }
 0x38e   : > { %v1795_v51 = vsub.f32 %v1786_v53, %v1794_v36  ;;  %v1799_v55 = vrot.slane %v1794_v36, 7  ;;  %v1804_v58 = vrot.slane %v1794_v36, 6 }
 0x38f   : > { %v2237_v40 = vpop.f32.mrf.mxu1 }
 0x390   : > { %v1801_v52 = vsub.f32 %v1786_v53, %v1799_v55  ;;  %v1806_v35 = vsub.f32 %v1786_v53, %v1804_v58  ;;  %v5393_v48 = vadd.f32 %v2237_v40, %v4925_v2  ;;  %v1796_v5 = vmul.f32 1.442695, %v1795_v51 }
 0x391   : > { %v2841_v53 = vsel %vm668_vm6, %v2840_v56, %v2839_v4  ;;  %v2694_v56 = vsel %vm650_vm0, %v2693_v62, %v2685_v3 }
 0x392   : > { %v1802_v10 = vmul.f32 1.442695, %v1801_v52  ;;  %v1807_v8 = vmul.f32 1.442695, %v1806_v35  ;;  %v2240_v11 = vmax.f32 %v5393_v48, 0.0  ;;  %v2695_v35 = vrot.slane %v2687_v54, 6 }
 0x393   : > { %v5397_v23 = vpop.f32.mrf.mxu0  ;;  %v2688_v52 = vld [vmem:[%s4821_s24 + $0x39] sm:$0x1] }
 0x394   : > { %4385 = vpow2.f32 %v1802_v10  ;;  %4207 = vmatpush.msk.msra.mxu2 %vm715_vm9, %v2240_v11  ;;  %4212 = vmatpush.msk.msrb.mxu1 %vm715_vm9, %v5397_v23  ;;  %v2696_v10 = vsel %vm653_vm1, %v2695_v35, %v2694_v56 }
 0x395   : > { %4387 = vpow2.f32 %v1807_v8  ;;  %4208 = vmatmul.msk.f32.vlgmr.msra.gmra.mxu2 %vm711_vm10, %v5311_v45  ;;  %4213 = vmatmul.msk.f32.vlgmr.msrb.gmra.mxu1 %vm711_vm10, %v4480_v14 }
 0x396   : > { %4389 = vpow2.f32 %v1796_v5  ;;  %2506 = vmatpush.msrb.mxu2 %v2489_v17  ;;  %4218 = vmatpush.msk.msra.mxu1 %vm715_vm9, %v2571_v57  ;;  %v2697_v5 = vrot.slane %v2688_v52, 5 }
 0x398   : > { %2858 = vmatpush.msrb.mxu1 %v2841_v53  ;;  %v2698_v17 = vsel %vm656_vm2, %v2697_v5, %v2696_v10 }
 0x399   : > { %4222 = vmatpush.msk.msra.mxu3 %vm715_vm9, %v2698_v17 }
 0x39a   : > { %v4386_v21 = vpop.eup %4385 }
 0x39b   : > { %v4388_v59 = vpop.eup %4387  ;;  %v1810_v61 = vrot.slane %v4386_v21, 1  ;;  %v1833_v9 = vperm.slane %v4386_v21, 1 }
 0x39c   : > { %v4390_v22 = vpop.eup %4389  ;;  %v1814_v12 = vrot.slane %v4388_v59, 2  ;;  %v1836_v37 = vperm.slane %v4388_v59, 2  ;;  %v3038_v59 = vld [vmem:[%s4821_s24 + $0x1b] sm:$0x1] }
 0x39d   : > { %v1812_v24 = vadd.f32 %v4390_v22, %v1810_v61  ;;  %4214 = vmatmul.msk.f32.vlgmr.msrb.gmra.mxu2 %vm801_vm7, %v5246_v34  ;;  %4219 = vmatmul.msk.f32.vlgmr.msra.gmra.mxu1 %vm711_vm10, %v5326_v29  ;;  %v1831_v41 = vperm.slane %v4390_v22, 0  ;;  %v1834_v33 = vmul.f32 %v1833_v9, %v5185_v25  ;;  %v3039_v22 = vld [vmem:[%s4821_s24 + $0x2b] sm:$0x1] }
 0x39e   : > { %v1837_v20 = vmul.f32 %v1836_v37, %v5208_v1 }
 0x39f   : > { %v1816_v19 = vadd.f32 %v1814_v12, %v1812_v24  ;;  %v1832_v36 = vmul.f32 %v1831_v41, %v1761_v7  ;;  %v3045_v24 = vrot.slane %v3038_v59, 7  ;;  %v3040_v41 = vld [vmem:[%s4821_s24 + $0x3b] sm:$0x1] }
 0x3a1   : > { %4391 = vrcp.f32 %v1816_v19  ;;  %v1828_v63 = vand.u32 2147483648, %v1816_v19  ;;  %v1826_v43 = vand.u32 2147483647, %v1816_v19  ;;  %vm1822_vm8 = vweird.f32 %v1816_v19 }
 0x3a3   : > { %v1829_v46 = vor.u32 1.1754944e-38, %v1828_v63  ;;  %vm1827_vm11 = vcmp.eq.f32.partialorder %v1826_v43, 8.507059e+37 }
 0x3a5   : > { %4226 = vmatmul.msk.f32.vlgmr.msrb.gmra.mxu1 %vm801_vm7, %v5246_v34  ;;  %v1835_v34 = vadd.f32 %v1834_v33, %v1832_v36 }
 0x3a7   : > { %v4392_v16 = vpop.eup %4391  ;;  %v1838_v47 = vadd.f32 %v1837_v20, %v1835_v34 }
 0x3a8   : > { %v1818_v27 = vmul.f32 %v4392_v16, %v1816_v19  ;;  %vm1823_vm13 = vweird.f32 %v4392_v16  ;;  %v3037_v19 = vld [vmem:[%s4821_s24 + $0xb] sm:$0x1] }
 0x3a9   : > { %vm1824_vm14 = vmor %vm1822_vm8, %vm1823_vm13  ;;  %v3046_v33 = vsel %vm650_vm0, %v3045_v24, %v3037_v19 }
 0x3aa   : > { %v1819_v31 = vsub.f32 1.0, %v1818_v27  ;;  %v3047_v27 = vrot.slane %v3039_v22, 6 }
 0x3ac   : > { %v1820_v13 = vmul.f32 %v4392_v16, %v1819_v31  ;;  %v3048_v20 = vsel %vm653_vm1, %v3047_v27, %v3046_v33 }
 0x3ae   : > { %v1821_v42 = vadd.f32 %v4392_v16, %v1820_v13 }
 0x3b0   : > { %v1825_v25 = vsel %vm1824_vm14, %v4392_v16, %v1821_v42  ;;  %v3049_v42 = vrot.slane %v3040_v41, 5 }
 0x3b1   : > { %v1830_v7 = vsel %vm1827_vm11, %v1829_v46, %v1825_v25 }
 0x3b2   : > { %v1839_v51 = vperm.slane %v1830_v7, 0 }
 0x3b4   : > { %v1840_v55 = vmul.f32 %v1839_v51, %v1838_v47 }
 0x3b6   : > { %v1842_v58 = vrot.slane %v1840_v55, 1  ;;  %v1843_v60 = vrot.slane %v1840_v55, 2  ;;  %v1844_v40 = vrot.slane %v1840_v55, 3  ;;  %1848 = vst.msk [vmem:[%s5118_s30 + $0x4] sm:$0x1] %vm1014_vm15, %v1840_v55 }
 0x3b8   : > { %1849 = vst.msk [vmem:[%s5118_s30 + $0x14] sm:$0x1] %vm1014_vm15, %v1842_v58 }
 0x3b9   : > { %1850 = vst.msk [vmem:[%s5118_s30 + $0x24] sm:$0x1] %vm1014_vm15, %v1843_v60 }
 0x3ba   : > { %1851 = vst.msk [vmem:[%s5118_s30 + $0x34] sm:$0x1] %vm1014_vm15, %v1844_v40 }
 0x40c   : > { %v2074_v4 = vpop.f32.mrf.mxu2 }
 0x40d   : > { %v2135_v8 = vadd.f32 %v5381_v30, %v2074_v4 }
 0x40f   : > { %v2137_v57 = vadd.f32 %v2135_v8, %v5269_v15 }
 0x411   : > { %v2138_v53 = vadd.f32 %v2137_v57, %v5067_v6 }
 0x412   : > { %v5443_v14 = vpop.f32.mrf.mxu1 }
 0x413   : > { %v2140_v21 = vrot.slane %v2138_v53, 1 }
 0x415   : > { %v2142_v61 = vmax.f32 %v2138_v53, %v2140_v21 }
 0x417   : > { %v2144_v12 = vrot.slane %v2142_v61, 1 }
 0x418   : > { %v2261_v9 = vpop.f32.mrf.mxu2 }
 0x419   : > { %v2146_v30 = vmax.f32 %v2138_v53, %v2144_v12  ;;  %v2262_v16 = vadd.f32 %v2261_v9, %v2074_v4 }
 0x41a   : > { %v2591_v31 = vpop.f32.mrf.mxu1 }
 0x41b   : > { %v2147_v63 = vsub.f32 %v2138_v53, %v2146_v30  ;;  %v2151_v36 = vrot.slane %v2146_v30, 7  ;;  %v2156_v13 = vrot.slane %v2146_v30, 6  ;;  %v2264_v43 = vadd.f32 %v2262_v16, %v5269_v15 }
 0x41c   : > { %v5452_v37 = vadd.f32 %v2591_v31, %v4925_v2  ;;  %v3050_v15 = vsel %vm656_vm2, %v3049_v42, %v3048_v20 }
 0x41d   : > { %v2153_v34 = vsub.f32 %v2138_v53, %v2151_v36  ;;  %v2158_v46 = vsub.f32 %v2138_v53, %v2156_v13  ;;  %v2265_v25 = vadd.f32 %v2264_v43, %v5067_v6  ;;  %v2148_v7 = vmul.f32 1.442695, %v2147_v63 }
 0x41e   : > { %v2594_v47 = vmax.f32 %v5452_v37, 0.0 }
 0x41f   : > { %v2154_v51 = vmul.f32 1.442695, %v2153_v34  ;;  %v2159_v55 = vmul.f32 1.442695, %v2158_v46  ;;  %v2267_v58 = vrot.slane %v2265_v25, 1 }
 0x420   : > { %v2508_v60 = vpop.f32.mrf.mxu2  ;;  %4220 = vmatpush.msk.msra.mxu2 %vm715_vm9, %v2594_v47 }
 0x421   : > { %4393 = vpow2.f32 %v2154_v51  ;;  %v2269_v40 = vmax.f32 %v2265_v25, %v2267_v58  ;;  %v2509_v38 = vadd.f32 %v2508_v60, %v4921_v0  ;;  %4221 = vmatmul.msk.f32.vlgmr.msra.gmra.mxu2 %vm711_vm10, %v5311_v45 }
 0x422   : > { %4395 = vpow2.f32 %v2159_v55  ;;  %v2860_v54 = vpop.f32.mrf.mxu1  ;;  %2882 = vmatpush.msrb.mxu2 %v5294_v28 }
 0x423   : > { %4397 = vpow2.f32 %v2148_v7  ;;  %v2271_v62 = vrot.slane %v2269_v40, 1  ;;  %v2511_v3 = vmax.f32 %v2509_v38, 0.0  ;;  %v2861_v52 = vadd.f32 %v2860_v54, %v4921_v0 }
 0x424   : > { %4234 = vmatpush.msk.msra.mxu2 %vm715_vm9, %v3050_v15 }
 0x425   : > { %v2273_v35 = vmax.f32 %v2265_v25, %v2271_v62  ;;  %4215 = vmatmul.msk.f32.vlgmr.msrb.gmra.mxu3 %vm801_vm7, %v2511_v3  ;;  %v2863_v56 = vmax.f32 %v2861_v52, 0.0 }
 0x427   : > { %v4394_v5 = vpop.eup %4393  ;;  %v2274_v4 = vsub.f32 %v2265_v25, %v2273_v35  ;;  %v2278_v10 = vrot.slane %v2273_v35, 7  ;;  %v2283_v8 = vrot.slane %v2273_v35, 6 }
 0x428   : > { %v4396_v17 = vpop.eup %4395  ;;  %v2162_v57 = vrot.slane %v4394_v5, 1  ;;  %v2185_v41 = vperm.slane %v4394_v5, 1 }
 0x429   : > { %v4398_v53 = vpop.eup %4397  ;;  %v2275_v21 = vmul.f32 1.442695, %v2274_v4  ;;  %v2280_v59 = vsub.f32 %v2265_v25, %v2278_v10  ;;  %4227 = vmatmul.msk.f32.vlgmr.msrb.gmra.mxu2 %vm801_vm7, %v2863_v56  ;;  %v2166_v22 = vrot.slane %v4396_v17, 2  ;;  %v2285_v24 = vsub.f32 %v2265_v25, %v2283_v8 }
 0x42a   : > { %v2164_v61 = vadd.f32 %v4398_v53, %v2162_v57  ;;  %v2183_v31 = vperm.slane %v4398_v53, 0  ;;  %v2186_v34 = vmul.f32 %v2185_v41, %v5363_v18  ;;  %v2188_v55 = vperm.slane %v4396_v17, 2 }
 0x42b   : > { %v2281_v12 = vmul.f32 1.442695, %v2280_v59  ;;  %4399 = vpow2.f32 %v2275_v21  ;;  %v2286_v9 = vmul.f32 1.442695, %v2285_v24 }
 0x42c   : > { %v2168_v19 = vadd.f32 %v2166_v22, %v2164_v61  ;;  %v2184_v25 = vmul.f32 %v2183_v31, %v2113_v44  ;;  %v2189_v38 = vmul.f32 %v2188_v55, %v5208_v1  ;;  %v3174_v31 = vld [vmem:[%s4782_s16 + $0x2b] sm:$0x1]  ;;  %v3165_v55 = vld [vmem:[%s4782_s16 + $0x7] sm:$0x1] }
 0x42d   : > { %4401 = vpow2.f32 %v2281_v12  ;;  %4223 = vmatmul.msk.f32.vlgmr.msra.gmra.mxu3 %vm711_vm10, %v5326_v29 }
 0x42e   : > { %4403 = vrcp.f32 %v2168_v19  ;;  %v2180_v46 = vand.u32 2147483648, %v2168_v19  ;;  %v2178_v51 = vand.u32 2147483647, %v2168_v19  ;;  %vm2174_vm13 = vweird.f32 %v2168_v19 }
 0x42f   : > { %4405 = vpow2.f32 %v2286_v9  ;;  %v2187_v60 = vadd.f32 %v2186_v34, %v2184_v25 }
 0x430   : > { %v2181_v15 = vor.u32 1.1754944e-38, %v2180_v46  ;;  %vm2179_vm14 = vcmp.eq.f32.partialorder %v2178_v51, 8.507059e+37  ;;  %v3176_v46 = vld [vmem:[%s4782_s16 + $0x33] sm:$0x1]  ;;  %v3296_v51 = vld [vmem:[%s4766_s13 + $0x1e] sm:$0x1] }
 0x431   : > { %4235 = vmatmul.msk.f32.vlgmr.msra.gmra.mxu2 %vm711_vm10, %v5326_v29  ;;  %v4400_v30 = vpop.eup %4399  ;;  %v2190_v44 = vadd.f32 %v2189_v38, %v2187_v60  ;;  %v3167_v38 = vld [vmem:[%s4782_s16 + $0xf] sm:$0x1] }
 0x432   : > { %v2310_v52 = vperm.slane %v4400_v30, 0 }
 0x433   : > { %v4402_v16 = vpop.eup %4401 }
 0x434   : > { %v4404_v27 = vpop.eup %4403  ;;  %v2289_v33 = vrot.slane %v4402_v16, 1  ;;  %v2312_v39 = vperm.slane %v4402_v16, 1  ;;  %v2311_v53 = vmul.f32 %v2310_v52, %v2240_v11  ;;  %v3168_v52 = vld [vmem:[%s4782_s16 + $0x13] sm:$0x1] }
 0x435   : > { %v4406_v63 = vpop.eup %4405  ;;  %v2170_v36 = vmul.f32 %v4404_v27, %v2168_v19  ;;  %vm2175_vm12 = vweird.f32 %v4404_v27 }
 0x436   : > { %v2291_v13 = vadd.f32 %v4400_v30, %v2289_v33  ;;  %v2293_v43 = vrot.slane %v4406_v63, 2  ;;  %vm2176_vm8 = vmor %vm2174_vm13, %vm2175_vm12  ;;  %v2313_v5 = vmul.f32 %v2312_v39, %v5363_v18  ;;  %v2315_v61 = vperm.slane %v4406_v63, 2  ;;  %v3294_v63 = vld [vmem:[%s4766_s13 + $0xe] sm:$0x1] }
 0x437   : > { %v2171_v42 = vsub.f32 1.0, %v2170_v36  ;;  %v3172_v36 = vld [vmem:[%s4782_s16 + $0x23] sm:$0x1]  ;;  %v3309_v34 = vrot.slane %v3294_v63, 7 }
 0x438   : > { %v2295_v20 = vadd.f32 %v2293_v43, %v2291_v13  ;;  %v2314_v22 = vadd.f32 %v2313_v5, %v2311_v53  ;;  %v2316_v24 = vmul.f32 %v2315_v61, %v5208_v1  ;;  %v3173_v1 = vld [vmem:[%s4782_s16 + $0x27] sm:$0x1]  ;;  %v3175_v13 = vld [vmem:[%s4782_s16 + $0x2f] sm:$0x1]  ;;  %v3212_v43 = vrot.slane %v3174_v31, 6 }
 0x439   : > { %v2172_v7 = vmul.f32 %v4404_v27, %v2171_v42  ;;  %v3210_v33 = vrot.slane %v3173_v1, 7  ;;  %v3295_v42 = vld [vmem:[%s4766_s13 + $0x16] sm:$0x1]  ;;  %v3214_v60 = vrot.slane %v3175_v13, 5  ;;  %v3177_v5 = vld [vmem:[%s4782_s16 + $0x37] sm:$0x1] }
 0x43a   : > { %4407 = vrcp.f32 %v2295_v20  ;;  %v2307_v57 = vand.u32 2147483648, %v2295_v20  ;;  %v2305_v59 = vand.u32 2147483647, %v2295_v20  ;;  %vm2301_vm12 = vweird.f32 %v2295_v20  ;;  %v2913_v1 = vld [vmem:[%s4821_s24 + $0x3a] sm:$0x1] }
 0x43b   : > { %v2173_v58 = vadd.f32 %v4404_v27, %v2172_v7  ;;  %v2317_v19 = vadd.f32 %v2316_v24, %v2314_v22  ;;  %v3211_v25 = vsel %vm650_vm0, %v3210_v33, %v3172_v36  ;;  %v3169_v22 = vld [vmem:[%s4782_s16 + $0x17] sm:$0x1]  ;;  %v3218_v24 = vrot.slane %v3177_v5, 3  ;;  %v3170_v33 = vld [vmem:[%s4782_s16 + $0x1b] sm:$0x1] }
 0x43c   : > { %v2308_v48 = vor.u32 1.1754944e-38, %v2307_v57  ;;  %v3213_v39 = vsel %vm653_vm1, %v3212_v43, %v3211_v25  ;;  %v2912_v57 = vld [vmem:[%s4821_s24 + $0x2a] sm:$0x1]  ;;  %v3204_v63 = vrot.slane %v3169_v22, 3  ;;  %v3179_v36 = vld [vmem:[%s4782_s16 + $0x3f] sm:$0x1] }
 0x43d   : > { %v2177_v40 = vsel %vm2176_vm8, %v4404_v27, %v2173_v58  ;;  %vm2306_vm8 = vcmp.eq.f32.partialorder %v2305_v59, 8.507059e+37  ;;  %v3166_v58 = vld [vmem:[%s4782_s16 + $0xb] sm:$0x1]  ;;  %v3299_v43 = vld [vmem:[%s4766_s13 + $0x36] sm:$0x1] }
 0x43e   : > { %v2182_v54 = vsel %vm2179_vm14, %v2181_v15, %v2177_v40  ;;  %v3311_v15 = vrot.slane %v3295_v42, 6  ;;  %v3164_v40 = vld [vmem:[%s4782_s16 + $0x3] sm:$0x1]  ;;  %vm5967_vm14 = vcmask 130048  }
 0x43f   : > { %v2191_v62 = vperm.slane %v2182_v54, 0  ;;  %v2911_v54 = vld [vmem:[%s4821_s24 + $0x1a] sm:$0x1] }
 0x440   : > { %v4408_v3 = vpop.eup %4407  ;;  %v2918_v53 = vrot.slane %v2911_v54, 7 }
 0x441   : > { %v2192_v35 = vmul.f32 %v2191_v62, %v2190_v44  ;;  %v2297_v56 = vmul.f32 %v4408_v3, %v2295_v20  ;;  %vm2302_vm11 = vweird.f32 %v4408_v3  ;;  %v3293_v20 = vld [vmem:[%s4766_s13 + $0x6] sm:$0x1]  ;;  %v3196_v62 = vrot.slane %v3165_v55, 7 }
 0x442   : > { %vm2303_vm13 = vmor %vm2301_vm12, %vm2302_vm11  ;;  %v3310_v44 = vsel %vm650_vm0, %v3309_v34, %v3293_v20  ;;  %v2922_v55 = vrot.slane %v2913_v1, 5 }
 0x443   : > { %v2194_v4 = vrot.slane %v2192_v35, 1  ;;  %v2195_v10 = vrot.slane %v2192_v35, 2  ;;  %v2196_v8 = vrot.slane %v2192_v35, 3  ;;  %2200 = vst.msk [vmem:[%s5118_s30 + $0x6] sm:$0x1] %vm1014_vm15, %v2192_v35  ;;  %v2298_v17 = vsub.f32 1.0, %v2297_v56 }
 0x444   : > { %v3200_v35 = vrot.slane %v3167_v38, 5  ;;  %v3312_v59 = vsel %vm653_vm1, %v3311_v15, %v3310_v44  ;;  %v3319_v38 = vrot.slane %v3299_v43, 2 }
 0x445   : > { %2201 = vst.msk [vmem:[%s5118_s30 + $0x16] sm:$0x1] %vm1014_vm15, %v2194_v4  ;;  %v2299_v21 = vmul.f32 %v4408_v3, %v2298_v17  ;;  %v3216_v4 = vrot.slane %v3176_v46, 4  ;;  %v3197_v17 = vsel %vm650_vm0, %v3196_v62, %v3164_v40  ;;  %v3300_v40 = vld [vmem:[%s4766_s13 + $0x3e] sm:$0x1] }
 0x446   : > { %2202 = vst.msk [vmem:[%s5118_s30 + $0x26] sm:$0x1] %vm1014_vm15, %v2195_v10  ;;  %v3297_v10 = vld [vmem:[%s4766_s13 + $0x26] sm:$0x1]  ;;  %v3321_v5 = vrot.slane %v3300_v40, 1 }
 0x447   : > { %2203 = vst.msk [vmem:[%s5118_s30 + $0x36] sm:$0x1] %vm1014_vm15, %v2196_v8  ;;  %v2300_v18 = vadd.f32 %v4408_v3, %v2299_v21  ;;  %v3313_v8 = vrot.slane %v3296_v51, 5  ;;  %v3215_v21 = vsel %vm656_vm2, %v3214_v60, %v3213_v39  ;;  %v3206_v60 = vrot.slane %v3170_v33, 2 }
 0x449   : > { %v2304_v11 = vsel %vm2303_vm13, %v4408_v3, %v2300_v18  ;;  %v3198_v3 = vrot.slane %v3166_v58, 6  ;;  %v2910_v18 = vld [vmem:[%s4821_s24 + $0xa] sm:$0x1]  ;;  %v3171_v58 = vld [vmem:[%s4782_s16 + $0x1f] sm:$0x1] }
 0x44a   : > { %v2309_v12 = vsel %vm2306_vm8, %v2308_v48, %v2304_v11  ;;  %v3202_v48 = vrot.slane %v3168_v52, 4  ;;  %v3178_v11 = vld [vmem:[%s4782_s16 + $0x3b] sm:$0x1]  ;;  %v2919_v31 = vsel %vm650_vm0, %v2918_v53, %v2910_v18  ;;  %s3998_s16 = scalar_lea.sflag [#allocation4], %s4760_s22 }
 0x44b   : > { %v2318_v9 = vperm.slane %v2309_v12, 0  ;;  %v3199_v61 = vsel %vm653_vm1, %v3198_v3, %v3197_v17  ;;  %v3298_v12 = vld [vmem:[%s4766_s13 + $0x2e] sm:$0x1]  ;;  %v3220_v13 = vrot.slane %v3178_v11, 2  ;;  %v3208_v3 = vrot.slane %v3171_v58, 1 }
 0x44c   : > { %v3317_v42 = vrot.slane %v3298_v12, 3  ;;  %v3519_v11 = vld [vmem:[%s4821_s24 + $0x1d] sm:$0x1] }
 0x44d   : > { %v2319_v30 = vmul.f32 %v2318_v9, %v2317_v19  ;;  %v3315_v19 = vrot.slane %v3297_v10, 4  ;;  %v3201_v9 = vsel %vm656_vm2, %v3200_v35, %v3199_v61  ;;  %v3526_v12 = vrot.slane %v3519_v11, 7 }
 0x44e   : > { %v3203_v34 = vsel %vm659_vm3, %v3202_v48, %v3201_v9  ;;  %v3518_v9 = vld [vmem:[%s4821_s24 + $0xd] sm:$0x1] }
 0x44f   : > { %v2321_v16 = vrot.slane %v2319_v30, 1  ;;  %v2322_v41 = vrot.slane %v2319_v30, 2  ;;  %v2323_v27 = vrot.slane %v2319_v30, 3  ;;  %2327 = vst.msk [vmem:[%s5118_s30 + $0x7] sm:$0x1] %vm1014_vm15, %v2319_v30  ;;  %v3205_v54 = vsel %vm662_vm4, %v3204_v63, %v3203_v34 }
 0x451   : > { %2328 = vst.msk [vmem:[%s5118_s30 + $0x17] sm:$0x1] %vm1014_vm15, %v2321_v16  ;;  %v2920_v16 = vrot.slane %v2912_v57, 6 }
 0x452   : > { %2329 = vst.msk [vmem:[%s5118_s30 + $0x27] sm:$0x1] %vm1014_vm15, %v2322_v41  ;;  %v3217_v41 = vsel %vm659_vm3, %v3216_v4, %v3215_v21  ;;  %v3207_v4 = vsel %vm665_vm5, %v3206_v60, %v3205_v54 }
 0x453   : > { %2330 = vst.msk [vmem:[%s5118_s30 + $0x37] sm:$0x1] %vm1014_vm15, %v2323_v27  ;;  %v3314_v27 = vsel %vm656_vm2, %v3313_v8, %v3312_v59  ;;  %v3219_v46 = vsel %vm662_vm4, %v3218_v24, %v3217_v41  ;;  %v2921_v51 = vsel %vm653_vm1, %v2920_v16, %v2919_v31  ;;  %v3209_v53 = vsel %vm668_vm6, %v3208_v3, %v3207_v4  ;;  %v5588_v59 = vld [vmem:[%s5923_s7] sm:$0xf]  ;;  %v3520_v24 = vld [vmem:[%s4821_s24 + $0x2d] sm:$0x1] }
 0x454   : > { %v3316_v25 = vsel %vm659_vm3, %v3315_v19, %v3314_v27  ;;  %v3221_v39 = vsel %vm665_vm5, %v3220_v13, %v3219_v46  ;;  %v2923_v35 = vsel %vm656_vm2, %v2922_v55, %v2921_v51  ;;  %v3521_v16 = vld [vmem:[%s4821_s24 + $0x3d] sm:$0x1]  ;;  %v3528_v41 = vrot.slane %v3520_v24, 6 }
 0x455   : > { %v3318_v44 = vsel %vm662_vm4, %v3317_v42, %v3316_v25  ;;  %v3530_v31 = vrot.slane %v3521_v16, 5 }
 0x456   : > { %v3320_v17 = vsel %vm665_vm5, %v3319_v38, %v3318_v44 }
 0x457   : > { %v3322_v21 = vsel %vm668_vm6, %v3321_v5, %v3320_v17 }
 0x4a4   : > { %v5506_v7 = vpop.f32.mrf.mxu2 }
 0x4a8   : > { %v5517_v56 = vpop.f32.mrf.mxu3 }
 0x4a9   : > { %4216 = vmatpush.msk.msrb.mxu0 %vm715_vm9, %v5517_v56 }
 0x4aa   : > { %4217 = vmatmul.msk.f32.vlgmr.msrb.gmra.mxu0 %vm711_vm10, %v5374_v26 }
 0x4ac   : > { %v5535_v30 = vpop.f32.mrf.mxu2 }
 0x4ad   : > { %4228 = vmatpush.msk.msrb.mxu3 %vm715_vm9, %v5535_v30 }
 0x4ae   : > { %4229 = vmatmul.msk.f32.vlgmr.msrb.gmra.mxu3 %vm711_vm10, %v5374_v26  ;;  %v3222_v26 = vrot.slane %v3179_v36, 1 }
 0x4b0   : > { %v2718_v20 = vpop.f32.mrf.mxu3  ;;  %v3223_v8 = vsel %vm668_vm6, %v3222_v26, %v3221_v39 }
 0x4b1   : > { %v5554_v15 = vadd.f32 %v2718_v20, %v4925_v2 }
 0x4b3   : > { %v2721_v62 = vmax.f32 %v5554_v15, 0.0 }
 0x4b4   : > { %v3070_v52 = vpop.f32.mrf.mxu2 }
 0x4b5   : > { %4224 = vmatpush.msk.msra.mxu0 %vm715_vm9, %v2721_v62  ;;  %v5567_v10 = vadd.f32 %v3070_v52, %v4925_v2 }
 0x4b6   : > { %4225 = vmatmul.msk.f32.vlgmr.msra.gmra.mxu0 %vm711_vm10, %v5311_v45 }
 0x4b7   : > { %v3073_v57 = vmax.f32 %v5567_v10, 0.0  ;;  %4230 = vmatpush.msk.msrb.mxu0 %vm715_vm9, %v2923_v35 }
 0x4b9   : > { %3240 = vmatpush.msra.mxu0 %v3223_v8  ;;  %4236 = vmatpush.msk.msra.mxu3 %vm715_vm9, %v3073_v57 }
 0x4ba   : > { %4237 = vmatmul.msk.f32.vlgmr.msra.gmra.mxu3 %vm711_vm10, %v5311_v45 }
 0x4bb   : > { %3241 = vmatpush.msra.mxu0 %v3209_v53  ;;  %3339 = vmatpush.msrb.mxu3 %v3322_v21 }
 0x4be   : > { %4231 = vmatmul.msk.f32.vlgmr.msrb.gmra.mxu0 %vm711_vm10, %v5326_v29 }
 0x4bf   : > { %3363 = vmatpush.msrb.mxu0 %v5294_v28 }
 0x4c2   : > { %4243 = vmatmul.msk.f32.vlgmr.msrb.gmra.mxu3 %vm801_vm7, %v5588_v59 }
 0x4c6   : > { %4238 = vmatmul.msk.f32.vlgmr.msra.gmra.mxu0 %vm5967_vm14, %v5253_v32  ;;  %v3527_v32 = vsel %vm650_vm0, %v3526_v12, %v3518_v9 }
 0x4c7   : > { %v3529_v63 = vsel %vm653_vm1, %v3528_v41, %v3527_v32 }
 0x4c8   : > { %v3531_v36 = vsel %vm656_vm2, %v3530_v31, %v3529_v63 }
 0x4c9   : > { %4251 = vmatpush.msk.msra.mxu0 %vm715_vm9, %v3531_v36 }
 0x527   : > { %v2555_v61 = vpop.f32.mrf.mxu0 }
 0x528   : > { %v2616_v18 = vadd.f32 %v5506_v7, %v2555_v61 }
 0x52a   : > { %v2618_v22 = vadd.f32 %v2616_v18, %v5443_v14 }
 0x52c   : > { %v2619_v29 = vadd.f32 %v2618_v22, %v5067_v6 }
 0x52e   : > { %v2621_v48 = vrot.slane %v2619_v29, 1 }
 0x530   : > { %v2623_v28 = vmax.f32 %v2619_v29, %v2621_v48 }
 0x531   : > { %v5601_v1 = vpop.f32.mrf.mxu3 }
 0x532   : > { %v2625_v19 = vrot.slane %v2623_v28, 1 }
 0x533   : > { %v2742_v27 = vpop.f32.mrf.mxu0 }
 0x534   : > { %v2627_v7 = vmax.f32 %v2619_v29, %v2625_v19  ;;  %v2743_v33 = vadd.f32 %v2742_v27, %v2555_v61 }
 0x536   : > { %v2628_v13 = vsub.f32 %v2619_v29, %v2627_v7  ;;  %v2632_v43 = vrot.slane %v2627_v7, 7  ;;  %v2637_v42 = vrot.slane %v2627_v7, 6  ;;  %v2745_v34 = vadd.f32 %v2743_v33, %v5443_v14 }
 0x538   : > { %v2634_v46 = vsub.f32 %v2619_v29, %v2632_v43  ;;  %v2639_v25 = vsub.f32 %v2619_v29, %v2637_v42  ;;  %v2746_v20 = vadd.f32 %v2745_v34, %v5067_v6  ;;  %v2629_v51 = vmul.f32 1.442695, %v2628_v13 }
 0x53a   : > { %v2635_v55 = vmul.f32 1.442695, %v2634_v46  ;;  %v2640_v58 = vmul.f32 1.442695, %v2639_v25  ;;  %v2748_v60 = vrot.slane %v2746_v20, 1 }
 0x53b   : > { %v2943_v26 = vpop.f32.mrf.mxu0 }
 0x53c   : > { %4409 = vpow2.f32 %v2635_v55  ;;  %v2750_v40 = vmax.f32 %v2746_v20, %v2748_v60  ;;  %v5610_v38 = vadd.f32 %v2943_v26, %v4925_v2 }
 0x53d   : > { %4411 = vpow2.f32 %v2640_v58  ;;  %v3094_v54 = vpop.f32.mrf.mxu3 }
 0x53e   : > { %4413 = vpow2.f32 %v2629_v51  ;;  %v2752_v39 = vrot.slane %v2750_v40, 1  ;;  %v2946_v44 = vmax.f32 %v5610_v38, 0.0  ;;  %v3095_v3 = vadd.f32 %v3094_v54, %v5601_v1 }
 0x540   : > { %v2754_v52 = vmax.f32 %v2746_v20, %v2752_v39  ;;  %4232 = vmatpush.msk.msra.mxu1 %vm715_vm9, %v2946_v44  ;;  %v3097_v35 = vadd.f32 %v3095_v3, %v5443_v14 }
 0x541   : > { %4233 = vmatmul.msk.f32.vlgmr.msra.gmra.mxu1 %vm711_vm10, %v5311_v45 }
 0x542   : > { %v4410_v5 = vpop.eup %4409  ;;  %v2755_v4 = vsub.f32 %v2746_v20, %v2754_v52  ;;  %v2759_v8 = vrot.slane %v2754_v52, 7  ;;  %v2764_v17 = vrot.slane %v2754_v52, 6  ;;  %v3098_v53 = vadd.f32 %v3097_v35, %v5067_v6  ;;  %4239 = vmatpush.msk.msrb.mxu1 %vm715_vm9, %v5318_v50 }
 0x543   : > { %v5623_v21 = vpop.eup %4411  ;;  %v2643_v61 = vrot.slane %v4410_v5, 1  ;;  %v3243_v18 = vpop.f32.mrf.mxu0  ;;  %v2666_v13 = vperm.slane %v4410_v5, 1 }
 0x544   : > { %v4414_v22 = vpop.eup %4413  ;;  %v2756_v29 = vmul.f32 1.442695, %v2755_v4  ;;  %v2761_v48 = vsub.f32 %v2746_v20, %v2759_v8  ;;  %v2647_v11 = vrot.slane %v5623_v21, 2  ;;  %v2766_v45 = vsub.f32 %v2746_v20, %v2764_v17 }
 0x545   : > { %v2645_v28 = vadd.f32 %v4414_v22, %v2643_v61  ;;  %v3100_v24 = vrot.slane %v3098_v53, 1  ;;  %v3341_v12 = vpop.f32.mrf.mxu3  ;;  %v3244_v9 = vadd.f32 %v3243_v18, %v4910_v49  ;;  %v2664_v49 = vperm.slane %v4414_v22, 0 }
 0x546   : > { %v2762_v19 = vmul.f32 1.442695, %v2761_v48  ;;  %4415 = vpow2.f32 %v2756_v29  ;;  %v2767_v41 = vmul.f32 1.442695, %v2766_v45  ;;  %v3342_v32 = vadd.f32 %v3341_v12, %v4921_v0 }
 0x547   : > { %v2649_v16 = vadd.f32 %v2647_v11, %v2645_v28  ;;  %v3102_v50 = vmax.f32 %v3098_v53, %v3100_v24  ;;  %v3246_v27 = vmax.f32 %v3244_v9, 0.0  ;;  %v2665_v60 = vmul.f32 %v2664_v49, %v2594_v47  ;;  %v5643_v47 = vld [vmem:[%s5921_s5] sm:$0xf] }
 0x548   : > { %4417 = vpow2.f32 %v2762_v19  ;;  %v3344_v7 = vmax.f32 %v3342_v32, 0.0  ;;  %v2669_v26 = vperm.slane %v5623_v21, 2  ;;  %v2667_v3 = vmul.f32 %v2666_v13, %v5517_v56 }
 0x549   : > { %4419 = vrcp.f32 %v2649_v16  ;;  %v3104_v31 = vrot.slane %v3102_v50, 1  ;;  %4240 = vmatmul.msk.f32.vlgmr.msrb.gmra.mxu1 %vm711_vm10, %v3246_v27  ;;  %v2659_v5 = vand.u32 2147483647, %v2649_v16  ;;  %v2661_v4 = vand.u32 2147483648, %v2649_v16 }
 0x54a   : > { %4421 = vpow2.f32 %v2767_v41  ;;  %4244 = vmatmul.msk.f32.vlgmr.msrb.gmra.mxu0 %vm801_vm7, %v3344_v7  ;;  %vm2655_vm12 = vweird.f32 %v2649_v16  ;;  %v2670_v22 = vmul.f32 %v2669_v26, %v5397_v23 }
 0x54b   : > { %v3106_v33 = vmax.f32 %v3098_v53, %v3104_v31  ;;  %v2662_v61 = vor.u32 1.1754944e-38, %v2661_v4  ;;  %vm2660_vm8 = vcmp.eq.f32.partialorder %v2659_v5, 8.507059e+37 }
 0x54c   : > { %v5630_v63 = vpop.eup %4415 }
 0x54d   : > { %v3107_v43 = vsub.f32 %v3098_v53, %v3106_v33  ;;  %v3111_v42 = vrot.slane %v3106_v33, 7  ;;  %v3116_v34 = vrot.slane %v3106_v33, 6  ;;  %v2791_v19 = vperm.slane %v5630_v63, 0 }
 0x54e   : > { %v4418_v36 = vpop.eup %4417 }
 0x54f   : > { %v4420_v46 = vpop.eup %4419  ;;  %v2770_v25 = vrot.slane %v4418_v36, 1  ;;  %v3108_v55 = vmul.f32 1.442695, %v3107_v43  ;;  %v3113_v58 = vsub.f32 %v3098_v53, %v3111_v42  ;;  %v3118_v35 = vsub.f32 %v3098_v53, %v3116_v34 }
 0x550   : > { %v5632_v20 = vpop.eup %4421  ;;  %v2651_v51 = vmul.f32 %v4420_v46, %v2649_v16  ;;  %vm2656_vm11 = vweird.f32 %v4420_v46  ;;  %v2668_v53 = vadd.f32 %v2667_v3, %v2665_v60  ;;  %v2793_v28 = vperm.slane %v4418_v36, 1 }
 0x551   : > { %v2772_v40 = vadd.f32 %v5630_v63, %v2770_v25  ;;  %v2774_v54 = vrot.slane %v5632_v20, 2  ;;  %v3114_v52 = vmul.f32 1.442695, %v3113_v58  ;;  %4423 = vpow2.f32 %v3108_v55  ;;  %vm2657_vm13 = vmor %vm2655_vm12, %vm2656_vm11 }
 0x552   : > { %v2652_v39 = vsub.f32 1.0, %v2651_v51  ;;  %v3119_v37 = vmul.f32 1.442695, %v3118_v35  ;;  %4252 = vmatmul.msk.f32.vlgmr.msra.gmra.mxu0 %vm711_vm10, %v5643_v47  ;;  %v2671_v45 = vadd.f32 %v2670_v22, %v2668_v53  ;;  %v2794_v27 = vmul.f32 %v2793_v28, %v5517_v56 }
 0x553   : > { %v2776_v8 = vadd.f32 %v2774_v54, %v2772_v40  ;;  %4425 = vpow2.f32 %v3114_v52  ;;  %v2792_v63 = vmul.f32 %v2791_v19, %v2721_v62  ;;  %v2796_v34 = vperm.slane %v5632_v20, 2  ;;  %v3646_v19 = vld [vmem:[%s4766_s13 + $0xf] sm:$0x1] }
 0x554   : > { %v2653_v17 = vmul.f32 %v4420_v46, %v2652_v39 }
 0x555   : > { %4427 = vrcp.f32 %v2776_v8  ;;  %v2788_v13 = vand.u32 2147483648, %v2776_v8  ;;  %v2786_v56 = vand.u32 2147483647, %v2776_v8  ;;  %vm2782_vm11 = vweird.f32 %v2776_v8 }
 0x556   : > { %v2654_v21 = vadd.f32 %v4420_v46, %v2653_v17  ;;  %4429 = vpow2.f32 %v3119_v37  ;;  %v2795_v25 = vadd.f32 %v2794_v27, %v2792_v63  ;;  %v2797_v62 = vmul.f32 %v2796_v34, %v5397_v23  ;;  %v3391_v34 = vld [vmem:[%s4821_s24 + $0xc] sm:$0x1] }
 0x557   : > { %v4424_v29 = vpop.eup %4423  ;;  %v2789_v51 = vor.u32 1.1754944e-38, %v2788_v13 }
 0x558   : > { %v2658_v18 = vsel %vm2657_vm13, %v4420_v46, %v2654_v21  ;;  %vm2787_vm13 = vcmp.eq.f32.partialorder %v2786_v56, 8.507059e+37  ;;  %v2798_v60 = vadd.f32 %v2797_v62, %v2795_v25  ;;  %v3143_v40 = vperm.slane %v4424_v29, 0  ;;  %v3394_v62 = vld [vmem:[%s4821_s24 + $0x3c] sm:$0x1] }
 0x559   : > { %v2663_v48 = vsel %vm2660_vm8, %v2662_v61, %v2658_v18  ;;  %v4426_v11 = vpop.eup %4425 }
 0x55a   : > { %v2672_v24 = vperm.slane %v2663_v48, 0  ;;  %v3122_v9 = vrot.slane %v4426_v11, 1  ;;  %v3145_v58 = vperm.slane %v4426_v11, 1  ;;  %v3144_v17 = vmul.f32 %v3143_v40, %v3073_v57 }
 0x55b   : > { %v4428_v12 = vpop.eup %4427 }
 0x55c   : > { %v4430_v16 = vpop.eup %4429  ;;  %v2673_v41 = vmul.f32 %v2672_v24, %v2671_v45  ;;  %v2778_v50 = vmul.f32 %v4428_v12, %v2776_v8  ;;  %v3124_v32 = vadd.f32 %v4424_v29, %v3122_v9  ;;  %vm2783_vm14 = vweird.f32 %v4428_v12  ;;  %v3647_v9 = vld [vmem:[%s4766_s13 + $0x17] sm:$0x1] }
 0x55d   : > { %v3126_v31 = vrot.slane %v4430_v16, 2  ;;  %vm2784_vm12 = vmor %vm2782_vm11, %vm2783_vm14  ;;  %v3146_v3 = vmul.f32 %v3145_v58, %v5535_v30  ;;  %v3148_v53 = vperm.slane %v4430_v16, 2  ;;  %v3661_v16 = vrot.slane %v3646_v19, 7 }
 0x55e   : > { %v2675_v7 = vrot.slane %v2673_v41, 1  ;;  %v2676_v33 = vrot.slane %v2673_v41, 2  ;;  %v2677_v49 = vrot.slane %v2673_v41, 3  ;;  %2681 = vst.msk [vmem:[%s5118_s30 + $0x8] sm:$0x1] %vm1014_vm15, %v2673_v41  ;;  %v2779_v36 = vsub.f32 1.0, %v2778_v50 }
 0x55f   : > { %v3128_v43 = vadd.f32 %v3126_v31, %v3124_v32  ;;  %v3147_v18 = vadd.f32 %v3146_v3, %v3144_v17  ;;  %v3149_v22 = vmul.f32 %v3148_v53, %v5397_v23  ;;  %v3645_v41 = vld [vmem:[%s4766_s13 + $0x7] sm:$0x1]  ;;  %v3648_v50 = vld [vmem:[%s4766_s13 + $0x1f] sm:$0x1]  ;;  %v3663_v27 = vrot.slane %v3647_v9, 6 }
 0x560   : > { %2682 = vst.msk [vmem:[%s5118_s30 + $0x18] sm:$0x1] %vm1014_vm15, %v2675_v7  ;;  %v2780_v42 = vmul.f32 %v4428_v12, %v2779_v36  ;;  %v3662_v32 = vsel %vm650_vm0, %v3661_v16, %v3645_v41  ;;  %v3649_v31 = vld [vmem:[%s4766_s13 + $0x27] sm:$0x1]  ;;  %v3665_v7 = vrot.slane %v3648_v50, 5 }
 0x561   : > { %2683 = vst.msk [vmem:[%s5118_s30 + $0x28] sm:$0x1] %vm1014_vm15, %v2676_v33  ;;  %4431 = vrcp.f32 %v3128_v43  ;;  %v3140_v8 = vand.u32 2147483648, %v3128_v43  ;;  %v3138_v21 = vand.u32 2147483647, %v3128_v43  ;;  %vm3134_vm14 = vweird.f32 %v3128_v43 }
 0x562   : > { %2684 = vst.msk [vmem:[%s5118_s30 + $0x38] sm:$0x1] %vm1014_vm15, %v2677_v49  ;;  %v2781_v46 = vadd.f32 %v4428_v12, %v2780_v42  ;;  %v3150_v48 = vadd.f32 %v3149_v22, %v3147_v18  ;;  %v3664_v33 = vsel %vm653_vm1, %v3663_v27, %v3662_v32  ;;  %v3392_v49 = vld [vmem:[%s4821_s24 + $0x1c] sm:$0x1]  ;;  %v3650_v36 = vld [vmem:[%s4766_s13 + $0x2f] sm:$0x1] }
 0x563   : > { %v3141_v10 = vor.u32 1.1754944e-38, %v3140_v8  ;;  %v3667_v13 = vrot.slane %v3649_v31, 4  ;;  %v3666_v63 = vsel %vm656_vm2, %v3665_v7, %v3664_v33  ;;  %v3399_v42 = vrot.slane %v3392_v49, 7  ;;  %v3744_v17 = vld [vmem:[%s4821_s24 + $0x1e] sm:$0x1] }
 0x564   : > { %v2785_v15 = vsel %vm2784_vm12, %v4428_v12, %v2781_v46  ;;  %vm3139_vm12 = vcmp.eq.f32.partialorder %v3138_v21, 8.507059e+37  ;;  %v3651_v46 = vld [vmem:[%s4766_s13 + $0x37] sm:$0x1]  ;;  %v3669_v25 = vrot.slane %v3650_v36, 3  ;;  %v4483_v21 = vld [vmem:[%s5964_s14] sm:$0x7] }
 0x565   : > { %v2790_v55 = vsel %vm2787_vm13, %v2789_v51, %v2785_v15  ;;  %v3668_v15 = vsel %vm659_vm3, %v3667_v13, %v3666_v63  ;;  %v5724_v18 = vld [vmem:[%s5965_s28] sm:$0x7]  ;;  %v3743_v22 = vld [vmem:[%s4821_s24 + $0xe] sm:$0x1] }
 0x566   : > { %v2799_v20 = vperm.slane %v2790_v55, 0  ;;  %v3670_v40 = vsel %vm662_vm4, %v3669_v25, %v3668_v15  ;;  %v5746_v49 = vld [vmem:[%s5963_s25] sm:$0x7] }
 0x567   : > { %v4432_v26 = vpop.eup %4431 }
 0x568   : > { %v2800_v54 = vmul.f32 %v2799_v20, %v2798_v60  ;;  %v3130_v39 = vmul.f32 %v4432_v26, %v3128_v43  ;;  %vm3135_vm8 = vweird.f32 %v4432_v26  ;;  %v3393_v43 = vld [vmem:[%s4821_s24 + $0x2c] sm:$0x1]  ;;  %v3400_v60 = vsel %vm650_vm0, %v3399_v42, %v3391_v34  ;;  %v3652_v20 = vld [vmem:[%s4766_s13 + $0x3f] sm:$0x1]  ;;  %s4537_s13 = scalar_lea.hbm %s5968_s15, 128 }
 0x569   : > { %vm3136_vm11 = vmor %vm3134_vm14, %vm3135_vm8  ;;  %v3401_v55 = vrot.slane %v3393_v43, 6 }
 0x56a   : > { %v2802_v52 = vrot.slane %v2800_v54, 1  ;;  %v2803_v35 = vrot.slane %v2800_v54, 2  ;;  %v2804_v5 = vrot.slane %v2800_v54, 3  ;;  %2808 = vst.msk [vmem:[%s5118_s30 + $0x9] sm:$0x1] %vm1014_vm15, %v2800_v54  ;;  %v3131_v4 = vsub.f32 1.0, %v3130_v39 }
 0x56b   : > { %v3403_v39 = vrot.slane %v3394_v62, 5  ;;  %v3402_v3 = vsel %vm653_vm1, %v3401_v55, %v3400_v60 }
 0x56c   : > { %2809 = vst.msk [vmem:[%s5118_s30 + $0x19] sm:$0x1] %vm1014_vm15, %v2802_v52  ;;  %v3132_v37 = vmul.f32 %v4432_v26, %v3131_v4  ;;  %v3673_v52 = vrot.slane %v3652_v20, 1 }
 0x56d   : > { %2810 = vst.msk [vmem:[%s5118_s30 + $0x29] sm:$0x1] %vm1014_vm15, %v2803_v35 }
 0x56e   : > { %2811 = vst.msk [vmem:[%s5118_s30 + $0x39] sm:$0x1] %vm1014_vm15, %v2804_v5  ;;  %v3133_v61 = vadd.f32 %v4432_v26, %v3132_v37 }
 0x570   : > { %v3137_v57 = vsel %vm3136_vm11, %v4432_v26, %v3133_v61  ;;  %v3671_v26 = vrot.slane %v3651_v46, 2 }
 0x571   : > { %v3142_v29 = vsel %vm3139_vm12, %v3141_v10, %v3137_v57  ;;  %v3745_v10 = vld [vmem:[%s4821_s24 + $0x2e] sm:$0x1]  ;;  %v3751_v57 = vrot.slane %v3744_v17, 7  ;;  %v3871_v17 = vld [vmem:[%s4821_s24 + $0x1f] sm:$0x1] }
 0x572   : > { %v3151_v28 = vperm.slane %v3142_v29, 0  ;;  %v3672_v35 = vsel %vm665_vm5, %v3671_v26, %v3670_v40 }
 0x573   : > { %v3674_v8 = vsel %vm668_vm6, %v3673_v52, %v3672_v35  ;;  %v3752_v19 = vsel %vm650_vm0, %v3751_v57, %v3743_v22 }
 0x574   : > { %v3152_v11 = vmul.f32 %v3151_v28, %v3150_v48 }
 0x576   : > { %v3154_v45 = vrot.slane %v3152_v11, 1  ;;  %v3155_v24 = vrot.slane %v3152_v11, 2  ;;  %v3156_v12 = vrot.slane %v3152_v11, 3  ;;  %3160 = vst.msk [vmem:[%s5118_s30 + $0xb] sm:$0x1] %vm1014_vm15, %v3152_v11 }
 0x577   : > { %v3746_v11 = vld [vmem:[%s4821_s24 + $0x3e] sm:$0x1] }
 0x578   : > { %3161 = vst.msk [vmem:[%s5118_s30 + $0x1b] sm:$0x1] %vm1014_vm15, %v3154_v45  ;;  %v3753_v45 = vrot.slane %v3745_v10, 6  ;;  %v3755_v9 = vrot.slane %v3746_v11, 5  ;;  %v3873_v10 = vld [vmem:[%s4821_s24 + $0x3f] sm:$0x1] }
 0x579   : > { %3162 = vst.msk [vmem:[%s5118_s30 + $0x2b] sm:$0x1] %vm1014_vm15, %v3155_v24 }
 0x57a   : > { %3163 = vst.msk [vmem:[%s5118_s30 + $0x3b] sm:$0x1] %vm1014_vm15, %v3156_v12  ;;  %v3754_v31 = vsel %vm653_vm1, %v3753_v45, %v3752_v19  ;;  %v3882_v45 = vrot.slane %v3873_v10, 5 }
 0x57b   : > { %v3756_v33 = vsel %vm656_vm2, %v3755_v9, %v3754_v31 }
 0x5be   : > { %v2967_v56 = vpop.f32.mrf.mxu1 }
 0x5bf   : > { %v2968_v51 = vadd.f32 %v2967_v56, %v5601_v1 }
 0x5c1   : > { %v2970_v58 = vadd.f32 %v2968_v51, %v5443_v14  ;;  %v3404_v14 = vsel %vm656_vm2, %v3403_v39, %v3402_v3 }
 0x5c3   : > { %v2971_v54 = vadd.f32 %v2970_v58, %v5067_v6 }
 0x5c5   : > { %v2973_v1 = vrot.slane %v2971_v54, 1 }
 0x5c6   : > { %v5705_v4 = vpop.f32.mrf.mxu1 }
 0x5c7   : > { %v2975_v5 = vmax.f32 %v2971_v54, %v2973_v1  ;;  %4241 = vmatpush.msk.msrb.mxu2 %vm715_vm9, %v5705_v4  ;;  %v5716_v53 = vpop.f32.mrf.mxu0 }
 0x5c8   : > { %4242 = vmatmul.msk.f32.vlgmr.msrb.gmra.mxu2 %vm711_vm10, %v4483_v21  ;;  %4245 = vmatpush.msk.msra.mxu1 %vm715_vm9, %v5716_v53  ;;  %v3878_v21 = vrot.slane %v3871_v17, 7 }
 0x5c9   : > { %v2977_v37 = vrot.slane %v2975_v5, 1  ;;  %4247 = vmatpush.msk.msra.mxu2 %vm715_vm9, %v3404_v14  ;;  %4246 = vmatmul.msk.f32.vlgmr.msra.gmra.mxu1 %vm711_vm10, %v5724_v18 }
 0x5cb   : > { %v2979_v61 = vmax.f32 %v2971_v54, %v2977_v37  ;;  %3691 = vmatpush.msrb.mxu2 %v3674_v8  ;;  %v3872_v37 = vld [vmem:[%s4821_s24 + $0x2f] sm:$0x1] }
 0x5cc   : > { %v3880_v57 = vrot.slane %v3872_v37, 6 }
 0x5cd   : > { %v2980_v29 = vsub.f32 %v2971_v54, %v2979_v61  ;;  %v2984_v48 = vrot.slane %v2979_v61, 7  ;;  %v2989_v28 = vrot.slane %v2979_v61, 6  ;;  %v3870_v61 = vld [vmem:[%s4821_s24 + $0xf] sm:$0x1]  ;;  %s4531_s24 = sshra.s32 %s4015_s17, 4  ;;  %s4532_s24 = int_to_ptr.hbm [resolvable:$true] %s4531_s24 }
 0x5ce   : > { %v3879_v22 = vsel %vm650_vm0, %v3878_v21, %v3870_v61  ;;  %s4533_s29 = scalar_lea.hbm %s4532_s24, 64  ;;  %p4538_p8 = scmp.lt.s32.totalorder %s4532_s24, %s5968_s15 }
 0x5cf   : > { %v2986_v24 = vsub.f32 %v2971_v54, %v2984_v48  ;;  %v2991_v12 = vsub.f32 %v2971_v54, %v2989_v28  ;;  %v2981_v16 = vmul.f32 1.442695, %v2980_v29  ;;  %v3551_v27 = vpop.f32.mrf.mxu0  ;;  %p4534_p5 = scmp.ne.s32.totalorder %s4532_s24, %s4533_s29  ;;  %p4539_p10 = scmp.lt.s32.totalorder %s4537_s13, %s4533_s29 }
 0x5d0   : > { %4248 = vmatmul.msk.f32.vlgmr.msra.gmra.mxu2 %vm711_vm10, %v5643_v47  ;;  %v5735_v32 = vadd.f32 %v3551_v27, %v4925_v2 }
 0x5d1   : > { %v2987_v41 = vmul.f32 1.442695, %v2986_v24  ;;  %v2992_v50 = vmul.f32 1.442695, %v2991_v12  ;;  %v3881_v24 = vsel %vm653_vm1, %v3880_v57, %v3879_v22  ;;  %p4535_p6 = pnand %p4534_p5, %p4737_p9  ;;  %p4540_p13 = por %p4539_p10, %p4538_p8 }
 0x5d2   : > { %v3554_v7 = vmax.f32 %v5735_v32, 0.0 }
 0x5d3   : > { %4433 = vpow2.f32 %v2987_v41  ;;  %p4536_p7 = pneg %p4535_p6 }
 0x5d4   : > { %4435 = vpow2.f32 %v2992_v50  ;;  %4253 = vmatpush.msk.msrb.mxu1 %vm715_vm9, %v3554_v7  ;;  %v4486_v50 = vld [vmem:[%s5919_s3] sm:$0xff] }
 0x5d5   : > { %4437 = vpow2.f32 %v2981_v16  ;;  %4254 = vmatmul.msk.f32.vlgmr.msrb.gmra.mxu1 %vm711_vm10, %v5746_v49  ;;  %v3883_v16 = vsel %vm656_vm2, %v3882_v45, %v3881_v24  ;;  %p4541_p0 = pnand %p4540_p13, %p4536_p7 }
 0x5d6   : > { %4259 = vmatpush.msk.msra.mxu1 %vm715_vm9, %v3756_v33 }
 0x5d8   : > { %4255 = vmatmul.msk.f32.vlgmr.msrb.gmra.mxu2 %vm801_vm7, %v5588_v59 }
 0x5d9   : > { %v4434_v36 = vpop.eup %4433 }
 0x5da   : > { %v4436_v13 = vpop.eup %4435  ;;  %v2995_v63 = vrot.slane %v4434_v36, 1  ;;  %v3018_v46 = vperm.slane %v4434_v36, 1 }
 0x5db   : > { %v4438_v43 = vpop.eup %4437  ;;  %v2999_v56 = vrot.slane %v4436_v13, 2  ;;  %v3021_v26 = vperm.slane %v4436_v13, 2 }
 0x5dc   : > { %v2997_v42 = vadd.f32 %v4438_v43, %v2995_v63  ;;  %v3016_v51 = vperm.slane %v4438_v43, 0  ;;  %v3019_v55 = vmul.f32 %v3018_v46, %v5535_v30 }
 0x5dd   : > { %4260 = vmatmul.msk.f32.vlgmr.msra.gmra.mxu1 %vm711_vm10, %v5643_v47  ;;  %v3022_v30 = vmul.f32 %v3021_v26, %v5397_v23 }
 0x5de   : > { %v3001_v34 = vadd.f32 %v2999_v56, %v2997_v42  ;;  %v3017_v59 = vmul.f32 %v3016_v51, %v2946_v44 }
 0x5e0   : > { %4439 = vrcp.f32 %v3001_v34  ;;  %v3013_v58 = vand.u32 2147483648, %v3001_v34  ;;  %v3011_v20 = vand.u32 2147483647, %v3001_v34  ;;  %vm3007_vm4 = vweird.f32 %v3001_v34 }
 0x5e1   : > { %v3020_v54 = vadd.f32 %v3019_v55, %v3017_v59 }
 0x5e2   : > { %v3014_v39 = vor.u32 1.1754944e-38, %v3013_v58  ;;  %vm3012_vm6 = vcmp.eq.f32.partialorder %v3011_v20, 8.507059e+37 }
 0x5e3   : > { %v3023_v44 = vadd.f32 %v3022_v30, %v3020_v54 }
 0x5e6   : > { %v4440_v25 = vpop.eup %4439 }
 0x5e7   : > { %v3003_v15 = vmul.f32 %v4440_v25, %v3001_v34  ;;  %vm3008_vm3 = vweird.f32 %v4440_v25 }
 0x5e8   : > { %vm3009_vm5 = vmor %vm3007_vm4, %vm3008_vm3 }
 0x5e9   : > { %v3004_v62 = vsub.f32 1.0, %v3003_v15 }
 0x5eb   : > { %v3005_v60 = vmul.f32 %v4440_v25, %v3004_v62 }
 0x5ed   : > { %v3006_v40 = vadd.f32 %v4440_v25, %v3005_v60 }
 0x5ef   : > { %v3010_v3 = vsel %vm3009_vm5, %v4440_v25, %v3006_v40 }
 0x5f0   : > { %v3015_v38 = vsel %vm3012_vm6, %v3014_v39, %v3010_v3 }
 0x5f1   : > { %v3024_v52 = vperm.slane %v3015_v38, 0 }
 0x5f3   : > { %v3025_v1 = vmul.f32 %v3024_v52, %v3023_v44 }
 0x5f5   : > { %v3027_v35 = vrot.slane %v3025_v1, 1  ;;  %v3028_v5 = vrot.slane %v3025_v1, 2  ;;  %v3029_v14 = vrot.slane %v3025_v1, 3  ;;  %3033 = vst.msk [vmem:[%s5118_s30 + $0xa] sm:$0x1] %vm1014_vm15, %v3025_v1 }
 0x5f7   : > { %3034 = vst.msk [vmem:[%s5118_s30 + $0x1a] sm:$0x1] %vm1014_vm15, %v3027_v35 }
 0x5f8   : > { %3035 = vst.msk [vmem:[%s5118_s30 + $0x2a] sm:$0x1] %vm1014_vm15, %v3028_v5 }
 0x5f9   : > { %3036 = vst.msk [vmem:[%s5118_s30 + $0x3a] sm:$0x1] %vm1014_vm15, %v3029_v14 }
 0x646   : > { %v5767_v8 = vpop.f32.mrf.mxu1 }
 0x64b   : > { %v5769_v23 = vpop.f32.mrf.mxu2 }
 0x652   : > { %v3575_v48 = vpop.f32.mrf.mxu1 }
 0x653   : > { %v3424_v29 = vpop.f32.mrf.mxu2  ;;  %v3576_v11 = vadd.f32 %v3575_v48, %v5767_v8 }
 0x654   : > { %v5777_v28 = vadd.f32 %v3424_v29, %v4925_v2 }
 0x655   : > { %v3578_v19 = vadd.f32 %v3576_v11, %v5769_v23 }
 0x656   : > { %v3427_v12 = vmax.f32 %v5777_v28, 0.0 }
 0x657   : > { %v3579_v9 = vadd.f32 %v3578_v19, %v5067_v6 }
 0x658   : > { %4249 = vmatpush.msk.msra.mxu3 %vm715_vm9, %v3427_v12 }
 0x659   : > { %4250 = vmatmul.msk.f32.vlgmr.msra.gmra.mxu3 %vm711_vm10, %v5746_v49  ;;  %v3581_v41 = vrot.slane %v3579_v9, 1 }
 0x65a   : > { %3715 = vmatpush.msrb.mxu3 %v4486_v50  ;;  %v3776_v31 = vpop.f32.mrf.mxu1 }
 0x65b   : > { %v3693_v27 = vpop.f32.mrf.mxu2  ;;  %v3583_v33 = vmax.f32 %v3579_v9, %v3581_v41  ;;  %v5796_v13 = vadd.f32 %v3776_v31, %v4925_v2 }
 0x65c   : > { %4263 = vmatpush.msk.msra.mxu3 %vm715_vm9, %v3883_v16  ;;  %v3694_v36 = vadd.f32 %v3693_v27, %v4921_v0 }
 0x65d   : > { %v3585_v63 = vrot.slane %v3583_v33, 1  ;;  %v3779_v42 = vmax.f32 %v5796_v13, 0.0 }
 0x65e   : > { %v3696_v43 = vmax.f32 %v3694_v36, 0.0 }
 0x65f   : > { %v3587_v56 = vmax.f32 %v3579_v9, %v3585_v63  ;;  %4261 = vmatpush.msk.msra.mxu2 %vm715_vm9, %v3779_v42 }
 0x660   : > { %4262 = vmatmul.msk.f32.vlgmr.msra.gmra.mxu2 %vm711_vm10, %v5746_v49 }
 0x661   : > { %4256 = vmatmul.msk.f32.vlgmr.msrb.gmra.mxu3 %vm801_vm7, %v3696_v43  ;;  %v3588_v34 = vsub.f32 %v3579_v9, %v3587_v56  ;;  %v3592_v46 = vrot.slane %v3587_v56, 7  ;;  %v3597_v0 = vrot.slane %v3587_v56, 6 }
 0x663   : > { %v3594_v25 = vsub.f32 %v3579_v9, %v3592_v46  ;;  %v3599_v51 = vsub.f32 %v3579_v9, %v3597_v0  ;;  %v3589_v15 = vmul.f32 1.442695, %v3588_v34 }
 0x665   : > { %v3595_v62 = vmul.f32 1.442695, %v3594_v25  ;;  %v3600_v55 = vmul.f32 1.442695, %v3599_v51 }
 0x667   : > { %4441 = vpow2.f32 %v3595_v62 }
 0x668   : > { %4443 = vpow2.f32 %v3600_v55 }
 0x669   : > { %4264 = vmatmul.msk.f32.vlgmr.msra.gmra.mxu3 %vm711_vm10, %v5643_v47  ;;  %4445 = vpow2.f32 %v3589_v15 }
 0x66d   : > { %v4442_v58 = vpop.eup %4441 }
 0x66e   : > { %v4444_v59 = vpop.eup %4443  ;;  %v3603_v60 = vrot.slane %v4442_v58, 1  ;;  %v3626_v39 = vperm.slane %v4442_v58, 1 }
 0x66f   : > { %v4446_v20 = vpop.eup %4445  ;;  %v3607_v40 = vrot.slane %v4444_v59, 2  ;;  %v3629_v14 = vperm.slane %v4444_v59, 2 }
 0x670   : > { %v3605_v26 = vadd.f32 %v4446_v20, %v3603_v60  ;;  %v3624_v30 = vperm.slane %v4446_v20, 0  ;;  %v3627_v52 = vmul.f32 %v3626_v39, %v5716_v53 }
 0x671   : > { %v3630_v10 = vmul.f32 %v3629_v14, %v5705_v4 }
 0x672   : > { %v3609_v54 = vadd.f32 %v3607_v40, %v3605_v26  ;;  %v3625_v47 = vmul.f32 %v3624_v30, %v3554_v7 }
 0x674   : > { %4447 = vrcp.f32 %v3609_v54  ;;  %v3621_v1 = vand.u32 2147483648, %v3609_v54  ;;  %v3619_v5 = vand.u32 2147483647, %v3609_v54  ;;  %vm3615_vm1 = vweird.f32 %v3609_v54 }
 0x675   : > { %v3628_v37 = vadd.f32 %v3627_v52, %v3625_v47 }
 0x676   : > { %v3622_v21 = vor.u32 1.1754944e-38, %v3621_v1  ;;  %vm3620_vm7 = vcmp.eq.f32.partialorder %v3619_v5, 8.507059e+37 }
 0x677   : > { %v3631_v32 = vadd.f32 %v3630_v10, %v3628_v37 }
 0x67a   : > { %v4448_v3 = vpop.eup %4447 }
 0x67b   : > { %v3611_v38 = vmul.f32 %v4448_v3, %v3609_v54  ;;  %vm3616_vm0 = vweird.f32 %v4448_v3 }
 0x67c   : > { %vm3617_vm2 = vmor %vm3615_vm1, %vm3616_vm0 }
 0x67d   : > { %v3612_v44 = vsub.f32 1.0, %v3611_v38 }
 0x67f   : > { %v3613_v35 = vmul.f32 %v4448_v3, %v3612_v44 }
 0x681   : > { %v3614_v17 = vadd.f32 %v4448_v3, %v3613_v35 }
 0x683   : > { %v3618_v61 = vsel %vm3617_vm2, %v4448_v3, %v3614_v17 }
 0x684   : > { %v3623_v57 = vsel %vm3620_vm7, %v3622_v21, %v3618_v61 }
 0x685   : > { %v3632_v7 = vperm.slane %v3623_v57, 0 }
 0x687   : > { %v3633_v22 = vmul.f32 %v3632_v7, %v3631_v32 }
 0x689   : > { %v3635_v29 = vrot.slane %v3633_v22, 1  ;;  %v3636_v48 = vrot.slane %v3633_v22, 2  ;;  %v3637_v11 = vrot.slane %v3633_v22, 3  ;;  %3641 = vst.msk [vmem:[%s5118_s30 + $0xd] sm:$0x1] %vm1014_vm15, %v3633_v22 }
 0x68b   : > { %3642 = vst.msk [vmem:[%s5118_s30 + $0x1d] sm:$0x1] %vm1014_vm15, %v3635_v29 }
 0x68c   : > { %3643 = vst.msk [vmem:[%s5118_s30 + $0x2d] sm:$0x1] %vm1014_vm15, %v3636_v48 }
 0x68d   : > { %3644 = vst.msk [vmem:[%s5118_s30 + $0x3d] sm:$0x1] %vm1014_vm15, %v3637_v11 }
 0x6dc   : > { %v3448_v45 = vpop.f32.mrf.mxu3 }
 0x6dd   : > { %v3449_v24 = vadd.f32 %v3448_v45, %v5767_v8 }
 0x6df   : > { %v3451_v19 = vadd.f32 %v3449_v24, %v5769_v23 }
 0x6e1   : > { %v3452_v9 = vadd.f32 %v3451_v19, %v5067_v6 }
 0x6e3   : > { %v3454_v16 = vrot.slane %v3452_v9, 1  ;;  %v3800_v61 = vpop.f32.mrf.mxu2 }
 0x6e4   : > { %v5822_v41 = vpop.f32.mrf.mxu3 }
 0x6e5   : > { %v3456_v50 = vmax.f32 %v3452_v9, %v3454_v16  ;;  %4257 = vmatpush.msk.msrb.mxu0 %vm715_vm9, %v5822_v41 }
 0x6e6   : > { %4258 = vmatmul.msk.f32.vlgmr.msrb.gmra.mxu0 %vm711_vm10, %v5724_v18 }
 0x6e7   : > { %v3458_v27 = vrot.slane %v3456_v50, 1 }
 0x6e9   : > { %v3460_v31 = vmax.f32 %v3452_v9, %v3458_v27 }
 0x6eb   : > { %v3461_v33 = vsub.f32 %v3452_v9, %v3460_v31  ;;  %v3465_v36 = vrot.slane %v3460_v31, 7  ;;  %v3470_v63 = vrot.slane %v3460_v31, 6 }
 0x6ec   : > { %v3903_v8 = vpop.f32.mrf.mxu3 }
 0x6ed   : > { %v3467_v43 = vsub.f32 %v3452_v9, %v3465_v36  ;;  %v3472_v56 = vsub.f32 %v3452_v9, %v3470_v63  ;;  %v5829_v34 = vadd.f32 %v3903_v8, %v4925_v2  ;;  %v3462_v46 = vmul.f32 1.442695, %v3461_v33 }
 0x6ef   : > { %v3468_v0 = vmul.f32 1.442695, %v3467_v43  ;;  %v3473_v25 = vmul.f32 1.442695, %v3472_v56  ;;  %v3906_v51 = vmax.f32 %v5829_v34, 0.0 }
 0x6f1   : > { %4449 = vpow2.f32 %v3468_v0  ;;  %4265 = vmatpush.msk.msra.mxu0 %vm715_vm9, %v3906_v51 }
 0x6f2   : > { %4451 = vpow2.f32 %v3473_v25  ;;  %4266 = vmatmul.msk.f32.vlgmr.msra.gmra.mxu0 %vm711_vm10, %v5746_v49 }
 0x6f3   : > { %4453 = vpow2.f32 %v3462_v46 }
 0x6f7   : > { %v4450_v18 = vpop.eup %4449 }
 0x6f8   : > { %v4452_v15 = vpop.eup %4451  ;;  %v3476_v62 = vrot.slane %v4450_v18, 1  ;;  %v3499_v60 = vperm.slane %v4450_v18, 1 }
 0x6f9   : > { %v4454_v2 = vpop.eup %4453  ;;  %v3480_v58 = vrot.slane %v4452_v15, 2  ;;  %v3502_v44 = vperm.slane %v4452_v15, 2 }
 0x6fa   : > { %v3478_v55 = vadd.f32 %v4454_v2, %v3476_v62  ;;  %v3497_v26 = vperm.slane %v4454_v2, 0  ;;  %v3500_v39 = vmul.f32 %v3499_v60, %v5716_v53 }
 0x6fb   : > { %v3503_v53 = vmul.f32 %v3502_v44, %v5705_v4 }
 0x6fc   : > { %v3482_v59 = vadd.f32 %v3480_v58, %v3478_v55  ;;  %v3498_v49 = vmul.f32 %v3497_v26, %v3427_v12 }
 0x6fe   : > { %4455 = vrcp.f32 %v3482_v59  ;;  %v3494_v3 = vand.u32 2147483648, %v3482_v59  ;;  %v3492_v38 = vand.u32 2147483647, %v3482_v59  ;;  %vm3488_vm10 = vweird.f32 %v3482_v59 }
 0x6ff   : > { %v3501_v1 = vadd.f32 %v3500_v39, %v3498_v49 }
 0x700   : > { %v3495_v47 = vor.u32 1.1754944e-38, %v3494_v3  ;;  %vm3493_vm8 = vcmp.eq.f32.partialorder %v3492_v38, 8.507059e+37 }
 0x701   : > { %v3504_v28 = vadd.f32 %v3503_v53, %v3501_v1 }
 0x704   : > { %v4456_v20 = vpop.eup %4455 }
 0x705   : > { %v3484_v40 = vmul.f32 %v4456_v20, %v3482_v59  ;;  %vm3489_vm9 = vweird.f32 %v4456_v20 }
 0x706   : > { %vm3490_vm13 = vmor %vm3488_vm10, %vm3489_vm9 }
 0x707   : > { %v3485_v54 = vsub.f32 1.0, %v3484_v40 }
 0x709   : > { %v3486_v30 = vmul.f32 %v4456_v20, %v3485_v54 }
 0x70b   : > { %v3487_v52 = vadd.f32 %v4456_v20, %v3486_v30 }
 0x70d   : > { %v3491_v35 = vsel %vm3490_vm13, %v4456_v20, %v3487_v52 }
 0x70e   : > { %v3496_v5 = vsel %vm3493_vm8, %v3495_v47, %v3491_v35 }
 0x70f   : > { %v3505_v12 = vperm.slane %v3496_v5, 0 }
 0x711   : > { %v3506_v14 = vmul.f32 %v3505_v12, %v3504_v28 }
 0x713   : > { %v3508_v17 = vrot.slane %v3506_v14, 1  ;;  %v3509_v37 = vrot.slane %v3506_v14, 2  ;;  %v3510_v21 = vrot.slane %v3506_v14, 3  ;;  %3514 = vst.msk [vmem:[%s5118_s30 + $0xc] sm:$0x1] %vm1014_vm15, %v3506_v14 }
 0x715   : > { %3515 = vst.msk [vmem:[%s5118_s30 + $0x1c] sm:$0x1] %vm1014_vm15, %v3508_v17 }
 0x716   : > { %3516 = vst.msk [vmem:[%s5118_s30 + $0x2c] sm:$0x1] %vm1014_vm15, %v3509_v37 }
 0x717   : > { %3517 = vst.msk [vmem:[%s5118_s30 + $0x3c] sm:$0x1] %vm1014_vm15, %v3510_v21 }
 0x763   : > { %v3740_v10 = vpop.f32.mrf.mxu0 }
 0x764   : > { %v3801_v57 = vadd.f32 %v3800_v61, %v3740_v10 }
 0x766   : > { %v3803_v32 = vadd.f32 %v3801_v57, %v5769_v23 }
 0x768   : > { %v3804_v7 = vadd.f32 %v3803_v32, %v5067_v6 }
 0x76a   : > { %v3806_v22 = vrot.slane %v3804_v7, 1 }
 0x76c   : > { %v3808_v29 = vmax.f32 %v3804_v7, %v3806_v22 }
 0x76e   : > { %v3810_v48 = vrot.slane %v3808_v29, 1 }
 0x76f   : > { %v3927_v11 = vpop.f32.mrf.mxu0 }
 0x770   : > { %v3812_v45 = vmax.f32 %v3804_v7, %v3810_v48  ;;  %v3928_v24 = vadd.f32 %v3927_v11, %v3740_v10 }
 0x772   : > { %v3813_v19 = vsub.f32 %v3804_v7, %v3812_v45  ;;  %v3817_v9 = vrot.slane %v3812_v45, 7  ;;  %v3822_v16 = vrot.slane %v3812_v45, 6  ;;  %v3930_v50 = vadd.f32 %v3928_v24, %v5769_v23 }
 0x774   : > { %v3819_v27 = vsub.f32 %v3804_v7, %v3817_v9  ;;  %v3824_v31 = vsub.f32 %v3804_v7, %v3822_v16  ;;  %v3931_v33 = vadd.f32 %v3930_v50, %v5067_v6  ;;  %v3814_v36 = vmul.f32 1.442695, %v3813_v19 }
 0x776   : > { %v3820_v63 = vmul.f32 1.442695, %v3819_v27  ;;  %v3825_v8 = vmul.f32 1.442695, %v3824_v31  ;;  %v3933_v43 = vrot.slane %v3931_v33, 1 }
 0x778   : > { %4457 = vpow2.f32 %v3820_v63  ;;  %v3935_v56 = vmax.f32 %v3931_v33, %v3933_v43 }
 0x779   : > { %4459 = vpow2.f32 %v3825_v8 }
 0x77a   : > { %4461 = vpow2.f32 %v3814_v36  ;;  %v3937_v46 = vrot.slane %v3935_v56, 1 }
 0x77c   : > { %v3939_v0 = vmax.f32 %v3931_v33, %v3937_v46 }
 0x77e   : > { %v4458_v25 = vpop.eup %4457  ;;  %v3940_v18 = vsub.f32 %v3931_v33, %v3939_v0  ;;  %v3944_v15 = vrot.slane %v3939_v0, 7  ;;  %v3949_v62 = vrot.slane %v3939_v0, 6 }
 0x77f   : > { %v4460_v2 = vpop.eup %4459  ;;  %v3828_v23 = vrot.slane %v4458_v25, 1  ;;  %v3851_v49 = vperm.slane %v4458_v25, 1 }
 0x780   : > { %v4462_v55 = vpop.eup %4461  ;;  %v3941_v58 = vmul.f32 1.442695, %v3940_v18  ;;  %v3946_v59 = vsub.f32 %v3931_v33, %v3944_v15  ;;  %v3832_v60 = vrot.slane %v4460_v2, 2  ;;  %v3951_v20 = vsub.f32 %v3931_v33, %v3949_v62 }
 0x781   : > { %v3830_v6 = vadd.f32 %v4462_v55, %v3828_v23  ;;  %v3849_v38 = vperm.slane %v4462_v55, 0  ;;  %v3852_v5 = vmul.f32 %v3851_v49, %v5822_v41  ;;  %v3854_v21 = vperm.slane %v4460_v2, 2 }
 0x782   : > { %v3947_v26 = vmul.f32 1.442695, %v3946_v59  ;;  %4463 = vpow2.f32 %v3941_v58  ;;  %v3952_v54 = vmul.f32 1.442695, %v3951_v20 }
 0x783   : > { %v3834_v40 = vadd.f32 %v3832_v60, %v3830_v6  ;;  %v3850_v12 = vmul.f32 %v3849_v38, %v3779_v42  ;;  %v3855_v7 = vmul.f32 %v3854_v21, %v5705_v4 }
 0x784   : > { %4465 = vpow2.f32 %v3947_v26 }
 0x785   : > { %4467 = vrcp.f32 %v3834_v40  ;;  %v3846_v28 = vand.u32 2147483648, %v3834_v40  ;;  %v3844_v37 = vand.u32 2147483647, %v3834_v40  ;;  %vm3840_vm11 = vweird.f32 %v3834_v40 }
 0x786   : > { %4469 = vpow2.f32 %v3952_v54  ;;  %v3853_v10 = vadd.f32 %v3852_v5, %v3850_v12 }
 0x787   : > { %v3847_v57 = vor.u32 1.1754944e-38, %v3846_v28  ;;  %vm3845_vm3 = vcmp.eq.f32.partialorder %v3844_v37, 8.507059e+37 }
 0x788   : > { %v4464_v39 = vpop.eup %4463  ;;  %v3856_v42 = vadd.f32 %v3855_v7, %v3853_v10 }
 0x789   : > { %v3976_v11 = vperm.slane %v4464_v39, 0 }
 0x78a   : > { %v4466_v3 = vpop.eup %4465 }
 0x78b   : > { %v4468_v30 = vpop.eup %4467  ;;  %v3955_v44 = vrot.slane %v4466_v3, 1  ;;  %v3978_v13 = vperm.slane %v4466_v3, 1  ;;  %v3977_v33 = vmul.f32 %v3976_v11, %v3906_v51 }
 0x78c   : > { %v4470_v52 = vpop.eup %4469  ;;  %v3836_v1 = vmul.f32 %v4468_v30, %v3834_v40  ;;  %vm3841_vm14 = vweird.f32 %v4468_v30 }
 0x78d   : > { %v3957_v47 = vadd.f32 %v4464_v39, %v3955_v44  ;;  %v3959_v35 = vrot.slane %v4470_v52, 2  ;;  %vm3842_vm12 = vmor %vm3840_vm11, %vm3841_vm14  ;;  %v3979_v19 = vmul.f32 %v3978_v13, %v5822_v41  ;;  %v3981_v8 = vperm.slane %v4470_v52, 2 }
 0x78e   : > { %v3837_v53 = vsub.f32 1.0, %v3836_v1 }
 0x78f   : > { %v3961_v14 = vadd.f32 %v3959_v35, %v3957_v47  ;;  %v3980_v43 = vadd.f32 %v3979_v19, %v3977_v33  ;;  %v3982_v51 = vmul.f32 %v3981_v8, %v5705_v4 }
 0x790   : > { %v3838_v17 = vmul.f32 %v4468_v30, %v3837_v53 }
 0x791   : > { %4471 = vrcp.f32 %v3961_v14  ;;  %v3973_v31 = vand.u32 2147483648, %v3961_v14  ;;  %v3971_v63 = vand.u32 2147483647, %v3961_v14  ;;  %vm3967_vm5 = vweird.f32 %v3961_v14 }
 0x792   : > { %v3839_v61 = vadd.f32 %v4468_v30, %v3838_v17  ;;  %v3983_v0 = vadd.f32 %v3982_v51, %v3980_v43 }
 0x793   : > { %v3974_v56 = vor.u32 1.1754944e-38, %v3973_v31  ;;  %vm3972_vm0 = vcmp.eq.f32.partialorder %v3971_v63, 8.507059e+37 }
 0x794   : > { %v3843_v32 = vsel %vm3842_vm12, %v4468_v30, %v3839_v61 }
 0x795   : > { %v3848_v22 = vsel %vm3845_vm3, %v3847_v57, %v3843_v32 }
 0x796   : > { %v3857_v29 = vperm.slane %v3848_v22, 0 }
 0x797   : > { %v4472_v48 = vpop.eup %4471 }
 0x798   : > { %v3858_v45 = vmul.f32 %v3857_v29, %v3856_v42  ;;  %v3963_v24 = vmul.f32 %v4472_v48, %v3961_v14  ;;  %vm3968_vm4 = vweird.f32 %v4472_v48 }
 0x799   : > { %vm3969_vm6 = vmor %vm3967_vm5, %vm3968_vm4 }
 0x79a   : > { %v3860_v9 = vrot.slane %v3858_v45, 1  ;;  %v3861_v16 = vrot.slane %v3858_v45, 2  ;;  %v3862_v50 = vrot.slane %v3858_v45, 3  ;;  %3866 = vst.msk [vmem:[%s5118_s30 + $0xe] sm:$0x1] %vm1014_vm15, %v3858_v45  ;;  %v3964_v27 = vsub.f32 1.0, %v3963_v24 }
 0x79c   : > { %3867 = vst.msk [vmem:[%s5118_s30 + $0x1e] sm:$0x1] %vm1014_vm15, %v3860_v9  ;;  %v3965_v36 = vmul.f32 %v4472_v48, %v3964_v27 }
 0x79d   : > { %3868 = vst.msk [vmem:[%s5118_s30 + $0x2e] sm:$0x1] %vm1014_vm15, %v3861_v16 }
 0x79e   : > { %3869 = vst.msk [vmem:[%s5118_s30 + $0x3e] sm:$0x1] %vm1014_vm15, %v3862_v50  ;;  %v3966_v41 = vadd.f32 %v4472_v48, %v3965_v36 }
 0x7a0   : > { %v3970_v34 = vsel %vm3969_vm6, %v4472_v48, %v3966_v41 }
 0x7a1   : > { %v3975_v46 = vsel %vm3972_vm0, %v3974_v56, %v3970_v34 }
 0x7a2   : > { %v3984_v25 = vperm.slane %v3975_v46, 0 }
 0x7a4   : > { %v3985_v18 = vmul.f32 %v3984_v25, %v3983_v0 }
 0x7a6   : > { %v3987_v15 = vrot.slane %v3985_v18, 1  ;;  %v3988_v62 = vrot.slane %v3985_v18, 2  ;;  %v3989_v2 = vrot.slane %v3985_v18, 3  ;;  %3993 = vst.msk [vmem:[%s5118_s30 + $0xf] sm:$0x1] %vm1014_vm15, %v3985_v18 }
 0x7a8   : > { %3994 = vst.msk [vmem:[%s5118_s30 + $0x1f] sm:$0x1] %vm1014_vm15, %v3987_v15 }
 0x7a9   : > { %3995 = vst.msk [vmem:[%s5118_s30 + $0x2f] sm:$0x1] %vm1014_vm15, %v3988_v62 }
 0x7aa   : > { %3996 = vst.msk [vmem:[%s5118_s30 + $0x3f] sm:$0x1] %vm1014_vm15, %v3989_v2 }
 0x7ab   : > { %4544 = shalt.err (!%p4541_p0)
}
 0x7ac   : > { %s4604_s22 = smov 128   ;;  %s4605_s30 = smov 8  }
 0x7ad   : > { %4278 = dma.vmem_to_hbm [thread:$0]  (%p4737_p9), %s4013_s21, 1024, %s4015_s17, %s3998_s16, %s4604_s22, %s4604_s22, %s4605_s30  }
 0x7ae PF: > { %s5970_s1 = sld [smem:[#allocation8_spill]]  ;;  %p4285_p1 = pnand %p4140_p12, %p4744_p11 }
 0x7b0   : > { %p4286_p2 = pneg %p4285_p1 }
 0x7b4   : > { %s4029_s2 = sand.u32 1, %s5970_s1  }
 0x7b5   : > { %s4030_s0 = scalar_lea.sflag [#allocation4], %s4029_s2 }
 0x7b6   : > { %4574 = dma.done.wait (%p4286_p2), %s4030_s0, 1024  }
 0x7b7   : > { %4576 = vsyncadd (%p4286_p2), %s4030_s0, 4294966272  ;;  %s31_s23 = sadd.s32 1, %s4599_s23   ;;  %s5971_s24 = sld [smem:[#allocation12_spill]] }
 0x7b8   : > { %p28_p3 = scmp.ge.s32.totalorder %s31_s23, 4   ;;  %s5972_s21 = sld [smem:[#allocation9_spill]] }
 0x7b9   : > { %s5973_s22 = sld [smem:[#allocation10_spill]]  ;;  %s5974_s18 = smov %s4583_s19 }
 0x7ba   : > { %s5975_s19 = smov %s4587_s20  ;;  %30 = sbr.rel (!%p28_p3) target bundleno = 15 (0xf), region = 131 }
 0x7bd   : > { %s5976_s20 = smov %s5971_s24 }
 0x7bf   :  { %4036 = vsyncpa [#allocation3], 1 }
 0x7c0   :  { %4038 = vsyncpa [#allocation3 + $0x1], 1 }
 0x7c1   :  { %4039 = vsyncpa [#allocation4], 1 }
 0x7c2   :  { %4041 = vsyncpa [#allocation4 + $0x1], 1 }

</bundles_post_ra>
